<compile_context>
chip_gen: v6e
topology: v6e:2x2x1
jax: 0.10.0
libtpu: 0.0.40
codegen_flags: <defaults>
</compile_context>

<pallas_src>
import functools

import jax
import jax.numpy as jnp
from jax.experimental import pallas as pl
from jax.experimental.pallas import tpu as pltpu


# --------------------------------------------------------------------------
# In-kernel helpers (operate on values, not refs).
# --------------------------------------------------------------------------
def _layer_norm(x, w, b, eps=1e-5):
    # PyTorch LayerNorm: biased variance, eps inside rsqrt.
    mean = jnp.mean(x, axis=-1, keepdims=True)
    xc = x - mean
    var = jnp.mean(xc * xc, axis=-1, keepdims=True)
    return xc * jax.lax.rsqrt(var + eps) * w + b


def _mha(q_in, kv_in, wq, wk, wv, wo, bq, bk, bv, bo, *, batch, nhead, dh, sq, skv):
    """Multi-head attention on flattened activations.

    q_in: (batch*sq, D) f32, kv_in: (batch*skv, D) f32.
    wq/wk/wv: (H, D, dh) bf16 refs (wq/bq have the 1/sqrt(dh) scale pre-folded);
    wo: (H, dh, D) bf16 ref.  bq/bk/bv: (H, 1, dh) f32 refs; bo: (1, D) f32 ref.
    Returns (batch*sq, D) f32.
    """
    q_bf = q_in.astype(jnp.bfloat16)
    kv_bf = kv_in.astype(jnp.bfloat16)

    # Build head-major (H*B, S, dh) views with per-head projections + leading-axis
    # concat (all reshapes keep the lane dim; seq is a multiple of 8 -> no relayout).
    q_heads, k_heads, v_heads = [], [], []
    for h in range(nhead):  # static loop over heads
        qh = jnp.dot(q_bf, wq[h], preferred_element_type=jnp.float32) + bq[h]
        kh = jnp.dot(kv_bf, wk[h], preferred_element_type=jnp.float32) + bk[h]
        vh = jnp.dot(kv_bf, wv[h], preferred_element_type=jnp.float32) + bv[h]
        q_heads.append(qh.reshape(batch, sq, dh))
        k_heads.append(kh.reshape(batch, skv, dh))
        v_heads.append(vh.reshape(batch, skv, dh))
    q3 = jnp.concatenate(q_heads, axis=0).astype(jnp.bfloat16)  # (H*B, sq, dh)
    k3 = jnp.concatenate(k_heads, axis=0).astype(jnp.bfloat16)  # (H*B, skv, dh)
    v3 = jnp.concatenate(v_heads, axis=0).astype(jnp.bfloat16)  # (H*B, skv, dh)

    # Single batched dot_general for scores + ONE softmax over all (batch, head) pairs.
    # (1/sqrt(dh) already folded into wq/bq -> no per-element rescale here.)
    s = jnp.einsum("nqd,nkd->nqk", q3, k3, preferred_element_type=jnp.float32)
    s = s - jnp.max(s, axis=-1, keepdims=True)
    p = jnp.exp(s)
    p = p * pl.reciprocal(jnp.sum(p, axis=-1, keepdims=True), approx=True)
    o3 = jnp.einsum("nqk,nkd->nqd", p.astype(jnp.bfloat16), v3,
                    preferred_element_type=jnp.float32)          # (H*B, sq, dh)

    # Output projection accumulated per head (no lane-interleaving concatenate).
    acc = None
    for h in range(nhead):
        oh = o3[h * batch:(h + 1) * batch].reshape(batch * sq, dh).astype(jnp.bfloat16)
        contrib = jnp.dot(oh, wo[h], preferred_element_type=jnp.float32)
        acc = contrib if acc is None else acc + contrib
    return acc + bo[...]


# --------------------------------------------------------------------------
# The fused encoder-layer kernel (single program, everything resident in VMEM).
# --------------------------------------------------------------------------
def encoder_layer_kernel(
    src_ref, srcc_ref,
    lo_wq, lo_wk, lo_wv, lo_wo, lo_bq, lo_bk, lo_bv, lo_bo,
    hi_wq, hi_wk, hi_wv, hi_wo, hi_bq, hi_bk, hi_bv, hi_bo,
    ln1w, ln1b, ln3w, ln3b,
    g_w1, g_w2, g_gamma, g_pool, g_bcast,
    w1, b1, w2, b2,
    ln2w, ln2b,
    out_ref,
    *, nhead,
):
    B, s_src, D = src_ref.shape
    _, s_c, _ = srcc_ref.shape
    dh = D // nhead

    src2d = src_ref[...].reshape(B * s_src, D)    # (B*S_src, D) f32
    srcc2d = srcc_ref[...].reshape(B * s_c, D)    # (B*S_srcc, D) f32

    # --- low_attn: q = src, k = v = srcc; residual + norm1 (feeds only the gap block) ---
    attn_lo = _mha(src2d, srcc2d, lo_wq, lo_wk, lo_wv, lo_wo, lo_bq, lo_bk, lo_bv, lo_bo,
                   batch=B, nhead=nhead, dh=dh, sq=s_src, skv=s_c)
    src_n = _layer_norm(src2d + attn_lo, ln1w[...], ln1b[...])

    # --- high_attn: self-attention on srcc; residual + norm3 ---
    attn_hi = _mha(srcc2d, srcc2d, hi_wq, hi_wk, hi_wv, hi_wo, hi_bq, hi_bk, hi_bv, hi_bo,
                   batch=B, nhead=nhead, dh=dh, sq=s_c, skv=s_c)
    srcc_n = _layer_norm(srcc2d + attn_hi, ln3w[...], ln3b[...])

    # --- gap block: per-(batch, channel) gate from globally pooled src_n ---
    # AdaptiveAvgPool2d(1) == mean over sequence, done as a constant (B, B*S_src) matmul.
    gavg = jnp.dot(g_pool[...], src_n, preferred_element_type=jnp.float32)          # (B, D)
    hid = jnp.maximum(
        jnp.dot(gavg.astype(jnp.bfloat16), g_w1[...], preferred_element_type=jnp.float32),
        0.0)                                                                         # (B, D//8)
    ww = jnp.dot(hid.astype(jnp.bfloat16), g_w2[...], preferred_element_type=jnp.float32)  # (B, D)
    gate = 1.0 + g_gamma[0] * ww                                                     # (B, D)
    # Broadcast the per-batch gate back over the sequence via a constant (B*S_srcc, B) matmul.
    gate_rows = jnp.dot(g_bcast[...], gate, preferred_element_type=jnp.float32)      # (B*S_srcc, D)
    srcc_g = srcc_n * gate_rows                                                      # x + gamma*ww*x

    # --- feed-forward + residual + norm2 ---
    ff = jnp.dot(srcc_g.astype(jnp.bfloat16), w1[...], preferred_element_type=jnp.float32) + b1[...]
    ff = jnp.maximum(ff, 0.0)  # ReLU
    ff = jnp.dot(ff.astype(jnp.bfloat16), w2[...], preferred_element_type=jnp.float32) + b2[...]
    out2d = _layer_norm(srcc_g + ff, ln2w[...], ln2b[...])

    out_ref[...] = out2d.reshape(B, s_c, D).astype(out_ref.dtype)


# --------------------------------------------------------------------------
# Wrapper: weight re-layout (free, XLA side) + single pallas_call.
# --------------------------------------------------------------------------
def transformer_encoder_layer(src_sbd, srcc_sbd, p, *, nhead):
    """src_sbd: (S_src, B, D); srcc_sbd: (S_srcc, B, D) — PyTorch (seq, batch, d_model)."""
    s_src, B, D = src_sbd.shape
    s_c, B2, D2 = srcc_sbd.shape
    assert (B, D) == (B2, D2)
    assert D % nhead == 0 and s_src % 8 == 0 and s_c % 8 == 0
    dh = D // nhead
    scale = 1.0 / (dh ** 0.5)
    bf = jnp.bfloat16

    src_bsd = jnp.transpose(src_sbd, (1, 0, 2)).astype(jnp.float32)    # (B, S_src, D)
    srcc_bsd = jnp.transpose(srcc_sbd, (1, 0, 2)).astype(jnp.float32)  # (B, S_srcc, D)

    # NOTE: params stored in x @ W layout (in, out). PyTorch stores (out, in), applies
    # x @ W.T, and MHA packs q/k/v into a single in_proj_weight — transpose/split when
    # loading a real pysot checkpoint.
    def qkv_heads(w):   # (D, D) -> (H, D, dh): output columns grouped per head.
        return jnp.transpose(w.reshape(D, nhead, dh), (1, 0, 2)).astype(bf)

    def out_heads(w):   # (D, D) -> (H, dh, D): input rows grouped per head.
        return w.reshape(nhead, dh, D).astype(bf)

    def bias_heads(b):  # (D,) -> (H, 1, dh)
        return b.reshape(nhead, 1, dh).astype(jnp.float32)

    def row(b):         # (K,) -> (1, K)
        return b.reshape(1, -1).astype(jnp.float32)

    # Constant pooling / broadcast matrices for the gap block.
    bsrc = jnp.repeat(jnp.arange(B), s_src)
    pool = (jnp.arange(B)[:, None] == bsrc[None, :]).astype(jnp.float32) / float(s_src)  # (B, B*S_src)
    bcat = jnp.repeat(jnp.arange(B), s_c)
    bcast = (bcat[:, None] == jnp.arange(B)[None, :]).astype(jnp.float32)                # (B*S_srcc, B)

    vmem = pl.BlockSpec(memory_space=pltpu.MemorySpace.VMEM)
    smem = pl.BlockSpec(memory_space=pltpu.MemorySpace.SMEM)

    inputs, specs = [], []

    def add(x, spec=vmem):
        inputs.append(x)
        specs.append(spec)

    add(src_bsd)
    add(srcc_bsd)
    for pre in ("lo_", "hi_"):
        # Fold the 1/sqrt(dh) attention scale into the q projection (f32, then bf16 cast);
        # matches PyTorch, which scales q (incl. bias) right after the projection.
        add(qkv_heads(p[pre + "wq"] * scale))
        add(qkv_heads(p[pre + "wk"]))
        add(qkv_heads(p[pre + "wv"]))
        add(out_heads(p[pre + "wo"]))
        add(bias_heads(p[pre + "bq"] * scale))
        add(bias_heads(p[pre + "bk"]))
        add(bias_heads(p[pre + "bv"]))
        add(row(p[pre + "bo"]))
    add(row(p["ln1w"])); add(row(p["ln1b"])); add(row(p["ln3w"])); add(row(p["ln3b"]))
    add(p["g_w1"].astype(bf))
    add(p["g_w2"].astype(bf))
    add(p["g_gamma"].reshape(1).astype(jnp.float32), smem)   # scalar gamma in SMEM
    add(pool)
    add(bcast)
    add(p["w1"].astype(bf)); add(row(p["b1"])); add(p["w2"].astype(bf)); add(row(p["b2"]))
    add(row(p["ln2w"])); add(row(p["ln2b"]))

    out_bsd = pl.pallas_call(
        functools.partial(encoder_layer_kernel, nhead=nhead),
        out_shape=jax.ShapeDtypeStruct((B, s_c, D), jnp.float32),
        in_specs=specs,
        out_specs=vmem,
        compiler_params=pltpu.CompilerParams(vmem_limit_bytes=16 * 1024 * 1024),
    )(*inputs)

    return jnp.transpose(out_bsd, (1, 0, 2))   # back to (S_srcc, B, D)


# --------------------------------------------------------------------------
# Pure-JAX f32 reference (mirrors the PyTorch eval-mode forward) for validation.
# --------------------------------------------------------------------------
def reference_forward(src, srcc, p, *, nhead):
    def mha(q, kv, wq, wk, wv, wo, bq, bk, bv, bo):
        Sq, B, D = q.shape
        Skv = kv.shape[0]
        dh = D // nhead
        sc = 1.0 / (dh ** 0.5)
        qp = (q @ wq + bq) * sc
        kp = kv @ wk + bk
        vp = kv @ wv + bv
        qh = qp.reshape(Sq, B, nhead, dh).transpose(1, 2, 0, 3)
        kh = kp.reshape(Skv, B, nhead, dh).transpose(1, 2, 0, 3)
        vh = vp.reshape(Skv, B, nhead, dh).transpose(1, 2, 0, 3)
        s = jnp.einsum("bhqd,bhkd->bhqk", qh, kh)
        a = jax.nn.softmax(s, axis=-1)
        o = jnp.einsum("bhqk,bhkd->bhqd", a, vh)
        o = o.transpose(2, 0, 1, 3).reshape(Sq, B, D)
        return o @ wo + bo

    def ln(x, w, b, eps=1e-5):
        m = x.mean(-1, keepdims=True)
        v = ((x - m) ** 2).mean(-1, keepdims=True)
        return (x - m) / jnp.sqrt(v + eps) * w + b

    src2 = mha(src, srcc, p["lo_wq"], p["lo_wk"], p["lo_wv"], p["lo_wo"],
               p["lo_bq"], p["lo_bk"], p["lo_bv"], p["lo_bo"])
    src_n = ln(src + src2, p["ln1w"], p["ln1b"])
    srcc2 = mha(srcc, srcc, p["hi_wq"], p["hi_wk"], p["hi_wv"], p["hi_wo"],
                p["hi_bq"], p["hi_bk"], p["hi_bv"], p["hi_bo"])
    srcc_n = ln(srcc + srcc2, p["ln3w"], p["ln3b"])
    # gap(x=srcc_n, y=src_n): pool y over the sequence, gate x per (batch, channel).
    yavg = src_n.mean(axis=0)                                   # (B, D)
    ww = jnp.maximum(yavg @ p["g_w1"], 0.0) @ p["g_w2"]         # (B, D)
    gated = srcc_n * (1.0 + p["g_gamma"] * ww)[None, :, :]
    ff = jnp.maximum(gated @ p["w1"] + p["b1"], 0.0) @ p["w2"] + p["b2"]
    return ln(gated + ff, p["ln2w"], p["ln2b"])


# --------------------------------------------------------------------------
# Deterministic synthetic parameters (no checkpoint).
# --------------------------------------------------------------------------
def init_params(key, d_model, dim_ff):
    ks = jax.random.split(key, 16)
    s_d = 1.0 / (d_model ** 0.5)
    s_f = 1.0 / (dim_ff ** 0.5)
    d8 = d_model // 8

    def n(k, shape, scale):
        return jax.random.normal(k, shape, jnp.float32) * scale

    return {
        "lo_wq": n(ks[0], (d_model, d_model), s_d), "lo_wk": n(ks[1], (d_model, d_model), s_d),
        "lo_wv": n(ks[2], (d_model, d_model), s_d), "lo_wo": n(ks[3], (d_model, d_model), s_d),
        "lo_bq": n(ks[4], (d_model,), 0.02), "lo_bk": n(ks[5], (d_model,), 0.02),
        "lo_bv": jnp.zeros((d_model,), jnp.float32), "lo_bo": jnp.zeros((d_model,), jnp.float32),
        "hi_wq": n(ks[6], (d_model, d_model), s_d), "hi_wk": n(ks[7], (d_model, d_model), s_d),
        "hi_wv": n(ks[8], (d_model, d_model), s_d), "hi_wo": n(ks[9], (d_model, d_model), s_d),
        "hi_bq": n(ks[10], (d_model,), 0.02), "hi_bk": n(ks[11], (d_model,), 0.02),
        "hi_bv": jnp.zeros((d_model,), jnp.float32), "hi_bo": jnp.zeros((d_model,), jnp.float32),
        "g_w1": n(ks[12], (d_model, d8), s_d),
        "g_w2": n(ks[13], (d8, d_model), 1.0 / (d8 ** 0.5)),
        "g_gamma": jnp.array(0.3, jnp.float32),   # torch init is 0; nonzero to exercise the gate
        "w1": n(ks[14], (d_model, dim_ff), s_d), "b1": jnp.zeros((dim_ff,), jnp.float32),
        "w2": n(ks[15], (dim_ff, d_model), s_f), "b2": jnp.zeros((d_model,), jnp.float32),
        "ln1w": jnp.ones((d_model,), jnp.float32), "ln1b": jnp.zeros((d_model,), jnp.float32),
        "ln2w": jnp.ones((d_model,), jnp.float32), "ln2b": jnp.zeros((d_model,), jnp.float32),
        "ln3w": jnp.ones((d_model,), jnp.float32), "ln3b": jnp.zeros((d_model,), jnp.float32),
    }


if __name__ == "__main__":
    S_SRC, S_SRCC, B, D = 16, 16, 2, 32     # seq lengths, batch, d_model
    NHEAD, FF = 4, 64

    key = jax.random.PRNGKey(0)
    k_src, k_srcc, k_par = jax.random.split(key, 3)
    src = jax.random.normal(k_src, (S_SRC, B, D), jnp.float32)
    srcc = jax.random.normal(k_srcc, (S_SRCC, B, D), jnp.float32)
    params = init_params(k_par, D, FF)

    fwd = jax.jit(functools.partial(transformer_encoder_layer, nhead=NHEAD))
    out = fwd(src, srcc, params)
    out = jax.block_until_ready(out)

    assert out.shape == (S_SRCC, B, D)
    assert bool(jnp.all(jnp.isfinite(out)))

    ref = reference_forward(src, srcc, params, nhead=NHEAD)
    max_err = float(jnp.max(jnp.abs(out - ref)))
    assert max_err < 1e-1, f"kernel vs f32 reference max abs err = {max_err}"
    print("KERNEL_OK")
</pallas_src>

<mosaic_0001>
module attributes {stable_mosaic.version = 11 : i64} {
  func.func @encoder_layer_kernel(%arg0: memref<2x16x32xf32, #tpu.memory_space<vmem>>, %arg1: memref<2x16x32xf32, #tpu.memory_space<vmem>>, %arg2: memref<4x32x8xbf16, #tpu.memory_space<vmem>>, %arg3: memref<4x32x8xbf16, #tpu.memory_space<vmem>>, %arg4: memref<4x32x8xbf16, #tpu.memory_space<vmem>>, %arg5: memref<4x8x32xbf16, #tpu.memory_space<vmem>>, %arg6: memref<4x1x8xf32, #tpu.memory_space<vmem>>, %arg7: memref<4x1x8xf32, #tpu.memory_space<vmem>>, %arg8: memref<4x1x8xf32, #tpu.memory_space<vmem>>, %arg9: memref<1x32xf32, #tpu.memory_space<vmem>>, %arg10: memref<4x32x8xbf16, #tpu.memory_space<vmem>>, %arg11: memref<4x32x8xbf16, #tpu.memory_space<vmem>>, %arg12: memref<4x32x8xbf16, #tpu.memory_space<vmem>>, %arg13: memref<4x8x32xbf16, #tpu.memory_space<vmem>>, %arg14: memref<4x1x8xf32, #tpu.memory_space<vmem>>, %arg15: memref<4x1x8xf32, #tpu.memory_space<vmem>>, %arg16: memref<4x1x8xf32, #tpu.memory_space<vmem>>, %arg17: memref<1x32xf32, #tpu.memory_space<vmem>>, %arg18: memref<1x32xf32, #tpu.memory_space<vmem>>, %arg19: memref<1x32xf32, #tpu.memory_space<vmem>>, %arg20: memref<1x32xf32, #tpu.memory_space<vmem>>, %arg21: memref<1x32xf32, #tpu.memory_space<vmem>>, %arg22: memref<32x4xbf16, #tpu.memory_space<vmem>>, %arg23: memref<4x32xbf16, #tpu.memory_space<vmem>>, %arg24: memref<1xf32, #tpu.memory_space<smem>>, %arg25: memref<2x32xf32, #tpu.memory_space<vmem>>, %arg26: memref<32x2xf32, #tpu.memory_space<vmem>>, %arg27: memref<32x64xbf16, #tpu.memory_space<vmem>>, %arg28: memref<1x64xf32, #tpu.memory_space<vmem>>, %arg29: memref<64x32xbf16, #tpu.memory_space<vmem>>, %arg30: memref<1x32xf32, #tpu.memory_space<vmem>>, %arg31: memref<1x32xf32, #tpu.memory_space<vmem>>, %arg32: memref<1x32xf32, #tpu.memory_space<vmem>>, %arg33: memref<2x16x32xf32, #tpu.memory_space<vmem>>) attributes {dimension_semantics = [], scalar_prefetch = 0 : i64, scratch_operands = 0 : i64, tpu.core_type = #tpu.core_type<tc>} {
    %c0 = arith.constant 0 : index
    %c0_0 = arith.constant 0 : index
    %c0_1 = arith.constant 0 : index
    %0 = vector.load %arg0[%c0, %c0_0, %c0_1] : memref<2x16x32xf32, #tpu.memory_space<vmem>>, vector<2x16x32xf32>
    %1 = vector.shape_cast %0 : vector<2x16x32xf32> to vector<32x32xf32>
    %c0_2 = arith.constant 0 : index
    %c0_3 = arith.constant 0 : index
    %c0_4 = arith.constant 0 : index
    %2 = vector.load %arg1[%c0_2, %c0_3, %c0_4] : memref<2x16x32xf32, #tpu.memory_space<vmem>>, vector<2x16x32xf32>
    %3 = vector.shape_cast %2 : vector<2x16x32xf32> to vector<32x32xf32>
    %4 = arith.truncf %1 : vector<32x32xf32> to vector<32x32xbf16>
    %5 = arith.truncf %3 : vector<32x32xf32> to vector<32x32xbf16>
    %c0_5 = arith.constant 0 : index
    %c0_6 = arith.constant 0 : index
    %c0_7 = arith.constant 0 : index
    %6 = vector.load %arg2[%c0_5, %c0_6, %c0_7] : memref<4x32x8xbf16, #tpu.memory_space<vmem>>, vector<1x32x8xbf16>
    %7 = vector.shape_cast %6 : vector<1x32x8xbf16> to vector<32x8xbf16>
    %cst = arith.constant dense<0.000000e+00> : vector<32x8xf32>
    %8 = tpu.matmul %4, %7, %cst {dimension_numbers = #tpu.dot_dimension_numbers<[1], [0], [0], [1], [0, 0, 1, 1], [], []>} : vector<32x32xbf16>, vector<32x8xbf16>, vector<32x8xf32> -> vector<32x8xf32>
    %c0_8 = arith.constant 0 : index
    %c0_9 = arith.constant 0 : index
    %c0_10 = arith.constant 0 : index
    %9 = vector.load %arg6[%c0_8, %c0_9, %c0_10] : memref<4x1x8xf32, #tpu.memory_space<vmem>>, vector<1x1x8xf32>
    %10 = vector.shape_cast %9 : vector<1x1x8xf32> to vector<1x8xf32>
    %11 = vector.broadcast %10 : vector<1x8xf32> to vector<32x8xf32>
    %12 = arith.addf %8, %11 : vector<32x8xf32>
    %c0_11 = arith.constant 0 : index
    %c0_12 = arith.constant 0 : index
    %c0_13 = arith.constant 0 : index
    %13 = vector.load %arg3[%c0_11, %c0_12, %c0_13] : memref<4x32x8xbf16, #tpu.memory_space<vmem>>, vector<1x32x8xbf16>
    %14 = vector.shape_cast %13 : vector<1x32x8xbf16> to vector<32x8xbf16>
    %cst_14 = arith.constant dense<0.000000e+00> : vector<32x8xf32>
    %15 = tpu.matmul %5, %14, %cst_14 {dimension_numbers = #tpu.dot_dimension_numbers<[1], [0], [0], [1], [0, 0, 1, 1], [], []>} : vector<32x32xbf16>, vector<32x8xbf16>, vector<32x8xf32> -> vector<32x8xf32>
    %c0_15 = arith.constant 0 : index
    %c0_16 = arith.constant 0 : index
    %c0_17 = arith.constant 0 : index
    %16 = vector.load %arg7[%c0_15, %c0_16, %c0_17] : memref<4x1x8xf32, #tpu.memory_space<vmem>>, vector<1x1x8xf32>
    %17 = vector.shape_cast %16 : vector<1x1x8xf32> to vector<1x8xf32>
    %18 = vector.broadcast %17 : vector<1x8xf32> to vector<32x8xf32>
    %19 = arith.addf %15, %18 : vector<32x8xf32>
    %c0_18 = arith.constant 0 : index
    %c0_19 = arith.constant 0 : index
    %c0_20 = arith.constant 0 : index
    %20 = vector.load %arg4[%c0_18, %c0_19, %c0_20] : memref<4x32x8xbf16, #tpu.memory_space<vmem>>, vector<1x32x8xbf16>
    %21 = vector.shape_cast %20 : vector<1x32x8xbf16> to vector<32x8xbf16>
    %cst_21 = arith.constant dense<0.000000e+00> : vector<32x8xf32>
    %22 = tpu.matmul %5, %21, %cst_21 {dimension_numbers = #tpu.dot_dimension_numbers<[1], [0], [0], [1], [0, 0, 1, 1], [], []>} : vector<32x32xbf16>, vector<32x8xbf16>, vector<32x8xf32> -> vector<32x8xf32>
    %c0_22 = arith.constant 0 : index
    %c0_23 = arith.constant 0 : index
    %c0_24 = arith.constant 0 : index
    %23 = vector.load %arg8[%c0_22, %c0_23, %c0_24] : memref<4x1x8xf32, #tpu.memory_space<vmem>>, vector<1x1x8xf32>
    %24 = vector.shape_cast %23 : vector<1x1x8xf32> to vector<1x8xf32>
    %25 = vector.broadcast %24 : vector<1x8xf32> to vector<32x8xf32>
    %26 = arith.addf %22, %25 : vector<32x8xf32>
    %27 = vector.shape_cast %12 : vector<32x8xf32> to vector<2x16x8xf32>
    %28 = vector.shape_cast %19 : vector<32x8xf32> to vector<2x16x8xf32>
    %29 = vector.shape_cast %26 : vector<32x8xf32> to vector<2x16x8xf32>
    %c1 = arith.constant 1 : index
    %c0_25 = arith.constant 0 : index
    %c0_26 = arith.constant 0 : index
    %30 = vector.load %arg2[%c1, %c0_25, %c0_26] : memref<4x32x8xbf16, #tpu.memory_space<vmem>>, vector<1x32x8xbf16>
    %31 = vector.shape_cast %30 : vector<1x32x8xbf16> to vector<32x8xbf16>
    %cst_27 = arith.constant dense<0.000000e+00> : vector<32x8xf32>
    %32 = tpu.matmul %4, %31, %cst_27 {dimension_numbers = #tpu.dot_dimension_numbers<[1], [0], [0], [1], [0, 0, 1, 1], [], []>} : vector<32x32xbf16>, vector<32x8xbf16>, vector<32x8xf32> -> vector<32x8xf32>
    %c1_28 = arith.constant 1 : index
    %c0_29 = arith.constant 0 : index
    %c0_30 = arith.constant 0 : index
    %33 = vector.load %arg6[%c1_28, %c0_29, %c0_30] : memref<4x1x8xf32, #tpu.memory_space<vmem>>, vector<1x1x8xf32>
    %34 = vector.shape_cast %33 : vector<1x1x8xf32> to vector<1x8xf32>
    %35 = vector.broadcast %34 : vector<1x8xf32> to vector<32x8xf32>
    %36 = arith.addf %32, %35 : vector<32x8xf32>
    %c1_31 = arith.constant 1 : index
    %c0_32 = arith.constant 0 : index
    %c0_33 = arith.constant 0 : index
    %37 = vector.load %arg3[%c1_31, %c0_32, %c0_33] : memref<4x32x8xbf16, #tpu.memory_space<vmem>>, vector<1x32x8xbf16>
    %38 = vector.shape_cast %37 : vector<1x32x8xbf16> to vector<32x8xbf16>
    %cst_34 = arith.constant dense<0.000000e+00> : vector<32x8xf32>
    %39 = tpu.matmul %5, %38, %cst_34 {dimension_numbers = #tpu.dot_dimension_numbers<[1], [0], [0], [1], [0, 0, 1, 1], [], []>} : vector<32x32xbf16>, vector<32x8xbf16>, vector<32x8xf32> -> vector<32x8xf32>
    %c1_35 = arith.constant 1 : index
    %c0_36 = arith.constant 0 : index
    %c0_37 = arith.constant 0 : index
    %40 = vector.load %arg7[%c1_35, %c0_36, %c0_37] : memref<4x1x8xf32, #tpu.memory_space<vmem>>, vector<1x1x8xf32>
    %41 = vector.shape_cast %40 : vector<1x1x8xf32> to vector<1x8xf32>
    %42 = vector.broadcast %41 : vector<1x8xf32> to vector<32x8xf32>
    %43 = arith.addf %39, %42 : vector<32x8xf32>
    %c1_38 = arith.constant 1 : index
    %c0_39 = arith.constant 0 : index
    %c0_40 = arith.constant 0 : index
    %44 = vector.load %arg4[%c1_38, %c0_39, %c0_40] : memref<4x32x8xbf16, #tpu.memory_space<vmem>>, vector<1x32x8xbf16>
    %45 = vector.shape_cast %44 : vector<1x32x8xbf16> to vector<32x8xbf16>
    %cst_41 = arith.constant dense<0.000000e+00> : vector<32x8xf32>
    %46 = tpu.matmul %5, %45, %cst_41 {dimension_numbers = #tpu.dot_dimension_numbers<[1], [0], [0], [1], [0, 0, 1, 1], [], []>} : vector<32x32xbf16>, vector<32x8xbf16>, vector<32x8xf32> -> vector<32x8xf32>
    %c1_42 = arith.constant 1 : index
    %c0_43 = arith.constant 0 : index
    %c0_44 = arith.constant 0 : index
    %47 = vector.load %arg8[%c1_42, %c0_43, %c0_44] : memref<4x1x8xf32, #tpu.memory_space<vmem>>, vector<1x1x8xf32>
    %48 = vector.shape_cast %47 : vector<1x1x8xf32> to vector<1x8xf32>
    %49 = vector.broadcast %48 : vector<1x8xf32> to vector<32x8xf32>
    %50 = arith.addf %46, %49 : vector<32x8xf32>
    %51 = vector.shape_cast %36 : vector<32x8xf32> to vector<2x16x8xf32>
    %52 = vector.shape_cast %43 : vector<32x8xf32> to vector<2x16x8xf32>
    %53 = vector.shape_cast %50 : vector<32x8xf32> to vector<2x16x8xf32>
    %c2 = arith.constant 2 : index
    %c0_45 = arith.constant 0 : index
    %c0_46 = arith.constant 0 : index
    %54 = vector.load %arg2[%c2, %c0_45, %c0_46] : memref<4x32x8xbf16, #tpu.memory_space<vmem>>, vector<1x32x8xbf16>
    %55 = vector.shape_cast %54 : vector<1x32x8xbf16> to vector<32x8xbf16>
    %cst_47 = arith.constant dense<0.000000e+00> : vector<32x8xf32>
    %56 = tpu.matmul %4, %55, %cst_47 {dimension_numbers = #tpu.dot_dimension_numbers<[1], [0], [0], [1], [0, 0, 1, 1], [], []>} : vector<32x32xbf16>, vector<32x8xbf16>, vector<32x8xf32> -> vector<32x8xf32>
    %c2_48 = arith.constant 2 : index
    %c0_49 = arith.constant 0 : index
    %c0_50 = arith.constant 0 : index
    %57 = vector.load %arg6[%c2_48, %c0_49, %c0_50] : memref<4x1x8xf32, #tpu.memory_space<vmem>>, vector<1x1x8xf32>
    %58 = vector.shape_cast %57 : vector<1x1x8xf32> to vector<1x8xf32>
    %59 = vector.broadcast %58 : vector<1x8xf32> to vector<32x8xf32>
    %60 = arith.addf %56, %59 : vector<32x8xf32>
    %c2_51 = arith.constant 2 : index
    %c0_52 = arith.constant 0 : index
    %c0_53 = arith.constant 0 : index
    %61 = vector.load %arg3[%c2_51, %c0_52, %c0_53] : memref<4x32x8xbf16, #tpu.memory_space<vmem>>, vector<1x32x8xbf16>
    %62 = vector.shape_cast %61 : vector<1x32x8xbf16> to vector<32x8xbf16>
    %cst_54 = arith.constant dense<0.000000e+00> : vector<32x8xf32>
    %63 = tpu.matmul %5, %62, %cst_54 {dimension_numbers = #tpu.dot_dimension_numbers<[1], [0], [0], [1], [0, 0, 1, 1], [], []>} : vector<32x32xbf16>, vector<32x8xbf16>, vector<32x8xf32> -> vector<32x8xf32>
    %c2_55 = arith.constant 2 : index
    %c0_56 = arith.constant 0 : index
    %c0_57 = arith.constant 0 : index
    %64 = vector.load %arg7[%c2_55, %c0_56, %c0_57] : memref<4x1x8xf32, #tpu.memory_space<vmem>>, vector<1x1x8xf32>
    %65 = vector.shape_cast %64 : vector<1x1x8xf32> to vector<1x8xf32>
    %66 = vector.broadcast %65 : vector<1x8xf32> to vector<32x8xf32>
    %67 = arith.addf %63, %66 : vector<32x8xf32>
    %c2_58 = arith.constant 2 : index
    %c0_59 = arith.constant 0 : index
    %c0_60 = arith.constant 0 : index
    %68 = vector.load %arg4[%c2_58, %c0_59, %c0_60] : memref<4x32x8xbf16, #tpu.memory_space<vmem>>, vector<1x32x8xbf16>
    %69 = vector.shape_cast %68 : vector<1x32x8xbf16> to vector<32x8xbf16>
    %cst_61 = arith.constant dense<0.000000e+00> : vector<32x8xf32>
    %70 = tpu.matmul %5, %69, %cst_61 {dimension_numbers = #tpu.dot_dimension_numbers<[1], [0], [0], [1], [0, 0, 1, 1], [], []>} : vector<32x32xbf16>, vector<32x8xbf16>, vector<32x8xf32> -> vector<32x8xf32>
    %c2_62 = arith.constant 2 : index
    %c0_63 = arith.constant 0 : index
    %c0_64 = arith.constant 0 : index
    %71 = vector.load %arg8[%c2_62, %c0_63, %c0_64] : memref<4x1x8xf32, #tpu.memory_space<vmem>>, vector<1x1x8xf32>
    %72 = vector.shape_cast %71 : vector<1x1x8xf32> to vector<1x8xf32>
    %73 = vector.broadcast %72 : vector<1x8xf32> to vector<32x8xf32>
    %74 = arith.addf %70, %73 : vector<32x8xf32>
    %75 = vector.shape_cast %60 : vector<32x8xf32> to vector<2x16x8xf32>
    %76 = vector.shape_cast %67 : vector<32x8xf32> to vector<2x16x8xf32>
    %77 = vector.shape_cast %74 : vector<32x8xf32> to vector<2x16x8xf32>
    %c3 = arith.constant 3 : index
    %c0_65 = arith.constant 0 : index
    %c0_66 = arith.constant 0 : index
    %78 = vector.load %arg2[%c3, %c0_65, %c0_66] : memref<4x32x8xbf16, #tpu.memory_space<vmem>>, vector<1x32x8xbf16>
    %79 = vector.shape_cast %78 : vector<1x32x8xbf16> to vector<32x8xbf16>
    %cst_67 = arith.constant dense<0.000000e+00> : vector<32x8xf32>
    %80 = tpu.matmul %4, %79, %cst_67 {dimension_numbers = #tpu.dot_dimension_numbers<[1], [0], [0], [1], [0, 0, 1, 1], [], []>} : vector<32x32xbf16>, vector<32x8xbf16>, vector<32x8xf32> -> vector<32x8xf32>
    %c3_68 = arith.constant 3 : index
    %c0_69 = arith.constant 0 : index
    %c0_70 = arith.constant 0 : index
    %81 = vector.load %arg6[%c3_68, %c0_69, %c0_70] : memref<4x1x8xf32, #tpu.memory_space<vmem>>, vector<1x1x8xf32>
    %82 = vector.shape_cast %81 : vector<1x1x8xf32> to vector<1x8xf32>
    %83 = vector.broadcast %82 : vector<1x8xf32> to vector<32x8xf32>
    %84 = arith.addf %80, %83 : vector<32x8xf32>
    %c3_71 = arith.constant 3 : index
    %c0_72 = arith.constant 0 : index
    %c0_73 = arith.constant 0 : index
    %85 = vector.load %arg3[%c3_71, %c0_72, %c0_73] : memref<4x32x8xbf16, #tpu.memory_space<vmem>>, vector<1x32x8xbf16>
    %86 = vector.shape_cast %85 : vector<1x32x8xbf16> to vector<32x8xbf16>
    %cst_74 = arith.constant dense<0.000000e+00> : vector<32x8xf32>
    %87 = tpu.matmul %5, %86, %cst_74 {dimension_numbers = #tpu.dot_dimension_numbers<[1], [0], [0], [1], [0, 0, 1, 1], [], []>} : vector<32x32xbf16>, vector<32x8xbf16>, vector<32x8xf32> -> vector<32x8xf32>
    %c3_75 = arith.constant 3 : index
    %c0_76 = arith.constant 0 : index
    %c0_77 = arith.constant 0 : index
    %88 = vector.load %arg7[%c3_75, %c0_76, %c0_77] : memref<4x1x8xf32, #tpu.memory_space<vmem>>, vector<1x1x8xf32>
    %89 = vector.shape_cast %88 : vector<1x1x8xf32> to vector<1x8xf32>
    %90 = vector.broadcast %89 : vector<1x8xf32> to vector<32x8xf32>
    %91 = arith.addf %87, %90 : vector<32x8xf32>
    %c3_78 = arith.constant 3 : index
    %c0_79 = arith.constant 0 : index
    %c0_80 = arith.constant 0 : index
    %92 = vector.load %arg4[%c3_78, %c0_79, %c0_80] : memref<4x32x8xbf16, #tpu.memory_space<vmem>>, vector<1x32x8xbf16>
    %93 = vector.shape_cast %92 : vector<1x32x8xbf16> to vector<32x8xbf16>
    %cst_81 = arith.constant dense<0.000000e+00> : vector<32x8xf32>
    %94 = tpu.matmul %5, %93, %cst_81 {dimension_numbers = #tpu.dot_dimension_numbers<[1], [0], [0], [1], [0, 0, 1, 1], [], []>} : vector<32x32xbf16>, vector<32x8xbf16>, vector<32x8xf32> -> vector<32x8xf32>
    %c3_82 = arith.constant 3 : index
    %c0_83 = arith.constant 0 : index
    %c0_84 = arith.constant 0 : index
    %95 = vector.load %arg8[%c3_82, %c0_83, %c0_84] : memref<4x1x8xf32, #tpu.memory_space<vmem>>, vector<1x1x8xf32>
    %96 = vector.shape_cast %95 : vector<1x1x8xf32> to vector<1x8xf32>
    %97 = vector.broadcast %96 : vector<1x8xf32> to vector<32x8xf32>
    %98 = arith.addf %94, %97 : vector<32x8xf32>
    %99 = vector.shape_cast %84 : vector<32x8xf32> to vector<2x16x8xf32>
    %100 = vector.shape_cast %91 : vector<32x8xf32> to vector<2x16x8xf32>
    %101 = vector.shape_cast %98 : vector<32x8xf32> to vector<2x16x8xf32>
    %102 = tpu.concatenate %27, %51, %75, %99 in 0 : vector<2x16x8xf32>, vector<2x16x8xf32>, vector<2x16x8xf32>, vector<2x16x8xf32> -> vector<8x16x8xf32>
    %103 = arith.truncf %102 : vector<8x16x8xf32> to vector<8x16x8xbf16>
    %104 = tpu.concatenate %28, %52, %76, %100 in 0 : vector<2x16x8xf32>, vector<2x16x8xf32>, vector<2x16x8xf32>, vector<2x16x8xf32> -> vector<8x16x8xf32>
    %105 = arith.truncf %104 : vector<8x16x8xf32> to vector<8x16x8xbf16>
    %106 = tpu.concatenate %29, %53, %77, %101 in 0 : vector<2x16x8xf32>, vector<2x16x8xf32>, vector<2x16x8xf32>, vector<2x16x8xf32> -> vector<8x16x8xf32>
    %107 = arith.truncf %106 : vector<8x16x8xf32> to vector<8x16x8xbf16>
    "tpu.trace_start"() <{level = 10 : i32, message = "nqd,nkd->nqk"}> : () -> ()
    %cst_85 = arith.constant dense<0.000000e+00> : vector<8x16x16xf32>
    %108 = tpu.matmul %103, %105, %cst_85 {dimension_numbers = #tpu.dot_dimension_numbers<[2], [2], [1], [1], [0, 0, 0, 1, 1, 1], [0], [0]>} : vector<8x16x8xbf16>, vector<8x16x8xbf16>, vector<8x16x16xf32> -> vector<8x16x16xf32>
    "tpu.trace_stop"() : () -> ()
    %cst_86 = arith.constant dense<0xFF800000> : vector<8x16xf32>
    %109 = vector.multi_reduction <maximumf>, %108, %cst_86 [2] : vector<8x16x16xf32> to vector<8x16xf32>
    %110 = vector.shape_cast %109 : vector<8x16xf32> to vector<8x16x1xf32>
    %111 = vector.broadcast %110 : vector<8x16x1xf32> to vector<8x16x16xf32>
    %112 = arith.subf %108, %111 : vector<8x16x16xf32>
    %113 = math.exp %112 : vector<8x16x16xf32>
    %cst_87 = arith.constant dense<0.000000e+00> : vector<8x16xf32>
    %114 = vector.multi_reduction <add>, %113, %cst_87 [2] : vector<8x16x16xf32> to vector<8x16xf32>
    %115 = vector.shape_cast %114 : vector<8x16xf32> to vector<8x16x1xf32>
    %116 = tpu.reciprocal %115 {approx = true} : vector<8x16x1xf32> -> vector<8x16x1xf32>
    %117 = vector.broadcast %116 : vector<8x16x1xf32> to vector<8x16x16xf32>
    %118 = arith.mulf %113, %117 : vector<8x16x16xf32>
    %119 = arith.truncf %118 : vector<8x16x16xf32> to vector<8x16x16xbf16>
    "tpu.trace_start"() <{level = 10 : i32, message = "nqk,nkd->nqd"}> : () -> ()
    %cst_88 = arith.constant dense<0.000000e+00> : vector<8x16x8xf32>
    %120 = tpu.matmul %119, %107, %cst_88 {dimension_numbers = #tpu.dot_dimension_numbers<[2], [1], [1], [2], [0, 0, 0, 1, 1, 2], [0], [0]>} : vector<8x16x16xbf16>, vector<8x16x8xbf16>, vector<8x16x8xf32> -> vector<8x16x8xf32>
    "tpu.trace_stop"() : () -> ()
    %121 = vector.extract_strided_slice %120 {offsets = [0, 0, 0], sizes = [2, 16, 8], strides = [1, 1, 1]} : vector<8x16x8xf32> to vector<2x16x8xf32>
    %122 = vector.shape_cast %121 : vector<2x16x8xf32> to vector<32x8xf32>
    %123 = arith.truncf %122 : vector<32x8xf32> to vector<32x8xbf16>
    %c0_89 = arith.constant 0 : index
    %c0_90 = arith.constant 0 : index
    %c0_91 = arith.constant 0 : index
    %124 = vector.load %arg5[%c0_89, %c0_90, %c0_91] : memref<4x8x32xbf16, #tpu.memory_space<vmem>>, vector<1x8x32xbf16>
    %125 = vector.shape_cast %124 : vector<1x8x32xbf16> to vector<8x32xbf16>
    %cst_92 = arith.constant dense<0.000000e+00> : vector<32x32xf32>
    %126 = tpu.matmul %123, %125, %cst_92 {dimension_numbers = #tpu.dot_dimension_numbers<[1], [0], [0], [1], [0, 0, 1, 1], [], []>} : vector<32x8xbf16>, vector<8x32xbf16>, vector<32x32xf32> -> vector<32x32xf32>
    %127 = vector.extract_strided_slice %120 {offsets = [2, 0, 0], sizes = [2, 16, 8], strides = [1, 1, 1]} : vector<8x16x8xf32> to vector<2x16x8xf32>
    %128 = vector.shape_cast %127 : vector<2x16x8xf32> to vector<32x8xf32>
    %129 = arith.truncf %128 : vector<32x8xf32> to vector<32x8xbf16>
    %c1_93 = arith.constant 1 : index
    %c0_94 = arith.constant 0 : index
    %c0_95 = arith.constant 0 : index
    %130 = vector.load %arg5[%c1_93, %c0_94, %c0_95] : memref<4x8x32xbf16, #tpu.memory_space<vmem>>, vector<1x8x32xbf16>
    %131 = vector.shape_cast %130 : vector<1x8x32xbf16> to vector<8x32xbf16>
    %cst_96 = arith.constant dense<0.000000e+00> : vector<32x32xf32>
    %132 = tpu.matmul %129, %131, %cst_96 {dimension_numbers = #tpu.dot_dimension_numbers<[1], [0], [0], [1], [0, 0, 1, 1], [], []>} : vector<32x8xbf16>, vector<8x32xbf16>, vector<32x32xf32> -> vector<32x32xf32>
    %133 = arith.addf %126, %132 : vector<32x32xf32>
    %134 = vector.extract_strided_slice %120 {offsets = [4, 0, 0], sizes = [2, 16, 8], strides = [1, 1, 1]} : vector<8x16x8xf32> to vector<2x16x8xf32>
    %135 = vector.shape_cast %134 : vector<2x16x8xf32> to vector<32x8xf32>
    %136 = arith.truncf %135 : vector<32x8xf32> to vector<32x8xbf16>
    %c2_97 = arith.constant 2 : index
    %c0_98 = arith.constant 0 : index
    %c0_99 = arith.constant 0 : index
    %137 = vector.load %arg5[%c2_97, %c0_98, %c0_99] : memref<4x8x32xbf16, #tpu.memory_space<vmem>>, vector<1x8x32xbf16>
    %138 = vector.shape_cast %137 : vector<1x8x32xbf16> to vector<8x32xbf16>
    %cst_100 = arith.constant dense<0.000000e+00> : vector<32x32xf32>
    %139 = tpu.matmul %136, %138, %cst_100 {dimension_numbers = #tpu.dot_dimension_numbers<[1], [0], [0], [1], [0, 0, 1, 1], [], []>} : vector<32x8xbf16>, vector<8x32xbf16>, vector<32x32xf32> -> vector<32x32xf32>
    %140 = arith.addf %133, %139 : vector<32x32xf32>
    %141 = vector.extract_strided_slice %120 {offsets = [6, 0, 0], sizes = [2, 16, 8], strides = [1, 1, 1]} : vector<8x16x8xf32> to vector<2x16x8xf32>
    %142 = vector.shape_cast %141 : vector<2x16x8xf32> to vector<32x8xf32>
    %143 = arith.truncf %142 : vector<32x8xf32> to vector<32x8xbf16>
    %c3_101 = arith.constant 3 : index
    %c0_102 = arith.constant 0 : index
    %c0_103 = arith.constant 0 : index
    %144 = vector.load %arg5[%c3_101, %c0_102, %c0_103] : memref<4x8x32xbf16, #tpu.memory_space<vmem>>, vector<1x8x32xbf16>
    %145 = vector.shape_cast %144 : vector<1x8x32xbf16> to vector<8x32xbf16>
    %cst_104 = arith.constant dense<0.000000e+00> : vector<32x32xf32>
    %146 = tpu.matmul %143, %145, %cst_104 {dimension_numbers = #tpu.dot_dimension_numbers<[1], [0], [0], [1], [0, 0, 1, 1], [], []>} : vector<32x8xbf16>, vector<8x32xbf16>, vector<32x32xf32> -> vector<32x32xf32>
    %147 = arith.addf %140, %146 : vector<32x32xf32>
    %c0_105 = arith.constant 0 : index
    %c0_106 = arith.constant 0 : index
    %148 = vector.load %arg9[%c0_105, %c0_106] : memref<1x32xf32, #tpu.memory_space<vmem>>, vector<1x32xf32>
    %149 = vector.broadcast %148 : vector<1x32xf32> to vector<32x32xf32>
    %150 = arith.addf %147, %149 : vector<32x32xf32>
    %151 = arith.addf %1, %150 : vector<32x32xf32>
    %c0_107 = arith.constant 0 : index
    %c0_108 = arith.constant 0 : index
    %152 = vector.load %arg18[%c0_107, %c0_108] : memref<1x32xf32, #tpu.memory_space<vmem>>, vector<1x32xf32>
    %c0_109 = arith.constant 0 : index
    %c0_110 = arith.constant 0 : index
    %153 = vector.load %arg19[%c0_109, %c0_110] : memref<1x32xf32, #tpu.memory_space<vmem>>, vector<1x32xf32>
    %cst_111 = arith.constant dense<0.000000e+00> : vector<32xf32>
    %154 = vector.multi_reduction <add>, %151, %cst_111 [1] : vector<32x32xf32> to vector<32xf32>
    %155 = vector.shape_cast %154 : vector<32xf32> to vector<32x1xf32>
    %cst_112 = arith.constant 3.200000e+01 : f32
    %156 = vector.broadcast %cst_112 : f32 to vector<32x1xf32>
    %157 = arith.divf %155, %156 : vector<32x1xf32>
    %158 = vector.broadcast %157 : vector<32x1xf32> to vector<32x32xf32>
    %159 = arith.subf %151, %158 : vector<32x32xf32>
    %160 = arith.mulf %159, %159 : vector<32x32xf32>
    %cst_113 = arith.constant dense<0.000000e+00> : vector<32xf32>
    %161 = vector.multi_reduction <add>, %160, %cst_113 [1] : vector<32x32xf32> to vector<32xf32>
    %162 = vector.shape_cast %161 : vector<32xf32> to vector<32x1xf32>
    %cst_114 = arith.constant 3.200000e+01 : f32
    %163 = vector.broadcast %cst_114 : f32 to vector<32x1xf32>
    %164 = arith.divf %162, %163 : vector<32x1xf32>
    %cst_115 = arith.constant 9.99999974E-6 : f32
    %165 = vector.broadcast %cst_115 : f32 to vector<32x1xf32>
    %166 = arith.addf %164, %165 : vector<32x1xf32>
    %167 = math.rsqrt %166 : vector<32x1xf32>
    %168 = vector.broadcast %167 : vector<32x1xf32> to vector<32x32xf32>
    %169 = arith.mulf %159, %168 : vector<32x32xf32>
    %170 = vector.broadcast %152 : vector<1x32xf32> to vector<32x32xf32>
    %171 = arith.mulf %169, %170 : vector<32x32xf32>
    %172 = vector.broadcast %153 : vector<1x32xf32> to vector<32x32xf32>
    %173 = arith.addf %171, %172 : vector<32x32xf32>
    %174 = arith.truncf %3 : vector<32x32xf32> to vector<32x32xbf16>
    %175 = arith.truncf %3 : vector<32x32xf32> to vector<32x32xbf16>
    %c0_116 = arith.constant 0 : index
    %c0_117 = arith.constant 0 : index
    %c0_118 = arith.constant 0 : index
    %176 = vector.load %arg10[%c0_116, %c0_117, %c0_118] : memref<4x32x8xbf16, #tpu.memory_space<vmem>>, vector<1x32x8xbf16>
    %177 = vector.shape_cast %176 : vector<1x32x8xbf16> to vector<32x8xbf16>
    %cst_119 = arith.constant dense<0.000000e+00> : vector<32x8xf32>
    %178 = tpu.matmul %174, %177, %cst_119 {dimension_numbers = #tpu.dot_dimension_numbers<[1], [0], [0], [1], [0, 0, 1, 1], [], []>} : vector<32x32xbf16>, vector<32x8xbf16>, vector<32x8xf32> -> vector<32x8xf32>
    %c0_120 = arith.constant 0 : index
    %c0_121 = arith.constant 0 : index
    %c0_122 = arith.constant 0 : index
    %179 = vector.load %arg14[%c0_120, %c0_121, %c0_122] : memref<4x1x8xf32, #tpu.memory_space<vmem>>, vector<1x1x8xf32>
    %180 = vector.shape_cast %179 : vector<1x1x8xf32> to vector<1x8xf32>
    %181 = vector.broadcast %180 : vector<1x8xf32> to vector<32x8xf32>
    %182 = arith.addf %178, %181 : vector<32x8xf32>
    %c0_123 = arith.constant 0 : index
    %c0_124 = arith.constant 0 : index
    %c0_125 = arith.constant 0 : index
    %183 = vector.load %arg11[%c0_123, %c0_124, %c0_125] : memref<4x32x8xbf16, #tpu.memory_space<vmem>>, vector<1x32x8xbf16>
    %184 = vector.shape_cast %183 : vector<1x32x8xbf16> to vector<32x8xbf16>
    %cst_126 = arith.constant dense<0.000000e+00> : vector<32x8xf32>
    %185 = tpu.matmul %175, %184, %cst_126 {dimension_numbers = #tpu.dot_dimension_numbers<[1], [0], [0], [1], [0, 0, 1, 1], [], []>} : vector<32x32xbf16>, vector<32x8xbf16>, vector<32x8xf32> -> vector<32x8xf32>
    %c0_127 = arith.constant 0 : index
    %c0_128 = arith.constant 0 : index
    %c0_129 = arith.constant 0 : index
    %186 = vector.load %arg15[%c0_127, %c0_128, %c0_129] : memref<4x1x8xf32, #tpu.memory_space<vmem>>, vector<1x1x8xf32>
    %187 = vector.shape_cast %186 : vector<1x1x8xf32> to vector<1x8xf32>
    %188 = vector.broadcast %187 : vector<1x8xf32> to vector<32x8xf32>
    %189 = arith.addf %185, %188 : vector<32x8xf32>
    %c0_130 = arith.constant 0 : index
    %c0_131 = arith.constant 0 : index
    %c0_132 = arith.constant 0 : index
    %190 = vector.load %arg12[%c0_130, %c0_131, %c0_132] : memref<4x32x8xbf16, #tpu.memory_space<vmem>>, vector<1x32x8xbf16>
    %191 = vector.shape_cast %190 : vector<1x32x8xbf16> to vector<32x8xbf16>
    %cst_133 = arith.constant dense<0.000000e+00> : vector<32x8xf32>
    %192 = tpu.matmul %175, %191, %cst_133 {dimension_numbers = #tpu.dot_dimension_numbers<[1], [0], [0], [1], [0, 0, 1, 1], [], []>} : vector<32x32xbf16>, vector<32x8xbf16>, vector<32x8xf32> -> vector<32x8xf32>
    %c0_134 = arith.constant 0 : index
    %c0_135 = arith.constant 0 : index
    %c0_136 = arith.constant 0 : index
    %193 = vector.load %arg16[%c0_134, %c0_135, %c0_136] : memref<4x1x8xf32, #tpu.memory_space<vmem>>, vector<1x1x8xf32>
    %194 = vector.shape_cast %193 : vector<1x1x8xf32> to vector<1x8xf32>
    %195 = vector.broadcast %194 : vector<1x8xf32> to vector<32x8xf32>
    %196 = arith.addf %192, %195 : vector<32x8xf32>
    %197 = vector.shape_cast %182 : vector<32x8xf32> to vector<2x16x8xf32>
    %198 = vector.shape_cast %189 : vector<32x8xf32> to vector<2x16x8xf32>
    %199 = vector.shape_cast %196 : vector<32x8xf32> to vector<2x16x8xf32>
    %c1_137 = arith.constant 1 : index
    %c0_138 = arith.constant 0 : index
    %c0_139 = arith.constant 0 : index
    %200 = vector.load %arg10[%c1_137, %c0_138, %c0_139] : memref<4x32x8xbf16, #tpu.memory_space<vmem>>, vector<1x32x8xbf16>
    %201 = vector.shape_cast %200 : vector<1x32x8xbf16> to vector<32x8xbf16>
    %cst_140 = arith.constant dense<0.000000e+00> : vector<32x8xf32>
    %202 = tpu.matmul %174, %201, %cst_140 {dimension_numbers = #tpu.dot_dimension_numbers<[1], [0], [0], [1], [0, 0, 1, 1], [], []>} : vector<32x32xbf16>, vector<32x8xbf16>, vector<32x8xf32> -> vector<32x8xf32>
    %c1_141 = arith.constant 1 : index
    %c0_142 = arith.constant 0 : index
    %c0_143 = arith.constant 0 : index
    %203 = vector.load %arg14[%c1_141, %c0_142, %c0_143] : memref<4x1x8xf32, #tpu.memory_space<vmem>>, vector<1x1x8xf32>
    %204 = vector.shape_cast %203 : vector<1x1x8xf32> to vector<1x8xf32>
    %205 = vector.broadcast %204 : vector<1x8xf32> to vector<32x8xf32>
    %206 = arith.addf %202, %205 : vector<32x8xf32>
    %c1_144 = arith.constant 1 : index
    %c0_145 = arith.constant 0 : index
    %c0_146 = arith.constant 0 : index
    %207 = vector.load %arg11[%c1_144, %c0_145, %c0_146] : memref<4x32x8xbf16, #tpu.memory_space<vmem>>, vector<1x32x8xbf16>
    %208 = vector.shape_cast %207 : vector<1x32x8xbf16> to vector<32x8xbf16>
    %cst_147 = arith.constant dense<0.000000e+00> : vector<32x8xf32>
    %209 = tpu.matmul %175, %208, %cst_147 {dimension_numbers = #tpu.dot_dimension_numbers<[1], [0], [0], [1], [0, 0, 1, 1], [], []>} : vector<32x32xbf16>, vector<32x8xbf16>, vector<32x8xf32> -> vector<32x8xf32>
    %c1_148 = arith.constant 1 : index
    %c0_149 = arith.constant 0 : index
    %c0_150 = arith.constant 0 : index
    %210 = vector.load %arg15[%c1_148, %c0_149, %c0_150] : memref<4x1x8xf32, #tpu.memory_space<vmem>>, vector<1x1x8xf32>
    %211 = vector.shape_cast %210 : vector<1x1x8xf32> to vector<1x8xf32>
    %212 = vector.broadcast %211 : vector<1x8xf32> to vector<32x8xf32>
    %213 = arith.addf %209, %212 : vector<32x8xf32>
    %c1_151 = arith.constant 1 : index
    %c0_152 = arith.constant 0 : index
    %c0_153 = arith.constant 0 : index
    %214 = vector.load %arg12[%c1_151, %c0_152, %c0_153] : memref<4x32x8xbf16, #tpu.memory_space<vmem>>, vector<1x32x8xbf16>
    %215 = vector.shape_cast %214 : vector<1x32x8xbf16> to vector<32x8xbf16>
    %cst_154 = arith.constant dense<0.000000e+00> : vector<32x8xf32>
    %216 = tpu.matmul %175, %215, %cst_154 {dimension_numbers = #tpu.dot_dimension_numbers<[1], [0], [0], [1], [0, 0, 1, 1], [], []>} : vector<32x32xbf16>, vector<32x8xbf16>, vector<32x8xf32> -> vector<32x8xf32>
    %c1_155 = arith.constant 1 : index
    %c0_156 = arith.constant 0 : index
    %c0_157 = arith.constant 0 : index
    %217 = vector.load %arg16[%c1_155, %c0_156, %c0_157] : memref<4x1x8xf32, #tpu.memory_space<vmem>>, vector<1x1x8xf32>
    %218 = vector.shape_cast %217 : vector<1x1x8xf32> to vector<1x8xf32>
    %219 = vector.broadcast %218 : vector<1x8xf32> to vector<32x8xf32>
    %220 = arith.addf %216, %219 : vector<32x8xf32>
    %221 = vector.shape_cast %206 : vector<32x8xf32> to vector<2x16x8xf32>
    %222 = vector.shape_cast %213 : vector<32x8xf32> to vector<2x16x8xf32>
    %223 = vector.shape_cast %220 : vector<32x8xf32> to vector<2x16x8xf32>
    %c2_158 = arith.constant 2 : index
    %c0_159 = arith.constant 0 : index
    %c0_160 = arith.constant 0 : index
    %224 = vector.load %arg10[%c2_158, %c0_159, %c0_160] : memref<4x32x8xbf16, #tpu.memory_space<vmem>>, vector<1x32x8xbf16>
    %225 = vector.shape_cast %224 : vector<1x32x8xbf16> to vector<32x8xbf16>
    %cst_161 = arith.constant dense<0.000000e+00> : vector<32x8xf32>
    %226 = tpu.matmul %174, %225, %cst_161 {dimension_numbers = #tpu.dot_dimension_numbers<[1], [0], [0], [1], [0, 0, 1, 1], [], []>} : vector<32x32xbf16>, vector<32x8xbf16>, vector<32x8xf32> -> vector<32x8xf32>
    %c2_162 = arith.constant 2 : index
    %c0_163 = arith.constant 0 : index
    %c0_164 = arith.constant 0 : index
    %227 = vector.load %arg14[%c2_162, %c0_163, %c0_164] : memref<4x1x8xf32, #tpu.memory_space<vmem>>, vector<1x1x8xf32>
    %228 = vector.shape_cast %227 : vector<1x1x8xf32> to vector<1x8xf32>
    %229 = vector.broadcast %228 : vector<1x8xf32> to vector<32x8xf32>
    %230 = arith.addf %226, %229 : vector<32x8xf32>
    %c2_165 = arith.constant 2 : index
    %c0_166 = arith.constant 0 : index
    %c0_167 = arith.constant 0 : index
    %231 = vector.load %arg11[%c2_165, %c0_166, %c0_167] : memref<4x32x8xbf16, #tpu.memory_space<vmem>>, vector<1x32x8xbf16>
    %232 = vector.shape_cast %231 : vector<1x32x8xbf16> to vector<32x8xbf16>
    %cst_168 = arith.constant dense<0.000000e+00> : vector<32x8xf32>
    %233 = tpu.matmul %175, %232, %cst_168 {dimension_numbers = #tpu.dot_dimension_numbers<[1], [0], [0], [1], [0, 0, 1, 1], [], []>} : vector<32x32xbf16>, vector<32x8xbf16>, vector<32x8xf32> -> vector<32x8xf32>
    %c2_169 = arith.constant 2 : index
    %c0_170 = arith.constant 0 : index
    %c0_171 = arith.constant 0 : index
    %234 = vector.load %arg15[%c2_169, %c0_170, %c0_171] : memref<4x1x8xf32, #tpu.memory_space<vmem>>, vector<1x1x8xf32>
    %235 = vector.shape_cast %234 : vector<1x1x8xf32> to vector<1x8xf32>
    %236 = vector.broadcast %235 : vector<1x8xf32> to vector<32x8xf32>
    %237 = arith.addf %233, %236 : vector<32x8xf32>
    %c2_172 = arith.constant 2 : index
    %c0_173 = arith.constant 0 : index
    %c0_174 = arith.constant 0 : index
    %238 = vector.load %arg12[%c2_172, %c0_173, %c0_174] : memref<4x32x8xbf16, #tpu.memory_space<vmem>>, vector<1x32x8xbf16>
    %239 = vector.shape_cast %238 : vector<1x32x8xbf16> to vector<32x8xbf16>
    %cst_175 = arith.constant dense<0.000000e+00> : vector<32x8xf32>
    %240 = tpu.matmul %175, %239, %cst_175 {dimension_numbers = #tpu.dot_dimension_numbers<[1], [0], [0], [1], [0, 0, 1, 1], [], []>} : vector<32x32xbf16>, vector<32x8xbf16>, vector<32x8xf32> -> vector<32x8xf32>
    %c2_176 = arith.constant 2 : index
    %c0_177 = arith.constant 0 : index
    %c0_178 = arith.constant 0 : index
    %241 = vector.load %arg16[%c2_176, %c0_177, %c0_178] : memref<4x1x8xf32, #tpu.memory_space<vmem>>, vector<1x1x8xf32>
    %242 = vector.shape_cast %241 : vector<1x1x8xf32> to vector<1x8xf32>
    %243 = vector.broadcast %242 : vector<1x8xf32> to vector<32x8xf32>
    %244 = arith.addf %240, %243 : vector<32x8xf32>
    %245 = vector.shape_cast %230 : vector<32x8xf32> to vector<2x16x8xf32>
    %246 = vector.shape_cast %237 : vector<32x8xf32> to vector<2x16x8xf32>
    %247 = vector.shape_cast %244 : vector<32x8xf32> to vector<2x16x8xf32>
    %c3_179 = arith.constant 3 : index
    %c0_180 = arith.constant 0 : index
    %c0_181 = arith.constant 0 : index
    %248 = vector.load %arg10[%c3_179, %c0_180, %c0_181] : memref<4x32x8xbf16, #tpu.memory_space<vmem>>, vector<1x32x8xbf16>
    %249 = vector.shape_cast %248 : vector<1x32x8xbf16> to vector<32x8xbf16>
    %cst_182 = arith.constant dense<0.000000e+00> : vector<32x8xf32>
    %250 = tpu.matmul %174, %249, %cst_182 {dimension_numbers = #tpu.dot_dimension_numbers<[1], [0], [0], [1], [0, 0, 1, 1], [], []>} : vector<32x32xbf16>, vector<32x8xbf16>, vector<32x8xf32> -> vector<32x8xf32>
    %c3_183 = arith.constant 3 : index
    %c0_184 = arith.constant 0 : index
    %c0_185 = arith.constant 0 : index
    %251 = vector.load %arg14[%c3_183, %c0_184, %c0_185] : memref<4x1x8xf32, #tpu.memory_space<vmem>>, vector<1x1x8xf32>
    %252 = vector.shape_cast %251 : vector<1x1x8xf32> to vector<1x8xf32>
    %253 = vector.broadcast %252 : vector<1x8xf32> to vector<32x8xf32>
    %254 = arith.addf %250, %253 : vector<32x8xf32>
    %c3_186 = arith.constant 3 : index
    %c0_187 = arith.constant 0 : index
    %c0_188 = arith.constant 0 : index
    %255 = vector.load %arg11[%c3_186, %c0_187, %c0_188] : memref<4x32x8xbf16, #tpu.memory_space<vmem>>, vector<1x32x8xbf16>
    %256 = vector.shape_cast %255 : vector<1x32x8xbf16> to vector<32x8xbf16>
    %cst_189 = arith.constant dense<0.000000e+00> : vector<32x8xf32>
    %257 = tpu.matmul %175, %256, %cst_189 {dimension_numbers = #tpu.dot_dimension_numbers<[1], [0], [0], [1], [0, 0, 1, 1], [], []>} : vector<32x32xbf16>, vector<32x8xbf16>, vector<32x8xf32> -> vector<32x8xf32>
    %c3_190 = arith.constant 3 : index
    %c0_191 = arith.constant 0 : index
    %c0_192 = arith.constant 0 : index
    %258 = vector.load %arg15[%c3_190, %c0_191, %c0_192] : memref<4x1x8xf32, #tpu.memory_space<vmem>>, vector<1x1x8xf32>
    %259 = vector.shape_cast %258 : vector<1x1x8xf32> to vector<1x8xf32>
    %260 = vector.broadcast %259 : vector<1x8xf32> to vector<32x8xf32>
    %261 = arith.addf %257, %260 : vector<32x8xf32>
    %c3_193 = arith.constant 3 : index
    %c0_194 = arith.constant 0 : index
    %c0_195 = arith.constant 0 : index
    %262 = vector.load %arg12[%c3_193, %c0_194, %c0_195] : memref<4x32x8xbf16, #tpu.memory_space<vmem>>, vector<1x32x8xbf16>
    %263 = vector.shape_cast %262 : vector<1x32x8xbf16> to vector<32x8xbf16>
    %cst_196 = arith.constant dense<0.000000e+00> : vector<32x8xf32>
    %264 = tpu.matmul %175, %263, %cst_196 {dimension_numbers = #tpu.dot_dimension_numbers<[1], [0], [0], [1], [0, 0, 1, 1], [], []>} : vector<32x32xbf16>, vector<32x8xbf16>, vector<32x8xf32> -> vector<32x8xf32>
    %c3_197 = arith.constant 3 : index
    %c0_198 = arith.constant 0 : index
    %c0_199 = arith.constant 0 : index
    %265 = vector.load %arg16[%c3_197, %c0_198, %c0_199] : memref<4x1x8xf32, #tpu.memory_space<vmem>>, vector<1x1x8xf32>
    %266 = vector.shape_cast %265 : vector<1x1x8xf32> to vector<1x8xf32>
    %267 = vector.broadcast %266 : vector<1x8xf32> to vector<32x8xf32>
    %268 = arith.addf %264, %267 : vector<32x8xf32>
    %269 = vector.shape_cast %254 : vector<32x8xf32> to vector<2x16x8xf32>
    %270 = vector.shape_cast %261 : vector<32x8xf32> to vector<2x16x8xf32>
    %271 = vector.shape_cast %268 : vector<32x8xf32> to vector<2x16x8xf32>
    %272 = tpu.concatenate %197, %221, %245, %269 in 0 : vector<2x16x8xf32>, vector<2x16x8xf32>, vector<2x16x8xf32>, vector<2x16x8xf32> -> vector<8x16x8xf32>
    %273 = arith.truncf %272 : vector<8x16x8xf32> to vector<8x16x8xbf16>
    %274 = tpu.concatenate %198, %222, %246, %270 in 0 : vector<2x16x8xf32>, vector<2x16x8xf32>, vector<2x16x8xf32>, vector<2x16x8xf32> -> vector<8x16x8xf32>
    %275 = arith.truncf %274 : vector<8x16x8xf32> to vector<8x16x8xbf16>
    %276 = tpu.concatenate %199, %223, %247, %271 in 0 : vector<2x16x8xf32>, vector<2x16x8xf32>, vector<2x16x8xf32>, vector<2x16x8xf32> -> vector<8x16x8xf32>
    %277 = arith.truncf %276 : vector<8x16x8xf32> to vector<8x16x8xbf16>
    "tpu.trace_start"() <{level = 10 : i32, message = "nqd,nkd->nqk"}> : () -> ()
    %cst_200 = arith.constant dense<0.000000e+00> : vector<8x16x16xf32>
    %278 = tpu.matmul %273, %275, %cst_200 {dimension_numbers = #tpu.dot_dimension_numbers<[2], [2], [1], [1], [0, 0, 0, 1, 1, 1], [0], [0]>} : vector<8x16x8xbf16>, vector<8x16x8xbf16>, vector<8x16x16xf32> -> vector<8x16x16xf32>
    "tpu.trace_stop"() : () -> ()
    %cst_201 = arith.constant dense<0xFF800000> : vector<8x16xf32>
    %279 = vector.multi_reduction <maximumf>, %278, %cst_201 [2] : vector<8x16x16xf32> to vector<8x16xf32>
    %280 = vector.shape_cast %279 : vector<8x16xf32> to vector<8x16x1xf32>
    %281 = vector.broadcast %280 : vector<8x16x1xf32> to vector<8x16x16xf32>
    %282 = arith.subf %278, %281 : vector<8x16x16xf32>
    %283 = math.exp %282 : vector<8x16x16xf32>
    %cst_202 = arith.constant dense<0.000000e+00> : vector<8x16xf32>
    %284 = vector.multi_reduction <add>, %283, %cst_202 [2] : vector<8x16x16xf32> to vector<8x16xf32>
    %285 = vector.shape_cast %284 : vector<8x16xf32> to vector<8x16x1xf32>
    %286 = tpu.reciprocal %285 {approx = true} : vector<8x16x1xf32> -> vector<8x16x1xf32>
    %287 = vector.broadcast %286 : vector<8x16x1xf32> to vector<8x16x16xf32>
    %288 = arith.mulf %283, %287 : vector<8x16x16xf32>
    %289 = arith.truncf %288 : vector<8x16x16xf32> to vector<8x16x16xbf16>
    "tpu.trace_start"() <{level = 10 : i32, message = "nqk,nkd->nqd"}> : () -> ()
    %cst_203 = arith.constant dense<0.000000e+00> : vector<8x16x8xf32>
    %290 = tpu.matmul %289, %277, %cst_203 {dimension_numbers = #tpu.dot_dimension_numbers<[2], [1], [1], [2], [0, 0, 0, 1, 1, 2], [0], [0]>} : vector<8x16x16xbf16>, vector<8x16x8xbf16>, vector<8x16x8xf32> -> vector<8x16x8xf32>
    "tpu.trace_stop"() : () -> ()
    %291 = vector.extract_strided_slice %290 {offsets = [0, 0, 0], sizes = [2, 16, 8], strides = [1, 1, 1]} : vector<8x16x8xf32> to vector<2x16x8xf32>
    %292 = vector.shape_cast %291 : vector<2x16x8xf32> to vector<32x8xf32>
    %293 = arith.truncf %292 : vector<32x8xf32> to vector<32x8xbf16>
    %c0_204 = arith.constant 0 : index
    %c0_205 = arith.constant 0 : index
    %c0_206 = arith.constant 0 : index
    %294 = vector.load %arg13[%c0_204, %c0_205, %c0_206] : memref<4x8x32xbf16, #tpu.memory_space<vmem>>, vector<1x8x32xbf16>
    %295 = vector.shape_cast %294 : vector<1x8x32xbf16> to vector<8x32xbf16>
    %cst_207 = arith.constant dense<0.000000e+00> : vector<32x32xf32>
    %296 = tpu.matmul %293, %295, %cst_207 {dimension_numbers = #tpu.dot_dimension_numbers<[1], [0], [0], [1], [0, 0, 1, 1], [], []>} : vector<32x8xbf16>, vector<8x32xbf16>, vector<32x32xf32> -> vector<32x32xf32>
    %297 = vector.extract_strided_slice %290 {offsets = [2, 0, 0], sizes = [2, 16, 8], strides = [1, 1, 1]} : vector<8x16x8xf32> to vector<2x16x8xf32>
    %298 = vector.shape_cast %297 : vector<2x16x8xf32> to vector<32x8xf32>
    %299 = arith.truncf %298 : vector<32x8xf32> to vector<32x8xbf16>
    %c1_208 = arith.constant 1 : index
    %c0_209 = arith.constant 0 : index
    %c0_210 = arith.constant 0 : index
    %300 = vector.load %arg13[%c1_208, %c0_209, %c0_210] : memref<4x8x32xbf16, #tpu.memory_space<vmem>>, vector<1x8x32xbf16>
    %301 = vector.shape_cast %300 : vector<1x8x32xbf16> to vector<8x32xbf16>
    %cst_211 = arith.constant dense<0.000000e+00> : vector<32x32xf32>
    %302 = tpu.matmul %299, %301, %cst_211 {dimension_numbers = #tpu.dot_dimension_numbers<[1], [0], [0], [1], [0, 0, 1, 1], [], []>} : vector<32x8xbf16>, vector<8x32xbf16>, vector<32x32xf32> -> vector<32x32xf32>
    %303 = arith.addf %296, %302 : vector<32x32xf32>
    %304 = vector.extract_strided_slice %290 {offsets = [4, 0, 0], sizes = [2, 16, 8], strides = [1, 1, 1]} : vector<8x16x8xf32> to vector<2x16x8xf32>
    %305 = vector.shape_cast %304 : vector<2x16x8xf32> to vector<32x8xf32>
    %306 = arith.truncf %305 : vector<32x8xf32> to vector<32x8xbf16>
    %c2_212 = arith.constant 2 : index
    %c0_213 = arith.constant 0 : index
    %c0_214 = arith.constant 0 : index
    %307 = vector.load %arg13[%c2_212, %c0_213, %c0_214] : memref<4x8x32xbf16, #tpu.memory_space<vmem>>, vector<1x8x32xbf16>
    %308 = vector.shape_cast %307 : vector<1x8x32xbf16> to vector<8x32xbf16>
    %cst_215 = arith.constant dense<0.000000e+00> : vector<32x32xf32>
    %309 = tpu.matmul %306, %308, %cst_215 {dimension_numbers = #tpu.dot_dimension_numbers<[1], [0], [0], [1], [0, 0, 1, 1], [], []>} : vector<32x8xbf16>, vector<8x32xbf16>, vector<32x32xf32> -> vector<32x32xf32>
    %310 = arith.addf %303, %309 : vector<32x32xf32>
    %311 = vector.extract_strided_slice %290 {offsets = [6, 0, 0], sizes = [2, 16, 8], strides = [1, 1, 1]} : vector<8x16x8xf32> to vector<2x16x8xf32>
    %312 = vector.shape_cast %311 : vector<2x16x8xf32> to vector<32x8xf32>
    %313 = arith.truncf %312 : vector<32x8xf32> to vector<32x8xbf16>
    %c3_216 = arith.constant 3 : index
    %c0_217 = arith.constant 0 : index
    %c0_218 = arith.constant 0 : index
    %314 = vector.load %arg13[%c3_216, %c0_217, %c0_218] : memref<4x8x32xbf16, #tpu.memory_space<vmem>>, vector<1x8x32xbf16>
    %315 = vector.shape_cast %314 : vector<1x8x32xbf16> to vector<8x32xbf16>
    %cst_219 = arith.constant dense<0.000000e+00> : vector<32x32xf32>
    %316 = tpu.matmul %313, %315, %cst_219 {dimension_numbers = #tpu.dot_dimension_numbers<[1], [0], [0], [1], [0, 0, 1, 1], [], []>} : vector<32x8xbf16>, vector<8x32xbf16>, vector<32x32xf32> -> vector<32x32xf32>
    %317 = arith.addf %310, %316 : vector<32x32xf32>
    %c0_220 = arith.constant 0 : index
    %c0_221 = arith.constant 0 : index
    %318 = vector.load %arg17[%c0_220, %c0_221] : memref<1x32xf32, #tpu.memory_space<vmem>>, vector<1x32xf32>
    %319 = vector.broadcast %318 : vector<1x32xf32> to vector<32x32xf32>
    %320 = arith.addf %317, %319 : vector<32x32xf32>
    %321 = arith.addf %3, %320 : vector<32x32xf32>
    %c0_222 = arith.constant 0 : index
    %c0_223 = arith.constant 0 : index
    %322 = vector.load %arg20[%c0_222, %c0_223] : memref<1x32xf32, #tpu.memory_space<vmem>>, vector<1x32xf32>
    %c0_224 = arith.constant 0 : index
    %c0_225 = arith.constant 0 : index
    %323 = vector.load %arg21[%c0_224, %c0_225] : memref<1x32xf32, #tpu.memory_space<vmem>>, vector<1x32xf32>
    %cst_226 = arith.constant dense<0.000000e+00> : vector<32xf32>
    %324 = vector.multi_reduction <add>, %321, %cst_226 [1] : vector<32x32xf32> to vector<32xf32>
    %325 = vector.shape_cast %324 : vector<32xf32> to vector<32x1xf32>
    %cst_227 = arith.constant 3.200000e+01 : f32
    %326 = vector.broadcast %cst_227 : f32 to vector<32x1xf32>
    %327 = arith.divf %325, %326 : vector<32x1xf32>
    %328 = vector.broadcast %327 : vector<32x1xf32> to vector<32x32xf32>
    %329 = arith.subf %321, %328 : vector<32x32xf32>
    %330 = arith.mulf %329, %329 : vector<32x32xf32>
    %cst_228 = arith.constant dense<0.000000e+00> : vector<32xf32>
    %331 = vector.multi_reduction <add>, %330, %cst_228 [1] : vector<32x32xf32> to vector<32xf32>
    %332 = vector.shape_cast %331 : vector<32xf32> to vector<32x1xf32>
    %cst_229 = arith.constant 3.200000e+01 : f32
    %333 = vector.broadcast %cst_229 : f32 to vector<32x1xf32>
    %334 = arith.divf %332, %333 : vector<32x1xf32>
    %cst_230 = arith.constant 9.99999974E-6 : f32
    %335 = vector.broadcast %cst_230 : f32 to vector<32x1xf32>
    %336 = arith.addf %334, %335 : vector<32x1xf32>
    %337 = math.rsqrt %336 : vector<32x1xf32>
    %338 = vector.broadcast %337 : vector<32x1xf32> to vector<32x32xf32>
    %339 = arith.mulf %329, %338 : vector<32x32xf32>
    %340 = vector.broadcast %322 : vector<1x32xf32> to vector<32x32xf32>
    %341 = arith.mulf %339, %340 : vector<32x32xf32>
    %342 = vector.broadcast %323 : vector<1x32xf32> to vector<32x32xf32>
    %343 = arith.addf %341, %342 : vector<32x32xf32>
    %c0_231 = arith.constant 0 : index
    %c0_232 = arith.constant 0 : index
    %344 = vector.load %arg25[%c0_231, %c0_232] : memref<2x32xf32, #tpu.memory_space<vmem>>, vector<2x32xf32>
    %cst_233 = arith.constant dense<0.000000e+00> : vector<2x32xf32>
    %345 = tpu.matmul %344, %173, %cst_233 {dimension_numbers = #tpu.dot_dimension_numbers<[1], [0], [0], [1], [0, 0, 1, 1], [], []>} : vector<2x32xf32>, vector<32x32xf32>, vector<2x32xf32> -> vector<2x32xf32>
    %346 = arith.truncf %345 : vector<2x32xf32> to vector<2x32xbf16>
    %c0_234 = arith.constant 0 : index
    %c0_235 = arith.constant 0 : index
    %347 = vector.load %arg22[%c0_234, %c0_235] : memref<32x4xbf16, #tpu.memory_space<vmem>>, vector<32x4xbf16>
    %cst_236 = arith.constant dense<0.000000e+00> : vector<2x4xf32>
    %348 = tpu.matmul %346, %347, %cst_236 {dimension_numbers = #tpu.dot_dimension_numbers<[1], [0], [0], [1], [0, 0, 1, 1], [], []>} : vector<2x32xbf16>, vector<32x4xbf16>, vector<2x4xf32> -> vector<2x4xf32>
    %cst_237 = arith.constant 0.000000e+00 : f32
    %349 = vector.broadcast %cst_237 : f32 to vector<2x4xf32>
    %350 = arith.maximumf %348, %349 : vector<2x4xf32>
    %351 = arith.truncf %350 : vector<2x4xf32> to vector<2x4xbf16>
    %c0_238 = arith.constant 0 : index
    %c0_239 = arith.constant 0 : index
    %352 = vector.load %arg23[%c0_238, %c0_239] : memref<4x32xbf16, #tpu.memory_space<vmem>>, vector<4x32xbf16>
    %cst_240 = arith.constant dense<0.000000e+00> : vector<2x32xf32>
    %353 = tpu.matmul %351, %352, %cst_240 {dimension_numbers = #tpu.dot_dimension_numbers<[1], [0], [0], [1], [0, 0, 1, 1], [], []>} : vector<2x4xbf16>, vector<4x32xbf16>, vector<2x32xf32> -> vector<2x32xf32>
    %c0_241 = arith.constant 0 : index
    %354 = memref.load %arg24[%c0_241] : memref<1xf32, #tpu.memory_space<smem>>
    %355 = vector.broadcast %354 : f32 to vector<2x32xf32>
    %356 = arith.mulf %355, %353 : vector<2x32xf32>
    %cst_242 = arith.constant 1.000000e+00 : f32
    %357 = vector.broadcast %cst_242 : f32 to vector<2x32xf32>
    %358 = arith.addf %357, %356 : vector<2x32xf32>
    %c0_243 = arith.constant 0 : index
    %c0_244 = arith.constant 0 : index
    %359 = vector.load %arg26[%c0_243, %c0_244] : memref<32x2xf32, #tpu.memory_space<vmem>>, vector<32x2xf32>
    %cst_245 = arith.constant dense<0.000000e+00> : vector<32x32xf32>
    %360 = tpu.matmul %359, %358, %cst_245 {dimension_numbers = #tpu.dot_dimension_numbers<[1], [0], [0], [1], [0, 0, 1, 1], [], []>} : vector<32x2xf32>, vector<2x32xf32>, vector<32x32xf32> -> vector<32x32xf32>
    %361 = arith.mulf %343, %360 : vector<32x32xf32>
    %362 = arith.truncf %361 : vector<32x32xf32> to vector<32x32xbf16>
    %c0_246 = arith.constant 0 : index
    %c0_247 = arith.constant 0 : index
    %363 = vector.load %arg27[%c0_246, %c0_247] : memref<32x64xbf16, #tpu.memory_space<vmem>>, vector<32x64xbf16>
    %cst_248 = arith.constant dense<0.000000e+00> : vector<32x64xf32>
    %364 = tpu.matmul %362, %363, %cst_248 {dimension_numbers = #tpu.dot_dimension_numbers<[1], [0], [0], [1], [0, 0, 1, 1], [], []>} : vector<32x32xbf16>, vector<32x64xbf16>, vector<32x64xf32> -> vector<32x64xf32>
    %c0_249 = arith.constant 0 : index
    %c0_250 = arith.constant 0 : index
    %365 = vector.load %arg28[%c0_249, %c0_250] : memref<1x64xf32, #tpu.memory_space<vmem>>, vector<1x64xf32>
    %366 = vector.broadcast %365 : vector<1x64xf32> to vector<32x64xf32>
    %367 = arith.addf %364, %366 : vector<32x64xf32>
    %cst_251 = arith.constant 0.000000e+00 : f32
    %368 = vector.broadcast %cst_251 : f32 to vector<32x64xf32>
    %369 = arith.maximumf %367, %368 : vector<32x64xf32>
    %370 = arith.truncf %369 : vector<32x64xf32> to vector<32x64xbf16>
    %c0_252 = arith.constant 0 : index
    %c0_253 = arith.constant 0 : index
    %371 = vector.load %arg29[%c0_252, %c0_253] : memref<64x32xbf16, #tpu.memory_space<vmem>>, vector<64x32xbf16>
    %cst_254 = arith.constant dense<0.000000e+00> : vector<32x32xf32>
    %372 = tpu.matmul %370, %371, %cst_254 {dimension_numbers = #tpu.dot_dimension_numbers<[1], [0], [0], [1], [0, 0, 1, 1], [], []>} : vector<32x64xbf16>, vector<64x32xbf16>, vector<32x32xf32> -> vector<32x32xf32>
    %c0_255 = arith.constant 0 : index
    %c0_256 = arith.constant 0 : index
    %373 = vector.load %arg30[%c0_255, %c0_256] : memref<1x32xf32, #tpu.memory_space<vmem>>, vector<1x32xf32>
    %374 = vector.broadcast %373 : vector<1x32xf32> to vector<32x32xf32>
    %375 = arith.addf %372, %374 : vector<32x32xf32>
    %376 = arith.addf %361, %375 : vector<32x32xf32>
    %c0_257 = arith.constant 0 : index
    %c0_258 = arith.constant 0 : index
    %377 = vector.load %arg31[%c0_257, %c0_258] : memref<1x32xf32, #tpu.memory_space<vmem>>, vector<1x32xf32>
    %c0_259 = arith.constant 0 : index
    %c0_260 = arith.constant 0 : index
    %378 = vector.load %arg32[%c0_259, %c0_260] : memref<1x32xf32, #tpu.memory_space<vmem>>, vector<1x32xf32>
    %cst_261 = arith.constant dense<0.000000e+00> : vector<32xf32>
    %379 = vector.multi_reduction <add>, %376, %cst_261 [1] : vector<32x32xf32> to vector<32xf32>
    %380 = vector.shape_cast %379 : vector<32xf32> to vector<32x1xf32>
    %cst_262 = arith.constant 3.200000e+01 : f32
    %381 = vector.broadcast %cst_262 : f32 to vector<32x1xf32>
    %382 = arith.divf %380, %381 : vector<32x1xf32>
    %383 = vector.broadcast %382 : vector<32x1xf32> to vector<32x32xf32>
    %384 = arith.subf %376, %383 : vector<32x32xf32>
    %385 = arith.mulf %384, %384 : vector<32x32xf32>
    %cst_263 = arith.constant dense<0.000000e+00> : vector<32xf32>
    %386 = vector.multi_reduction <add>, %385, %cst_263 [1] : vector<32x32xf32> to vector<32xf32>
    %387 = vector.shape_cast %386 : vector<32xf32> to vector<32x1xf32>
    %cst_264 = arith.constant 3.200000e+01 : f32
    %388 = vector.broadcast %cst_264 : f32 to vector<32x1xf32>
    %389 = arith.divf %387, %388 : vector<32x1xf32>
    %cst_265 = arith.constant 9.99999974E-6 : f32
    %390 = vector.broadcast %cst_265 : f32 to vector<32x1xf32>
    %391 = arith.addf %389, %390 : vector<32x1xf32>
    %392 = math.rsqrt %391 : vector<32x1xf32>
    %393 = vector.broadcast %392 : vector<32x1xf32> to vector<32x32xf32>
    %394 = arith.mulf %384, %393 : vector<32x32xf32>
    %395 = vector.broadcast %377 : vector<1x32xf32> to vector<32x32xf32>
    %396 = arith.mulf %394, %395 : vector<32x32xf32>
    %397 = vector.broadcast %378 : vector<1x32xf32> to vector<32x32xf32>
    %398 = arith.addf %396, %397 : vector<32x32xf32>
    %399 = vector.shape_cast %398 : vector<32x32xf32> to vector<2x16x32xf32>
    %c0_266 = arith.constant 0 : index
    %c0_267 = arith.constant 0 : index
    %c0_268 = arith.constant 0 : index
    %400 = vector.load %arg33[%c0_266, %c0_267, %c0_268] : memref<2x16x32xf32, #tpu.memory_space<vmem>>, vector<2x16x32xf32>
    tpu.vector_store %arg33[%c0_266, %c0_267, %c0_268], %399 {strides = array<i32>} : memref<2x16x32xf32, #tpu.memory_space<vmem>>, vector<2x16x32xf32>,
    return
  }
}

</mosaic_0001>

<bundles_post_ra>
// kernel: eq.18
= control target key start
LH: loop header
LB: loop body
LE: loop exit
PB: predicated region body
PF: predicated region fallthrough
CT: control target
= control target key end

     0   :  { %vm8_vm0 = vcmask 130048   ;;  %vm14_vm1 = vcmask 261248   ;;  %s42_s0 = inlined_call_operand.vmem [shape: s32[2,16], index: 0, kind: input, shape index: {}]   ;;  %s43_s1 = inlined_call_operand.vmem [shape: s32[32], index: 1, kind: output, shape index: {}]  }
   0x1   :  { %v5_v0 = vld [vmem:[%s42_s0] sm:$0x3]  ;;  %s25_s0 = smov 16  }
   0x2   :  { %6 = vst [vmem:[#allocation1] sm:$0x3] %v5_v0 }
   0x9   :  { %v11_v1 = vld [vmem:[#allocation1 + $0x1] sm:$0x1]   ;;  %v7_v2 = vld [vmem:[#allocation1] sm:$0x1]  }
   0xa   :  { %12 = vrot.lane.b32.xlu0 %v11_v1, %s25_s0  ;;  %9 = vst.msk [vmem:[#allocation0] sm:$0x1] %vm8_vm0, %v7_v2  }
  0x7c   :  { %v13_v3 = vpop.permute.xlu0 %12  }
  0x7d   :  { %15 = vst.msk [vmem:[#allocation0] sm:$0x1] %vm14_vm1, %v13_v3  }
  0x84   :  { %v20_v4 = vld [vmem:[#allocation0] sm:$0x1] }
  0x85   :  { %23 = vst [vmem:[%s43_s1] sm:$0x1] %v20_v4 }

// kernel: transformer_encoder_layer.1
= control target key start
LH: loop header
LB: loop body
LE: loop exit
PB: predicated region body
PF: predicated region fallthrough
CT: control target
= control target key end

     0   :  { %s6338_s3 = smov 2   ;;  %s6339_s10 = smov 3   ;;  %vm175_vm0 = vcmask 261120   ;;  %v6342_v36 = vmov 0.0   ;;  %vm6343_vm1 = vmmov 0   ;;  %vm1071_vm2 = vcmask 64512   ;;  %s7467_s0 = inlined_call_operand.smem [shape: u32[34], index: -1, kind: input, shape index: {}] }
   0x1   :  { %s6381_s6 = sld [smem:[%s7467_s0 + %s6338_s3]]   ;;  %s6340_s14 = smov 1   ;;  %vm1448_vm3 = vcmask 130048   ;;  %vm1998_vm4 = vcmask 1043456   ;;  %vm4634_vm5 = vcmask 1041408   ;;  %vm4630_vm6 = vcmask 31744  }
   0x2   :  { %s6386_s9 = sld [smem:[%s7467_s0]]   ;;  %s6341_s18 = smov 4   ;;  %vm4686_vm7 = vcmask 15360   ;;  %vm4916_vm8 = vcmask 523264  }
   0x3   :  { %s6391_s13 = sld [smem:[%s7467_s0 + %s6339_s10]]   ;;  %s6344_s22 = smov 7  }
   0x4   :  { %s6396_s17 = sld [smem:[%s7467_s0 + %s6340_s14]]   ;;  %s6345_s26 = smov 6  }
   0x5   :  { %s6402_s21 = sld [smem:[%s7467_s0 + %s6341_s18]]   ;;  %s6346_s30 = smov 8  }
   0x6   :  { %s6500_s25 = sld [smem:[%s7467_s0 + %s6344_s22]]   ;;  %s6347_s4 = smov 5  }
   0x7   :  { %v6122_v0 = vld [vmem:[%s6381_s6 + $0x8] sm:$0xff]   ;;  %v6123_v1 = vld [vmem:[%s6381_s6] sm:$0xff]   ;;  %v6127_v13 = vld [vmem:[%s6381_s6 + $0x18] sm:$0xff]   ;;  %s6505_s29 = sld [smem:[%s7467_s0 + %s6345_s26]]   ;;  %s6348_s8 = smov 10  }
   0x8   :  { %5594 = vmatprep.subr.bf16.mxu0 %v6122_v0  ;;  %v140_v2 = vld [vmem:[%s6386_s9] sm:$0xff]  ;;  %v141_v3 = vld [vmem:[%s6386_s9 + $0x8] sm:$0xff]  ;;  %v142_v4 = vld [vmem:[%s6386_s9 + $0x10] sm:$0xff]  ;;  %5618 = vmatprep.subr.bf16.mxu1 %v6127_v13  ;;  %s6513_s3 = sld [smem:[%s7467_s0 + %s6346_s30]]   ;;  %s6350_s18 = smov 12  }
   0x9   :  { %5595 = vmatpush3.bf16.msra.mxu0 %v6122_v0  ;;  %v6408_v5 = vpack.c.bf16 %v141_v3, %v140_v2  ;;  %v143_v6 = vld [vmem:[%s6386_s9 + $0x18] sm:$0xff]  ;;  %v6124_v7 = vld [vmem:[%s6391_s13 + $0x8] sm:$0xff]   ;;  %v6125_v11 = vld [vmem:[%s6391_s13] sm:$0xff]   ;;  %5619 = vmatpush3.bf16.msra.mxu1 %v6127_v13  ;;  %s5062_s7 = sld [smem:[%s7467_s0 + %s6347_s4]]   ;;  %s6351_s22 = smov 15  }
   0xa   :  { %5596 = vmatprep.subr.bf16.mxu0 %v6123_v1  ;;  %v144_v8 = vld [vmem:[%s6396_s17] sm:$0xff]  ;;  %v145_v9 = vld [vmem:[%s6396_s17 + $0x8] sm:$0xff]  ;;  %v6418_v10 = vpack.c.bf16 %v143_v6, %v142_v4  ;;  %v146_v14 = vld [vmem:[%s6396_s17 + $0x10] sm:$0xff]  ;;  %s6845_s12 = sld [smem:[%s7467_s0 + %s6348_s8]]   ;;  %s6352_s26 = smov 14  }
   0xb   :  { %5598 = vmatprep.mubr.msk.bf16.mxu0 %vm175_vm0, %v6408_v5  ;;  %5622 = vmatprep.mubr.msk.bf16.mxu1 %vm175_vm0, %v6408_v5  ;;  %v6421_v12 = vpack.c.bf16 %v145_v9, %v144_v8  ;;  %v6129_v15 = vld [vmem:[%s6381_s6 + $0x10] sm:$0xff]   ;;  %v147_v16 = vld [vmem:[%s6396_s17 + $0x18] sm:$0xff]  ;;  %v6126_v17 = vld [vmem:[%s6402_s21 + $0x8] sm:$0xff]   ;;  %s6353_s30 = smov 16   ;;  %s6354_s4 = smov 9  }
   0xc   :  { %5620 = vmatprep.subr.bf16.mxu1 %v6129_v15  ;;  %v6131_v18 = vld [vmem:[%s6402_s21 + $0x18] sm:$0xff]   ;;  %v6433_v19 = vpack.c.bf16 %v147_v16, %v146_v14  ;;  %v6128_v20 = vld [vmem:[%s6402_s21] sm:$0xff]   ;;  %v6133_v21 = vld [vmem:[%s6402_s21 + $0x10] sm:$0xff]   ;;  %s6364_s14 = smov 27   ;;  %s6365_s19 = smov 29  }
   0xd   :  { %5597 = vmatpush3.bf16.msra.mxu0 %v6123_v1  ;;  %5621 = vmatpush3.bf16.msra.mxu1 %v6129_v15  ;;  %v6130_v22 = vld [vmem:[%s6391_s13 + $0x18] sm:$0xff]   ;;  %v6135_v23 = vld [vmem:[%s6391_s13 + $0x28] sm:$0xff]   ;;  %v6132_v24 = vld [vmem:[%s6391_s13 + $0x10] sm:$0xff]   ;;  %s6366_s23 = smov 20   ;;  %s6367_s27 = smov 21  }
   0xe   :  { %5602 = vmatprep.subr.bf16.mxu0 %v6124_v7  ;;  %5634 = vmatprep.subr.bf16.mxu1 %v6131_v18  ;;  %v6137_v25 = vld [vmem:[%s6391_s13 + $0x20] sm:$0xff]   ;;  %v6134_v26 = vld [vmem:[%s6381_s6 + $0x28] sm:$0xff]   ;;  %v6141_v27 = vld [vmem:[%s6381_s6 + $0x38] sm:$0xff]   ;;  %s6368_s1 = smov 28   ;;  %s6369_s5 = smov 30  }
   0xf   :  { %v6136_v28 = vld [vmem:[%s6381_s6 + $0x20] sm:$0xff]   ;;  %v6143_v29 = vld [vmem:[%s6381_s6 + $0x30] sm:$0xff]   ;;  %v6138_v30 = vld [vmem:[%s6402_s21 + $0x28] sm:$0xff]   ;;  %s6370_s8 = smov 31  }
  0x10   :  { %5599 = vmatmul.mubr.msk.bf16.vlgmr.msra.gmra.mxu0 %vm175_vm0, %v6418_v10  ;;  %5623 = vmatmul.mubr.msk.bf16.vlgmr.msra.gmra.mxu1 %vm175_vm0, %v6418_v10  ;;  %v6139_v31 = vld [vmem:[%s6402_s21 + $0x20] sm:$0xff]   ;;  %v6140_v32 = vld [vmem:[%s6391_s13 + $0x38] sm:$0xff]   ;;  %v6142_v33 = vld [vmem:[%s6391_s13 + $0x30] sm:$0xff]   ;;  %s6349_s13 = smov 11  }
  0x11   :  { %5603 = vmatpush3.bf16.msra.mxu0 %v6124_v7  ;;  %5606 = vmatprep.mubr.msk.bf16.mxu0 %vm175_vm0, %v6421_v12  ;;  %v6144_v34 = vld [vmem:[%s6402_s21 + $0x38] sm:$0xff]   ;;  %v6145_v35 = vld [vmem:[%s6402_s21 + $0x30] sm:$0xff]   ;;  %v5096_v42 = vld [vmem:[%s6500_s25] ss:$0 sm:$0xff]  ;;  %s6850_s16 = sld [smem:[%s7467_s0 + %s6349_s13]]  }
  0x12   :  { %5604 = vmatprep.subr.bf16.mxu0 %v6125_v11  ;;  %5635 = vmatpush3.bf16.msra.mxu1 %v6131_v18  ;;  %v5091_v58 = vld [vmem:[%s6505_s29] ss:$0 sm:$0xff]  ;;  %v6526_v61 = vld [vmem:[%s6513_s3 + $0x1] ss:$0 sm:$0xff]  ;;  %s6855_s21 = sld [smem:[%s7467_s0 + %s6350_s18]]  }
  0x13   :  { %5638 = vmatprep.mubr.msk.bf16.mxu1 %vm175_vm0, %v6421_v12  ;;  %5636 = vmatprep.subr.bf16.mxu1 %v6133_v21  ;;  %v5121_v15 = vld [vmem:[%s6500_s25 + $0x1] ss:$0 sm:$0xff]  ;;  %s5084_s18 = sld [smem:[%s7467_s0 + %s6364_s14]]  }
  0x15   :  { %5605 = vmatpush3.bf16.msra.mxu0 %v6125_v11 }
  0x16   :  { %5610 = vmatprep.subr.bf16.mxu0 %v6126_v17  ;;  %5637 = vmatpush3.bf16.msra.mxu1 %v6133_v21 }
  0x17   :  { %5650 = vmatprep.subr.bf16.mxu1 %v6135_v23 }
  0x18   :  { %5607 = vmatmul.mubr.msk.bf16.vlgmr.msra.gmra.mxu0 %vm175_vm0, %v6433_v19 }
  0x19   :  { %5611 = vmatpush3.bf16.msra.mxu0 %v6126_v17  ;;  %5614 = vmatprep.mubr.msk.bf16.mxu0 %vm175_vm0, %v6421_v12 }
  0x1a   :  { %5612 = vmatprep.subr.bf16.mxu0 %v6128_v20  ;;  %5639 = vmatmul.mubr.msk.bf16.vlgmr.msra.gmra.mxu1 %vm175_vm0, %v6433_v19 }
  0x1b   :  { %5651 = vmatpush3.bf16.msra.mxu1 %v6135_v23  ;;  %5654 = vmatprep.mubr.msk.bf16.mxu1 %vm175_vm0, %v6421_v12 }
  0x1c   :  { %5652 = vmatprep.subr.bf16.mxu1 %v6137_v25 }
  0x1d   :  { %5613 = vmatpush3.bf16.msra.mxu0 %v6128_v20  ;;  %v5151_v20 = vld [vmem:[%s6500_s25 + $0x2] ss:$0 sm:$0xff] }
  0x1e   :  { %5626 = vmatprep.subr.bf16.mxu0 %v6130_v22 }
  0x1f   :  { %5653 = vmatpush3.bf16.msra.mxu1 %v6137_v25 }
  0x20   :  { %5615 = vmatmul.mubr.msk.bf16.vlgmr.msra.gmra.mxu0 %vm175_vm0, %v6433_v19  ;;  %5666 = vmatprep.subr.bf16.mxu1 %v6141_v27 }
  0x21   :  { %5627 = vmatpush3.bf16.msra.mxu0 %v6130_v22  ;;  %5630 = vmatprep.mubr.msk.bf16.mxu0 %vm175_vm0, %v6421_v12 }
  0x22   :  { %5628 = vmatprep.subr.bf16.mxu0 %v6132_v24  ;;  %5655 = vmatmul.mubr.msk.bf16.vlgmr.msra.gmra.mxu1 %vm175_vm0, %v6433_v19 }
  0x23   :  { %5667 = vmatpush3.bf16.msra.mxu1 %v6141_v27  ;;  %5670 = vmatprep.mubr.msk.bf16.mxu1 %vm175_vm0, %v6408_v5 }
  0x24   :  { %5668 = vmatprep.subr.bf16.mxu1 %v6143_v29 }
  0x25   :  { %5629 = vmatpush3.bf16.msra.mxu0 %v6132_v24 }
  0x26   :  { %5642 = vmatprep.subr.bf16.mxu0 %v6134_v26 }
  0x27   :  { %5669 = vmatpush3.bf16.msra.mxu1 %v6143_v29 }
  0x28   :  { %5631 = vmatmul.mubr.msk.bf16.vlgmr.msra.gmra.mxu0 %vm175_vm0, %v6433_v19  ;;  %5682 = vmatprep.subr.bf16.mxu1 %v6144_v34 }
  0x29   :  { %5643 = vmatpush3.bf16.msra.mxu0 %v6134_v26  ;;  %5646 = vmatprep.mubr.msk.bf16.mxu0 %vm175_vm0, %v6408_v5 }
  0x2a   :  { %5644 = vmatprep.subr.bf16.mxu0 %v6136_v28  ;;  %5671 = vmatmul.mubr.msk.bf16.vlgmr.msra.gmra.mxu1 %vm175_vm0, %v6418_v10 }
  0x2b   :  { %5686 = vmatprep.mubr.msk.bf16.mxu1 %vm175_vm0, %v6421_v12  ;;  %5683 = vmatpush3.bf16.msra.mxu1 %v6144_v34 }
  0x2c   :  { %5684 = vmatprep.subr.bf16.mxu1 %v6145_v35 }
  0x2d   :  { %5645 = vmatpush3.bf16.msra.mxu0 %v6136_v28 }
  0x2e   :  { %5658 = vmatprep.subr.bf16.mxu0 %v6138_v30 }
  0x2f   :  { %5685 = vmatpush3.bf16.msra.mxu1 %v6145_v35 }
  0x30   :  { %5647 = vmatmul.mubr.msk.bf16.vlgmr.msra.gmra.mxu0 %vm175_vm0, %v6418_v10  ;;  %5696 = vmatprep.subr.bf16.mxu1 %v6342_v36 }
  0x31   :  { %5659 = vmatpush3.bf16.msra.mxu0 %v6138_v30  ;;  %5662 = vmatprep.mubr.msk.bf16.mxu0 %vm175_vm0, %v6421_v12 }
  0x32   :  { %5660 = vmatprep.subr.bf16.mxu0 %v6139_v31  ;;  %5687 = vmatmul.mubr.msk.bf16.vlgmr.msra.gmra.mxu1 %vm175_vm0, %v6433_v19 }
  0x33   :  { %5698 = vmatprep.mubr.msk.bf16.mxu1 %vm6343_vm1, %v6342_v36 }
  0x35   :  { %5661 = vmatpush3.bf16.msra.mxu0 %v6139_v31  ;;  %v5111_v31 = vld [vmem:[%s6505_s29 + $0x1] ss:$0 sm:$0xff] }
  0x36   :  { %5674 = vmatprep.subr.bf16.mxu0 %v6140_v32 }
  0x38   :  { %5663 = vmatmul.mubr.msk.bf16.vlgmr.msra.gmra.mxu0 %vm175_vm0, %v6433_v19 }
  0x39   :  { %5675 = vmatpush3.bf16.msra.mxu0 %v6140_v32  ;;  %5678 = vmatprep.mubr.msk.bf16.mxu0 %vm175_vm0, %v6421_v12 }
  0x3a   :  { %5676 = vmatprep.subr.bf16.mxu0 %v6142_v33 }
  0x3d   :  { %5677 = vmatpush3.bf16.msra.mxu0 %v6142_v33 }
  0x3e   :  { %5690 = vmatprep.subr.bf16.mxu0 %v6342_v36 }
  0x40   :  { %5679 = vmatmul.mubr.msk.bf16.vlgmr.msra.gmra.mxu0 %vm175_vm0, %v6433_v19 }
  0x41   :  { %5692 = vmatprep.mubr.msk.bf16.mxu0 %vm6343_vm1, %v6342_v36 }
  0xd0   :  { %v5600_v37 = vpop.f32.mrf.mxu0  ;;  %v6508_v44 = vpop.f32.mrf.mxu1 }
  0xd1   :  { %v225_v2 = vadd.f32 %v5600_v37, %v5091_v58 }
  0xd2   :  { %v216_v38 = vpop.f32.mrf.mxu0  ;;  %v6515_v46 = vpop.f32.mrf.mxu1 }
  0xd3   :  { %v217_v7 = vadd.f32 %v5091_v58, %v216_v38 }
  0xd4   :  { %v5601_v39 = vpop.f32.mrf.mxu0  ;;  %v5625_v50 = vpop.f32.mrf.mxu1 }
  0xd5   :  { %v228_v62 = vadd.f32 %v5601_v39, %v5091_v58 }
  0xd6   :  { %v219_v40 = vpop.f32.mrf.mxu0  ;;  %v6519_v55 = vpop.f32.mrf.mxu1 }
  0xd7   :  { %v220_v3 = vadd.f32 %v5091_v58, %v219_v40  ;;  %v1048_v8 = vpack.c.bf16 %v228_v62, %v225_v2  ;;  %v449_v40 = vadd.f32 %v6508_v44, %v5111_v31  ;;  %v6568_v58 = vld [vmem:[%s6513_s3 + $0x2] ss:$0 sm:$0xff] }
  0xd8   :  { %v5608_v41 = vpop.f32.mrf.mxu0 }
  0xd9   :  { %v303_v47 = vadd.f32 %v5608_v41, %v5096_v42  ;;  %v1047_v13 = vpack.c.bf16 %v220_v3, %v217_v7  ;;  %v452_v41 = vadd.f32 %v5625_v50, %v5111_v31 }
  0xda   :  { %v294_v43 = vpop.f32.mrf.mxu0  ;;  %v5640_v60 = vpop.f32.mrf.mxu1 }
  0xdb   :  { %v295_v51 = vadd.f32 %v5096_v42, %v294_v43  ;;  %v6535_v4 = vadd.f32 %v5640_v60, %v6526_v61 }
  0xdc   :  { %v5609_v45 = vpop.f32.mrf.mxu0  ;;  %v6532_v1 = vpop.f32.mrf.mxu1 }
  0xdd   :  { %v306_v48 = vadd.f32 %v5609_v45, %v5096_v42 }
  0xde   :  { %v297_v49 = vpop.f32.mrf.mxu0  ;;  %v5641_v6 = vpop.f32.mrf.mxu1 }
  0xdf   :  { %v1056_v52 = vpack.c.bf16 %v306_v48, %v303_v47  ;;  %v298_v53 = vadd.f32 %v5096_v42, %v297_v49  ;;  %v6541_v9 = vadd.f32 %v5641_v6, %v6526_v61  ;;  %v441_v47 = vadd.f32 %v5111_v31, %v6515_v46 }
  0xe0   :  { %v6517_v54 = vpop.f32.mrf.mxu0  ;;  %v6543_v11 = vpop.f32.mrf.mxu1  ;;  %v444_v48 = vadd.f32 %v5111_v31, %v6519_v55 }
  0xe1   :  { %v1055_v56 = vpack.c.bf16 %v298_v53, %v295_v51  ;;  %v1123_v57 = vsel %vm1071_vm2, %v1056_v52, 0  ;;  %v1066_v14 = vpack.c.bf16 %v6541_v9, %v6535_v4  ;;  %v1050_v52 = vpack.c.bf16 %v452_v41, %v449_v40 }
  0xe2   :  { %v6523_v59 = vpop.f32.mrf.mxu0  ;;  %5697 = vmatpush3.bf16.xpose.msra.mxu1 %v1123_v57  ;;  %v5656_v17 = vpop.f32.mrf.mxu1  ;;  %v1049_v53 = vpack.c.bf16 %v444_v48, %v441_v47  ;;  %v5141_v57 = vld [vmem:[%s6505_s29 + $0x2] ss:$0 sm:$0xff] }
  0xe3   :  { %v1076_v63 = vsel %vm1071_vm2, %v1055_v56, 0  ;;  %5708 = vmatprep.subr.bf16.mxu1 %v6342_v36  ;;  %v745_v29 = vadd.f32 %v5656_v17, %v5151_v20  ;;  %v5181_v17 = vld [vmem:[%s6500_s25 + $0x3] ss:$0 sm:$0xff]  ;;  %s6951_s25 = sld [smem:[%s7467_s0 + %s6351_s22]]  }
  0xe4   :  { %v6530_v0 = vpop.f32.mrf.mxu0  ;;  %5691 = vmatpush3.bf16.xpose.msra.mxu0 %v1076_v63  ;;  %v736_v21 = vpop.f32.mrf.mxu1  ;;  %s7422_s22 = sld [smem:[%s7467_s0 + %s6365_s19]]  }
  0xe5   :  { %5702 = vmatprep.subr.bf16.mxu0 %v6342_v36  ;;  %v737_v35 = vadd.f32 %v5151_v20, %v736_v21 }
  0xe6   :  { %v6538_v5 = vpop.f32.mrf.mxu0  ;;  %v5657_v26 = vpop.f32.mrf.mxu1 }
  0xe7   :  { %v748_v30 = vadd.f32 %v5657_v26, %v5151_v20 }
  0xe8   :  { %v5632_v10 = vpop.f32.mrf.mxu0  ;;  %v739_v33 = vpop.f32.mrf.mxu1 }
  0xe9   :  { %5699 = vmatmul.mubr.msk.bf16.vlgmr.msra.gmra.mxu1 %vm1071_vm2, %v1048_v8  ;;  %v523_v22 = vadd.f32 %v5632_v10, %v5121_v15  ;;  %v740_v39 = vadd.f32 %v5151_v20, %v739_v33  ;;  %v1060_v42 = vpack.c.bf16 %v748_v30, %v745_v29  ;;  %v5171_v29 = vld [vmem:[%s6505_s29 + $0x3] ss:$0 sm:$0xff]  ;;  %v5101_v33 = vld [vmem:[%s6513_s3] ss:$0 sm:$0xff]  ;;  %s6968_s29 = sld [smem:[%s7467_s0 + %s6352_s26]]  }
  0xea   :  { %v514_v16 = vpop.f32.mrf.mxu0  ;;  %5710 = vmatprep.mubr.msk.bf16.mxu1 %vm6343_vm1, %v6342_v36  ;;  %v5672_v7 = vpop.f32.mrf.mxu1  ;;  %v375_v41 = vadd.f32 %v6517_v54, %v5101_v33  ;;  %s5077_s26 = sld [smem:[%s7467_s0 + %s6366_s23]]  }
  0xeb   :  { %5693 = vmatmul.mubr.msk.bf16.vlgmr.msra.gmra.mxu0 %vm1071_vm2, %v1047_v13  ;;  %v515_v24 = vadd.f32 %v5121_v15, %v514_v16  ;;  %v1059_v49 = vpack.c.bf16 %v740_v39, %v737_v35  ;;  %v1311_v44 = vsel %vm1071_vm2, %v1060_v42, 0  ;;  %v370_v42 = vadd.f32 %v5101_v33, %v6538_v5 }
  0xec   :  { %v5633_v18 = vpop.f32.mrf.mxu0  ;;  %5704 = vmatprep.mubr.msk.bf16.mxu0 %vm6343_vm1, %v6342_v36  ;;  %v884_v20 = vpop.f32.mrf.mxu1 }
  0xed   :  { %v526_v23 = vadd.f32 %v5633_v18, %v5121_v15  ;;  %v1264_v56 = vsel %vm1071_vm2, %v1059_v49, 0  ;;  %v885_v39 = vadd.f32 %v5171_v29, %v884_v20 }
  0xee   :  { %v517_v25 = vpop.f32.mrf.mxu0 }
  0xef   :  { %v1058_v27 = vpack.c.bf16 %v526_v23, %v523_v22  ;;  %v518_v28 = vadd.f32 %v5121_v15, %v517_v25 }
  0xf0   :  { %v5648_v32 = vpop.f32.mrf.mxu0 }
  0xf1   :  { %v1057_v34 = vpack.c.bf16 %v518_v28, %v515_v24  ;;  %v1217_v37 = vsel %vm1071_vm2, %v1058_v27, 0  ;;  %v671_v62 = vadd.f32 %v5648_v32, %v5141_v57  ;;  %v5673_v24 = vpop.f32.mrf.mxu1 }
  0xf2   :  { %v662_v38 = vpop.f32.mrf.mxu0  ;;  %5709 = vmatpush3.bf16.xpose.msra.mxu1 %v1217_v37  ;;  %v896_v35 = vadd.f32 %v5673_v24, %v5171_v29 }
  0xf3   :  { %v1170_v43 = vsel %vm1071_vm2, %v1057_v34, 0  ;;  %5720 = vmatprep.subr.bf16.mxu1 %v6342_v36  ;;  %v663_v8 = vadd.f32 %v5141_v57, %v662_v38  ;;  %v887_v32 = vpop.f32.mrf.mxu1  ;;  %v893_v34 = vadd.f32 %v5672_v7, %v5171_v29  ;;  %v378_v38 = vadd.f32 %v6530_v0, %v5101_v33 }
  0xf4   :  { %v5649_v45 = vpop.f32.mrf.mxu0  ;;  %5703 = vmatpush3.bf16.xpose.msra.mxu0 %v1170_v43  ;;  %v888_v40 = vadd.f32 %v5171_v29, %v887_v32 }
  0xf5   :  { %5714 = vmatprep.subr.bf16.mxu0 %v6342_v36  ;;  %v674_v46 = vadd.f32 %v5649_v45, %v5141_v57  ;;  %v1054_v43 = vpack.c.bf16 %v896_v35, %v893_v34  ;;  %v367_v45 = vadd.f32 %v5101_v33, %v6523_v59  ;;  %v1064_v47 = vpack.c.bf16 %v378_v38, %v375_v41  ;;  %v5688_v54 = vpop.f32.mrf.mxu1  ;;  %v6615_v59 = vld [vmem:[%s6513_s3 + $0x3] ss:$0 sm:$0xff]  ;;  %s6983_s3 = sld [smem:[%s7467_s0 + %s6353_s30]]  }
  0xf6   :  { %v665_v51 = vpop.f32.mrf.mxu0  ;;  %v1053_v48 = vpack.c.bf16 %v888_v40, %v885_v39  ;;  %v6620_v5 = vadd.f32 %v5688_v54, %v6615_v59  ;;  %s5078_s30 = sld [smem:[%s7467_s0 + %s6367_s27]]  }
  0xf7   :  { %v666_v63 = vadd.f32 %v5141_v57, %v665_v51  ;;  %v1052_v10 = vpack.c.bf16 %v674_v46, %v671_v62  ;;  %v1063_v49 = vpack.c.bf16 %v370_v42, %v367_v45  ;;  %v6617_v0 = vpop.f32.mrf.mxu1 }
  0xf8   :  { %v5664_v50 = vpop.f32.mrf.mxu0 }
  0xf9   :  { %5711 = vmatmul.mubr.msk.bf16.vlgmr.msra.gmra.mxu1 %vm1071_vm2, %v1050_v52  ;;  %v6579_v2 = vadd.f32 %v5664_v50, %v6568_v58  ;;  %v1051_v16 = vpack.c.bf16 %v666_v63, %v663_v8  ;;  %v5689_v51 = vpop.f32.mrf.mxu1 }
  0xfa   :  { %v6570_v60 = vpop.f32.mrf.mxu0  ;;  %5721 = vmatpush3.bf16.xpose.msra.mxu1 %v1311_v44  ;;  %5722 = vmatprep.mubr.msk.bf16.mxu1 %vm6343_vm1, %v6342_v36  ;;  %v6623_v52 = vadd.f32 %v5689_v51, %v6615_v59 }
  0xfb   :  { %5705 = vmatmul.mubr.msk.bf16.vlgmr.msra.gmra.mxu0 %vm1071_vm2, %v1049_v53  ;;  %5732 = vmatprep.subr.bf16.mxu1 %v6342_v36  ;;  %v6627_v50 = vpop.f32.mrf.mxu1 }
  0xfc   :  { %v5665_v55 = vpop.f32.mrf.mxu0  ;;  %5715 = vmatpush3.bf16.xpose.msra.mxu0 %v1264_v56  ;;  %5716 = vmatprep.mubr.msk.bf16.mxu0 %vm6343_vm1, %v6342_v36  ;;  %v1070_v44 = vpack.c.bf16 %v6623_v52, %v6620_v5  ;;  %v1987_v52 = vld [vmem:[%s5062_s7] sm:$0xf] }
  0xfd   :  { %v6582_v3 = vadd.f32 %v5665_v55, %v6568_v58  ;;  %5726 = vmatprep.subr.bf16.mxu0 %v6342_v36 }
  0xfe   :  { %v6585_v6 = vpop.f32.mrf.mxu0 }
  0xff   :  { %v1068_v13 = vpack.c.bf16 %v6582_v3, %v6579_v2 }
 0x100   :  { %v5680_v15 = vpop.f32.mrf.mxu0 }
 0x101   :  { %5723 = vmatmul.mubr.msk.bf16.vlgmr.msra.gmra.mxu1 %vm1071_vm2, %v1052_v10  ;;  %v967_v22 = vadd.f32 %v5680_v15, %v5181_v17 }
 0x102   :  { %v958_v18 = vpop.f32.mrf.mxu0  ;;  %5734 = vmatprep.mubr.msk.bf16.mxu1 %vm6343_vm1, %v6342_v36 }
 0x103   :  { %5717 = vmatmul.mubr.msk.bf16.vlgmr.msra.gmra.mxu0 %vm1071_vm2, %v1051_v16  ;;  %v959_v26 = vadd.f32 %v5181_v17, %v958_v18 }
 0x104   :  { %v5681_v21 = vpop.f32.mrf.mxu0  ;;  %5728 = vmatprep.mubr.msk.bf16.mxu0 %vm6343_vm1, %v6342_v36 }
 0x105   :  { %v970_v23 = vadd.f32 %v5681_v21, %v5181_v17 }
 0x106   :  { %v961_v25 = vpop.f32.mrf.mxu0 }
 0x107   :  { %v1062_v27 = vpack.c.bf16 %v970_v23, %v967_v22  ;;  %v962_v28 = vadd.f32 %v5181_v17, %v961_v25 }
 0x109   :  { %v1061_v30 = vpack.c.bf16 %v962_v28, %v959_v26  ;;  %v1405_v31 = vsel %vm1071_vm2, %v1062_v27, 0 }
 0x10a   :  { %5733 = vmatpush3.bf16.xpose.msra.mxu1 %v1405_v31 }
 0x10b   :  { %v1358_v37 = vsel %vm1071_vm2, %v1061_v30, 0  ;;  %5744 = vmatprep.subr.bf16.mxu1 %v6342_v36 }
 0x10c   :  { %5727 = vmatpush3.bf16.xpose.msra.mxu0 %v1358_v37 }
 0x10d   :  { %5738 = vmatprep.subr.bf16.mxu0 %v6342_v36 }
 0x111   :  { %5735 = vmatmul.mubr.msk.bf16.vlgmr.msra.gmra.mxu1 %vm1071_vm2, %v1054_v43 }
 0x112   :  { %5745 = vmatpush3.bf16.msra.mxu1 %v1064_v47  ;;  %5746 = vmatprep.mubr.msk.bf16.mxu1 %vm6343_vm1, %v6342_v36 }
 0x113   :  { %5729 = vmatmul.mubr.msk.bf16.vlgmr.msra.gmra.mxu0 %vm1071_vm2, %v1053_v48  ;;  %5756 = vmatprep.subr.bf16.mxu1 %v6342_v36 }
 0x114   :  { %5739 = vmatpush3.bf16.msra.mxu0 %v1063_v49  ;;  %5740 = vmatprep.mubr.msk.bf16.mxu0 %vm6343_vm1, %v6342_v36 }
 0x115   :  { %5750 = vmatprep.subr.bf16.mxu0 %v6342_v36 }
 0x1a9   :  { %v6629_v53 = vpop.f32.mrf.mxu1 }
 0x1aa   :  { %v1455_v56 = vsel %vm1448_vm3, %v6629_v53, -inf }
 0x1ab   :  { %1456 = vmax.xlane.f32.xlu1 %v1455_v56  ;;  %v6633_v57 = vpop.f32.mrf.mxu0  ;;  %v5700_v46 = vpop.f32.mrf.mxu1 }
 0x1ac   :  { %v1449_v55 = vsel %vm1448_vm3, %v6633_v57, -inf }
 0x1ad   :  { %v6637_v62 = vpop.f32.mrf.mxu1  ;;  %1450 = vmax.xlane.f32.xlu0 %v1449_v55  ;;  %v5694_v63 = vpop.f32.mrf.mxu0 }
 0x1ae   :  { %v1458_v7 = vsel %vm1448_vm3, %v6637_v62, -inf }
 0x1af   :  { %1459 = vmax.xlane.f32.xlu1 %v1458_v7  ;;  %v6641_v8 = vpop.f32.mrf.mxu0  ;;  %v5701_v10 = vpop.f32.mrf.mxu1 }
 0x1b0   :  { %v1452_v15 = vsel %vm1448_vm3, %v6641_v8, -inf }
 0x1b1   :  { %1453 = vmax.xlane.f32.xlu0 %v1452_v15  ;;  %v5695_v16 = vpop.f32.mrf.mxu0 }
 0x1b9   :  { %v6645_v17 = vpop.f32.mrf.mxu1 }
 0x1ba   :  { %v1467_v26 = vsel %vm1448_vm3, %v6645_v17, -inf }
 0x1bb   :  { %v6647_v18 = vpop.f32.mrf.mxu0  ;;  %v5712_v20 = vpop.f32.mrf.mxu1 }
 0x1bc   :  { %v1461_v21 = vsel %vm1448_vm3, %v6647_v18, -inf }
 0x1bd   :  { %v6651_v22 = vpop.f32.mrf.mxu1  ;;  %1462 = vmax.xlane.f32.xlu0 %v1461_v21  ;;  %v5706_v23 = vpop.f32.mrf.mxu0 }
 0x1be   :  { %v1470_v32 = vsel %vm1448_vm3, %v6651_v22, -inf }
 0x1bf   :  { %v6653_v24 = vpop.f32.mrf.mxu0  ;;  %v5713_v25 = vpop.f32.mrf.mxu1 }
 0x1c0   :  { %v1464_v27 = vsel %vm1448_vm3, %v6653_v24, -inf }
 0x1c1   :  { %v6659_v28 = vpop.f32.mrf.mxu1  ;;  %1468 = vmax.xlane.f32.xlu0 %v1467_v26  ;;  %1465 = vmax.xlane.f32.xlu1 %v1464_v27  ;;  %v5707_v29 = vpop.f32.mrf.mxu0 }
 0x1c2   :  { %v1479_v39 = vsel %vm1448_vm3, %v6659_v28, -inf }
 0x1c3   :  { %v6661_v30 = vpop.f32.mrf.mxu0  ;;  %v5724_v31 = vpop.f32.mrf.mxu1 }
 0x1c4   :  { %v1473_v33 = vsel %vm1448_vm3, %v6661_v30, -inf }
 0x1c5   :  { %v6667_v34 = vpop.f32.mrf.mxu1  ;;  %1471 = vmax.xlane.f32.xlu1 %v1470_v32  ;;  %1474 = vmax.xlane.f32.xlu0 %v1473_v33  ;;  %v5718_v35 = vpop.f32.mrf.mxu0 }
 0x1c6   :  { %v1482_v42 = vsel %vm1448_vm3, %v6667_v34, -inf }
 0x1c7   :  { %v6669_v37 = vpop.f32.mrf.mxu0  ;;  %v5725_v38 = vpop.f32.mrf.mxu1 }
 0x1c8   :  { %v1476_v40 = vsel %vm1448_vm3, %v6669_v37, -inf }
 0x1c9   :  { %1480 = vmax.xlane.f32.xlu0 %v1479_v39  ;;  %1477 = vmax.xlane.f32.xlu1 %v1476_v40  ;;  %v5719_v41 = vpop.f32.mrf.mxu0 }
 0x1cd   :  { %1483 = vmax.xlane.f32.xlu1 %v1482_v42 }
 0x1d1   :  { %v6677_v43 = vpop.f32.mrf.mxu1 }
 0x1d2   :  { %v1491_v46 = vsel %vm1448_vm3, %v6677_v43, -inf }
 0x1d3   :  { %v6679_v45 = vpop.f32.mrf.mxu0  ;;  %v5736_v47 = vpop.f32.mrf.mxu1 }
 0x1d4   :  { %v1485_v48 = vsel %vm1448_vm3, %v6679_v45, -inf }
 0x1d5   :  { %v6683_v49 = vpop.f32.mrf.mxu1  ;;  %1486 = vmax.xlane.f32.xlu0 %v1485_v48  ;;  %v5730_v54 = vpop.f32.mrf.mxu0 }
 0x1d6   :  { %v1494_v7 = vsel %vm1448_vm3, %v6683_v49, -inf }
 0x1d7   :  { %v6685_v51 = vpop.f32.mrf.mxu0  ;;  %v5737_v56 = vpop.f32.mrf.mxu1 }
 0x1d8   :  { %v1488_v55 = vsel %vm1448_vm3, %v6685_v51, -inf }
 0x1d9   :  { %1492 = vmax.xlane.f32.xlu0 %v1491_v46  ;;  %1489 = vmax.xlane.f32.xlu1 %v1488_v55  ;;  %v5731_v63 = vpop.f32.mrf.mxu0 }
 0x1dd   :  { %1495 = vmax.xlane.f32.xlu1 %v1494_v7 }
 0x234   :  { %v1457_v10 = vpop.xlane.xlu1 %1456 }
 0x235   :  { %v1499_v15 = vsub.f32 %v6629_v53, %v1457_v10 }
 0x236   :  { %v1451_v16 = vpop.xlane.xlu0 %1450 }
 0x237   :  { %v1497_v20 = vsub.f32 %v6633_v57, %v1451_v16  ;;  %v1517_v23 = vmul.f32 1.442695, %v1499_v15 }
 0x238   :  { %v1460_v21 = vpop.xlane.xlu1 %1459 }
 0x239   :  { %v1513_v25 = vmul.f32 1.442695, %v1497_v20  ;;  %v1500_v26 = vsub.f32 %v6637_v62, %v1460_v21 }
 0x23a   :  { %v1454_v27 = vpop.xlane.xlu0 %1453 }
 0x23b   :  { %6178 = vpow2.f32 %v1513_v25  ;;  %v1498_v29 = vsub.f32 %v6641_v8, %v1454_v27  ;;  %v1519_v31 = vmul.f32 1.442695, %v1500_v26 }
 0x23c   :  { %6180 = vpow2.f32 %v1517_v23 }
 0x23d   :  { %v1515_v32 = vmul.f32 1.442695, %v1498_v29 }
 0x23f   :  { %6182 = vpow2.f32 %v1515_v32 }
 0x240   :  { %6184 = vpow2.f32 %v1519_v31 }
 0x246   :  { %v1463_v33 = vpop.xlane.xlu0 %1462 }
 0x247   :  { %v1501_v53 = vsub.f32 %v6647_v18, %v1463_v33 }
 0x248   :  { %v6698_v35 = vpop.eup %6178 }
 0x249   :  { %v1521_v57 = vmul.f32 1.442695, %v1501_v53  ;;  %v1545_v38 = vsel %vm1448_vm3, %v6698_v35, 0.0  ;;  %v6702_v39 = vpop.eup %6180 }
 0x24a   :  { %v1469_v62 = vpop.xlane.xlu0 %1468  ;;  %v1466_v40 = vpop.xlane.xlu1 %1465  ;;  %1546 = vadd.xlane.f32.xlu0 %v1545_v38  ;;  %v1551_v48 = vsel %vm1448_vm3, %v6702_v39, 0.0 }
 0x24b   :  { %6186 = vpow2.f32 %v1521_v57  ;;  %v1503_v8 = vsub.f32 %v6645_v17, %v1469_v62  ;;  %v1502_v41 = vsub.f32 %v6653_v24, %v1466_v40 }
 0x24c   :  { %v6706_v42 = vpop.eup %6182 }
 0x24d   :  { %v1525_v47 = vmul.f32 1.442695, %v1503_v8  ;;  %v1523_v18 = vmul.f32 1.442695, %v1502_v41  ;;  %v1548_v54 = vsel %vm1448_vm3, %v6706_v42, 0.0  ;;  %v6712_v56 = vpop.eup %6184 }
 0x24e   :  { %v1472_v46 = vpop.xlane.xlu1 %1471  ;;  %v1475_v55 = vpop.xlane.xlu0 %1474  ;;  %1552 = vadd.xlane.f32.xlu0 %v1551_v48  ;;  %1549 = vadd.xlane.f32.xlu1 %v1548_v54  ;;  %v1554_v10 = vsel %vm1448_vm3, %v6712_v56, 0.0 }
 0x24f   :  { %6188 = vpow2.f32 %v1525_v47  ;;  %v1504_v17 = vsub.f32 %v6651_v22, %v1472_v46  ;;  %v1505_v24 = vsub.f32 %v6661_v30, %v1475_v55 }
 0x250   :  { %6190 = vpow2.f32 %v1523_v18 }
 0x251   :  { %v1527_v63 = vmul.f32 1.442695, %v1504_v17  ;;  %v1529_v7 = vmul.f32 1.442695, %v1505_v24 }
 0x252   :  { %v1481_v15 = vpop.xlane.xlu0 %1480  ;;  %v1478_v16 = vpop.xlane.xlu1 %1477  ;;  %1555 = vadd.xlane.f32.xlu1 %v1554_v10 }
 0x253   :  { %6192 = vpow2.f32 %v1527_v63  ;;  %v1507_v20 = vsub.f32 %v6659_v28, %v1481_v15  ;;  %v1506_v21 = vsub.f32 %v6669_v37, %v1478_v16 }
 0x254   :  { %6194 = vpow2.f32 %v1529_v7 }
 0x255   :  { %v1533_v23 = vmul.f32 1.442695, %v1507_v20  ;;  %v1531_v25 = vmul.f32 1.442695, %v1506_v21 }
 0x256   :  { %v1484_v22 = vpop.xlane.xlu1 %1483 }
 0x257   :  { %6196 = vpow2.f32 %v1533_v23  ;;  %v1508_v30 = vsub.f32 %v6667_v34, %v1484_v22 }
 0x258   :  { %v6721_v26 = vpop.eup %6186  ;;  %6198 = vpow2.f32 %v1531_v25 }
 0x259   :  { %v1535_v27 = vmul.f32 1.442695, %v1508_v30  ;;  %v1557_v29 = vsel %vm1448_vm3, %v6721_v26, 0.0 }
 0x25a   :  { %1558 = vadd.xlane.f32.xlu0 %v1557_v29 }
 0x25b   :  { %6200 = vpow2.f32 %v1535_v27 }
 0x25c   :  { %v6725_v31 = vpop.eup %6188 }
 0x25d   :  { %v6727_v28 = vpop.eup %6190  ;;  %v1563_v37 = vsel %vm1448_vm3, %v6725_v31, 0.0 }
 0x25e   :  { %1564 = vadd.xlane.f32.xlu0 %v1563_v37  ;;  %v1487_v32 = vpop.xlane.xlu0 %1486  ;;  %v1560_v34 = vsel %vm1448_vm3, %v6727_v28, 0.0 }
 0x25f   :  { %v1509_v33 = vsub.f32 %v6679_v45, %v1487_v32  ;;  %1561 = vadd.xlane.f32.xlu1 %v1560_v34 }
 0x260   :  { %v6734_v53 = vpop.eup %6192 }
 0x261   :  { %v6736_v57 = vpop.eup %6194  ;;  %v1537_v38 = vmul.f32 1.442695, %v1509_v33  ;;  %v1566_v62 = vsel %vm1448_vm3, %v6734_v53, 0.0  ;;  %v589_v33 = vadd.f32 %v6526_v61, %v6532_v1 }
 0x262   :  { %v1569_v40 = vsel %vm1448_vm3, %v6736_v57, 0.0  ;;  %v1493_v8 = vpop.xlane.xlu0 %1492  ;;  %v1490_v41 = vpop.xlane.xlu1 %1489 }
 0x263   :  { %6202 = vpow2.f32 %v1537_v38  ;;  %1570 = vadd.xlane.f32.xlu0 %v1569_v40  ;;  %v1511_v47 = vsub.f32 %v6677_v43, %v1493_v8  ;;  %1567 = vadd.xlane.f32.xlu1 %v1566_v62  ;;  %v1510_v45 = vsub.f32 %v6685_v51, %v1490_v41  ;;  %v592_v38 = vadd.f32 %v6526_v61, %v6543_v11 }
 0x264   :  { %v6744_v18 = vpop.eup %6196 }
 0x265   :  { %v6746_v48 = vpop.eup %6198  ;;  %v1541_v54 = vmul.f32 1.442695, %v1511_v47  ;;  %v1539_v46 = vmul.f32 1.442695, %v1510_v45  ;;  %v1575_v55 = vsel %vm1448_vm3, %v6744_v18, 0.0 }
 0x266   :  { %v1572_v17 = vsel %vm1448_vm3, %v6746_v48, 0.0  ;;  %v1496_v24 = vpop.xlane.xlu1 %1495 }
 0x267   :  { %6204 = vpow2.f32 %v1541_v54  ;;  %1576 = vadd.xlane.f32.xlu0 %v1575_v55  ;;  %1573 = vadd.xlane.f32.xlu1 %v1572_v17  ;;  %v1512_v43 = vsub.f32 %v6683_v49, %v1496_v24 }
 0x268   :  { %v6753_v63 = vpop.eup %6200  ;;  %6206 = vpow2.f32 %v1539_v46  ;;  %v1065_v46 = vpack.c.bf16 %v592_v38, %v589_v33 }
 0x269   :  { %v1543_v51 = vmul.f32 1.442695, %v1512_v43  ;;  %v1578_v7 = vsel %vm1448_vm3, %v6753_v63, 0.0  ;;  %v814_v43 = vadd.f32 %v6568_v58, %v6585_v6 }
 0x26b   :  { %6208 = vpow2.f32 %v1543_v51  ;;  %1579 = vadd.xlane.f32.xlu1 %v1578_v7 }
 0x270   :  { %v6757_v10 = vpop.eup %6202 }
 0x271   :  { %v1581_v15 = vsel %vm1448_vm3, %v6757_v10, 0.0 }
 0x272   :  { %1582 = vadd.xlane.f32.xlu0 %v1581_v15 }
 0x274   :  { %v6761_v16 = vpop.eup %6204 }
 0x275   :  { %v6763_v20 = vpop.eup %6206  ;;  %v1587_v49 = vsel %vm1448_vm3, %v6761_v16, 0.0 }
 0x276   :  { %1588 = vadd.xlane.f32.xlu0 %v1587_v49  ;;  %v1584_v21 = vsel %vm1448_vm3, %v6763_v20, 0.0 }
 0x277   :  { %1585 = vadd.xlane.f32.xlu1 %v1584_v21 }
 0x278   :  { %v6769_v23 = vpop.eup %6208 }
 0x279   :  { %v1590_v25 = vsel %vm1448_vm3, %v6769_v23, 0.0 }
 0x27b   :  { %1591 = vadd.xlane.f32.xlu1 %v1590_v25 }
 0x2d3   :  { %v1547_v22 = vpop.xlane.xlu0 %1546 }
 0x2d4   :  { %6210 = vrcp.f32 %v1547_v22 }
 0x2d7   :  { %v1553_v30 = vpop.xlane.xlu0 %1552  ;;  %v1550_v27 = vpop.xlane.xlu1 %1549 }
 0x2d8   :  { %6212 = vrcp.f32 %v1550_v27 }
 0x2d9   :  { %6214 = vrcp.f32 %v1553_v30 }
 0x2db   :  { %v1556_v29 = vpop.xlane.xlu1 %1555 }
 0x2dc   :  { %6216 = vrcp.f32 %v1556_v29 }
 0x2e1   :  { %v6211_v32 = vpop.eup %6210 }
 0x2e2   :  { %v1609_v8 = vmul.f32 %v6211_v32, %v6698_v35 }
 0x2e3   :  { %v1559_v37 = vpop.xlane.xlu0 %1558 }
 0x2e4   :  { %6218 = vrcp.f32 %v1559_v37 }
 0x2e5   :  { %v6213_v34 = vpop.eup %6212 }
 0x2e6   :  { %v6215_v62 = vpop.eup %6214  ;;  %v1610_v41 = vmul.f32 %v6213_v34, %v6706_v42 }
 0x2e7   :  { %v1565_v40 = vpop.xlane.xlu0 %1564  ;;  %v1611_v55 = vmul.f32 %v6215_v62, %v6702_v39 }
 0x2e8   :  { %v1562_v47 = vpop.xlane.xlu1 %1561  ;;  %v1625_v54 = vpack.c.bf16 %v1610_v41, %v1609_v8 }
 0x2e9   :  { %v6217_v45 = vpop.eup %6216  ;;  %6220 = vrcp.f32 %v1562_v47 }
 0x2ea   :  { %v1612_v17 = vmul.f32 %v6217_v45, %v6712_v56  ;;  %5741 = vmatmul.mubr.msk.bf16.vlgmr.msra.gmra.mxu0 %vm1448_vm3, %v1625_v54  ;;  %6222 = vrcp.f32 %v1565_v40 }
 0x2eb   :  { %5751 = vmatpush3.bf16.msra.mxu0 %v1065_v46  ;;  %5752 = vmatprep.mubr.msk.bf16.mxu0 %vm6343_vm1, %v6342_v36 }
 0x2ec   :  { %v1571_v61 = vpop.xlane.xlu0 %1570  ;;  %v1568_v1 = vpop.xlane.xlu1 %1567  ;;  %v1626_v11 = vpack.c.bf16 %v1612_v17, %v1611_v55  ;;  %5762 = vmatprep.subr.bf16.mxu0 %v6342_v36 }
 0x2ed   :  { %6224 = vrcp.f32 %v1568_v1  ;;  %v6148_v1 = vld [vmem:[%s6850_s16 + $0x8] sm:$0xff]  }
 0x2ee   :  { %5747 = vmatmul.mubr.msk.bf16.vlgmr.msra.gmra.mxu1 %vm1448_vm3, %v1626_v11  ;;  %6226 = vrcp.f32 %v1571_v61 }
 0x2ef   :  { %5757 = vmatpush3.bf16.msra.mxu1 %v1066_v14  ;;  %5758 = vmatprep.mubr.msk.bf16.mxu1 %vm6343_vm1, %v6342_v36  ;;  %v811_v14 = vadd.f32 %v6568_v58, %v6570_v60  ;;  %v1033_v60 = vadd.f32 %v6615_v59, %v6617_v0 }
 0x2f0   :  { %v1577_v35 = vpop.xlane.xlu0 %1576  ;;  %v1574_v39 = vpop.xlane.xlu1 %1573  ;;  %5768 = vmatprep.subr.bf16.mxu1 %v6342_v36 }
 0x2f1   :  { %6228 = vrcp.f32 %v1574_v39  ;;  %v6219_v42 = vpop.eup %6218  ;;  %v1067_v15 = vpack.c.bf16 %v814_v43, %v811_v14 }
 0x2f2   :  { %6230 = vrcp.f32 %v1577_v35  ;;  %v1613_v4 = vmul.f32 %v6219_v42, %v6721_v26 }
 0x2f4   :  { %v1580_v56 = vpop.xlane.xlu1 %1579 }
 0x2f5   :  { %6232 = vrcp.f32 %v1580_v56 }
 0x2f6   :  { %v6221_v24 = vpop.eup %6220 }
 0x2f7   :  { %v1614_v9 = vmul.f32 %v6221_v24, %v6727_v28  ;;  %v6223_v51 = vpop.eup %6222  ;;  %v1036_v28 = vadd.f32 %v6615_v59, %v6627_v50 }
 0x2f8   :  { %v1615_v25 = vmul.f32 %v6223_v51, %v6725_v31 }
 0x2f9   :  { %v1627_v7 = vpack.c.bf16 %v1614_v9, %v1613_v4  ;;  %v1069_v50 = vpack.c.bf16 %v1036_v28, %v1033_v60 }
 0x2fa   :  { %v6225_v49 = vpop.eup %6224 }
 0x2fb   :  { %5753 = vmatmul.mubr.msk.bf16.vlgmr.msra.gmra.mxu0 %vm1448_vm3, %v1627_v7  ;;  %v1583_v21 = vpop.xlane.xlu0 %1582  ;;  %v1616_v22 = vmul.f32 %v6225_v49, %v6734_v53  ;;  %v6227_v6 = vpop.eup %6226 }
 0x2fc   :  { %5763 = vmatpush3.bf16.msra.mxu0 %v1067_v15  ;;  %5764 = vmatprep.mubr.msk.bf16.mxu0 %vm6343_vm1, %v6342_v36  ;;  %6234 = vrcp.f32 %v1583_v21  ;;  %v1617_v27 = vmul.f32 %v6227_v6, %v6736_v57  ;;  %v6146_v15 = vld [vmem:[%s6845_s12 + $0x8] sm:$0xff]  }
 0x2fd   :  { %5774 = vmatprep.subr.bf16.mxu0 %v6342_v36  ;;  %v1628_v26 = vpack.c.bf16 %v1616_v22, %v1615_v25 }
 0x2fe   :  { %v6229_v58 = vpop.eup %6228 }
 0x2ff   :  { %v6231_v30 = vpop.eup %6230  ;;  %5759 = vmatmul.mubr.msk.bf16.vlgmr.msra.gmra.mxu1 %vm1448_vm3, %v1628_v26  ;;  %v1589_v31 = vpop.xlane.xlu0 %1588  ;;  %v1618_v29 = vmul.f32 %v6229_v58, %v6746_v48 }
 0x300   :  { %v1586_v53 = vpop.xlane.xlu1 %1585  ;;  %5769 = vmatpush3.bf16.msra.mxu1 %v1068_v13  ;;  %5770 = vmatprep.mubr.msk.bf16.mxu1 %vm6343_vm1, %v6342_v36  ;;  %v1619_v37 = vmul.f32 %v6231_v30, %v6744_v18  ;;  %v6147_v30 = vld [vmem:[%s6845_s12] sm:$0xff]  }
 0x301   :  { %6236 = vrcp.f32 %v1586_v53  ;;  %v1629_v59 = vpack.c.bf16 %v1618_v29, %v1617_v27  ;;  %5780 = vmatprep.subr.bf16.mxu1 %v6342_v36  ;;  %v6149_v53 = vld [vmem:[%s6855_s21 + $0x8] sm:$0xff]  }
 0x302   :  { %v6233_v0 = vpop.eup %6232  ;;  %6238 = vrcp.f32 %v1589_v31 }
 0x303   :  { %v1620_v57 = vmul.f32 %v6233_v0, %v6753_v63  ;;  %5765 = vmatmul.mubr.msk.bf16.vlgmr.msra.gmra.mxu0 %vm1448_vm3, %v1629_v59  ;;  %v6151_v0 = vld [vmem:[%s6855_s21] sm:$0xff]  }
 0x304   :  { %v1592_v48 = vpop.xlane.xlu1 %1591  ;;  %5775 = vmatpush3.bf16.msra.mxu0 %v1069_v50  ;;  %5776 = vmatprep.mubr.msk.bf16.mxu0 %vm6343_vm1, %v6342_v36 }
 0x305   :  { %6240 = vrcp.f32 %v1592_v48  ;;  %v1630_v2 = vpack.c.bf16 %v1620_v57, %v1619_v37 }
 0x307   :  { %5771 = vmatmul.mubr.msk.bf16.vlgmr.msra.gmra.mxu1 %vm1448_vm3, %v1630_v2  ;;  %v6153_v2 = vld [vmem:[%s6850_s16 + $0x18] sm:$0xff]  }
 0x308   :  { %5781 = vmatpush3.bf16.msra.mxu1 %v1070_v44  ;;  %5782 = vmatprep.mubr.msk.bf16.mxu1 %vm6343_vm1, %v6342_v36  ;;  %v2058_v44 = vsel %vm1998_vm4, %v1987_v52, 0 }
 0x309   :  { %v6235_v3 = vpop.eup %6234  ;;  %6080 = vmatprep.subr.msk.bf16.mxu1 %vm1998_vm4, %v1987_v52  ;;  %v6161_v52 = vld [vmem:[%s6855_s21 + $0x28] sm:$0xff]  }
 0x30a   :  { %v1621_v18 = vmul.f32 %v6235_v3, %v6757_v10  ;;  %v5212_v10 = vld [vmem:[%s5062_s7 + $0x4] sm:$0xf] }
 0x30b   :  { %6079 = vmatprep.subr.msk.bf16.mxu0 %vm1998_vm4, %v5212_v10 }
 0x30e   :  { %v6237_v13 = vpop.eup %6236 }
 0x30f   :  { %v1622_v63 = vmul.f32 %v6237_v13, %v6763_v20  ;;  %v6239_v32 = vpop.eup %6238  ;;  %v5217_v20 = vld [vmem:[%s5062_s7 + $0x8] sm:$0xf] }
 0x310   :  { %v1623_v38 = vmul.f32 %v6239_v32, %v6761_v16  ;;  %v2000_v16 = vsel %vm1998_vm4, %v5212_v10, 0  ;;  %v2120_v7 = vsel %vm1998_vm4, %v5217_v20, 0  ;;  %v6155_v32 = vld [vmem:[%s6850_s16 + $0x10] sm:$0xff]   ;;  %v6163_v10 = vld [vmem:[%s6855_s21 + $0x20] sm:$0xff]  }
 0x311   :  { %v1631_v34 = vpack.c.bf16 %v1622_v63, %v1621_v18  ;;  %v6150_v18 = vld [vmem:[%s6850_s16] sm:$0xff]  }
 0x312   :  { %v6241_v33 = vpop.eup %6240 }
 0x313   :  { %5777 = vmatmul.mubr.msk.bf16.vlgmr.msra.gmra.mxu0 %vm1448_vm3, %v1631_v34  ;;  %v1624_v62 = vmul.f32 %v6241_v33, %v6769_v23  ;;  %v5220_v23 = vld [vmem:[%s5062_s7 + $0xc] sm:$0xf]  ;;  %v6152_v34 = vld [vmem:[%s6845_s12 + $0x18] sm:$0xff]   ;;  %s5066_s7 = sld [smem:[%s7467_s0 + %s6354_s4]]  }
 0x314   :  { %5787 = vmatpush3.bf16.msra.mxu0 %v2000_v16  ;;  %v2186_v61 = vsel %vm1998_vm4, %v5220_v23, 0  ;;  %v6157_v33 = vld [vmem:[%s6845_s12 + $0x28] sm:$0xff]   ;;  %s5085_s4 = sld [smem:[%s7467_s0 + %s6368_s1]]  }
 0x315   :  { %v1632_v5 = vpack.c.bf16 %v1624_v62, %v1623_v38  ;;  %6081 = vmatprep.subr.msk.bf16.mxu0 %vm1998_vm4, %v5217_v20  ;;  %v6154_v38 = vld [vmem:[%s6845_s12 + $0x10] sm:$0xff]   ;;  %v6159_v62 = vld [vmem:[%s6845_s12 + $0x20] sm:$0xff]   ;;  %v6160_v16 = vld [vmem:[%s6850_s16 + $0x28] sm:$0xff]  }
 0x316   :  { %v6164_v20 = vld [vmem:[%s6850_s16 + $0x38] sm:$0xff]  }
 0x317   :  { %5783 = vmatmul.mubr.msk.bf16.vlgmr.msra.gmra.mxu1 %vm1448_vm3, %v1632_v5  ;;  %v6156_v5 = vld [vmem:[%s6855_s21 + $0x18] sm:$0xff]  }
 0x318   :  { %5793 = vmatpush3.bf16.msra.mxu1 %v2058_v44  ;;  %v6158_v44 = vld [vmem:[%s6855_s21 + $0x10] sm:$0xff]  }
 0x319   :  { %6082 = vmatprep.subr.msk.bf16.mxu1 %vm1998_vm4, %v5220_v23  ;;  %v6162_v23 = vld [vmem:[%s6850_s16 + $0x20] sm:$0xff]  }
 0x3aa   :  { %v1670_v40 = vpop.f32.mrf.mxu0 }
 0x3ac   :  { %v5742_v8 = vpop.f32.mrf.mxu0 }
 0x3ad   :  { %v6166_v8 = vld [vmem:[%s6845_s12 + $0x38] sm:$0xff]  }
 0x3ae   :  { %v1714_v41 = vpop.f32.mrf.mxu1  ;;  %v1673_v47 = vpop.f32.mrf.mxu0 }
 0x3af   :  { %v1985_v45 = vpack.c.bf16 %v1673_v47, %v1670_v40  ;;  %v6165_v40 = vld [vmem:[%s6850_s16 + $0x30] sm:$0xff]   ;;  %v6168_v47 = vld [vmem:[%s6855_s21 + $0x38] sm:$0xff]   ;;  %s6357_s16 = smov 19  }
 0x3b0   :  { %v5748_v54 = vpop.f32.mrf.mxu1  ;;  %v5743_v46 = vpop.f32.mrf.mxu0  ;;  %s5076_s20 = sld [smem:[%s7467_s0 + %s6357_s16]]   ;;  %s6372_s16 = smov 33  }
 0x3b1   :  { %5794 = vmatprep.mubr.msk.bf16.mxu1 %vm1071_vm2, %v1985_v45  ;;  %v6169_v45 = vld [vmem:[%s6855_s21 + $0x30] sm:$0xff]   ;;  %s6358_s21 = smov 25  }
 0x3b2   :  { %v1717_v55 = vpop.f32.mrf.mxu1  ;;  %s5082_s24 = sld [smem:[%s7467_s0 + %s6358_s21]]  }
 0x3b3   :  { %v1986_v17 = vpack.c.bf16 %v1717_v55, %v1714_v41  ;;  %v6167_v41 = vld [vmem:[%s6845_s12 + $0x30] sm:$0xff]   ;;  %s6356_s12 = smov 18  }
 0x3b4   :  { %v5749_v11 = vpop.f32.mrf.mxu1  ;;  %s5075_s15 = sld [smem:[%s7467_s0 + %s6356_s12]]   ;;  %s6371_s12 = smov 32  }
 0x3b5   :  { %5795 = vmatmul.mubr.msk.bf16.vlgmr.msra.gmra.mxu1 %vm1071_vm2, %v1986_v17 }
 0x3b6   :  { %5805 = vmatpush3.bf16.msra.mxu1 %v2186_v61 }
 0x3b7   :  { %5818 = vmatprep.subr.bf16.mxu1 %v6148_v1 }
 0x3bb   :  { %v1758_v35 = vpop.f32.mrf.mxu0 }
 0x3bd   :  { %v5754_v39 = vpop.f32.mrf.mxu0 }
 0x3bf   :  { %v1761_v42 = vpop.f32.mrf.mxu0  ;;  %v1802_v24 = vpop.f32.mrf.mxu1 }
 0x3c0   :  { %v1988_v56 = vpack.c.bf16 %v1761_v42, %v1758_v35 }
 0x3c1   :  { %v5755_v43 = vpop.f32.mrf.mxu0  ;;  %v5760_v4 = vpop.f32.mrf.mxu1 }
 0x3c2   :  { %5788 = vmatprep.mubr.msk.bf16.mxu0 %vm1071_vm2, %v1988_v56 }
 0x3c3   :  { %v1805_v9 = vpop.f32.mrf.mxu1  ;;  %v1846_v14 = vpop.f32.mrf.mxu0 }
 0x3c4   :  { %v1989_v51 = vpack.c.bf16 %v1805_v9, %v1802_v24 }
 0x3c5   :  { %v5761_v49 = vpop.f32.mrf.mxu1  ;;  %v5766_v21 = vpop.f32.mrf.mxu0 }
 0x3c6   :  { %5789 = vmatmul.mubr.msk.bf16.vlgmr.msra.gmra.mxu0 %vm1071_vm2, %v1989_v51 }
 0x3c7   :  { %v1849_v25 = vpop.f32.mrf.mxu0  ;;  %v1890_v22 = vpop.f32.mrf.mxu1  ;;  %5799 = vmatpush3.bf16.msra.mxu0 %v2120_v7 }
 0x3c8   :  { %v2109_v6 = vpack.c.bf16 %v1849_v25, %v1846_v14  ;;  %5810 = vmatprep.subr.bf16.mxu0 %v6146_v15 }
 0x3c9   :  { %v5767_v26 = vpop.f32.mrf.mxu0  ;;  %v5772_v58 = vpop.f32.mrf.mxu1 }
 0x3ca   :  { %5800 = vmatprep.mubr.msk.bf16.mxu0 %vm1071_vm2, %v2109_v6 }
 0x3cb   :  { %v1893_v60 = vpop.f32.mrf.mxu1 }
 0x3cc   :  { %v2110_v28 = vpack.c.bf16 %v1893_v60, %v1890_v22 }
 0x3cd   :  { %v5773_v31 = vpop.f32.mrf.mxu1 }
 0x3ce   :  { %5801 = vmatmul.mubr.msk.bf16.vlgmr.msra.gmra.mxu0 %vm1071_vm2, %v2110_v28 }
 0x3cf   :  { %5811 = vmatpush3.bf16.msra.mxu0 %v6146_v15  ;;  %5814 = vmatprep.mubr.msk.bf16.mxu0 %vm175_vm0, %v6421_v12 }
 0x3d0   :  { %5812 = vmatprep.subr.bf16.mxu0 %v6147_v30 }
 0x3d3   :  { %v1934_v27 = vpop.f32.mrf.mxu0  ;;  %5813 = vmatpush3.bf16.msra.mxu0 %v6147_v30 }
 0x3d4   :  { %5826 = vmatprep.subr.bf16.mxu0 %v6149_v53 }
 0x3d5   :  { %v5778_v29 = vpop.f32.mrf.mxu0 }
 0x3d6   :  { %5815 = vmatmul.mubr.msk.bf16.vlgmr.msra.gmra.mxu0 %vm175_vm0, %v6433_v19 }
 0x3d7   :  { %v1937_v59 = vpop.f32.mrf.mxu0  ;;  %v1978_v50 = vpop.f32.mrf.mxu1  ;;  %5827 = vmatpush3.bf16.msra.mxu0 %v6149_v53  ;;  %5830 = vmatprep.mubr.msk.bf16.mxu0 %vm175_vm0, %v6421_v12 }
 0x3d8   :  { %v2175_v37 = vpack.c.bf16 %v1937_v59, %v1934_v27  ;;  %5828 = vmatprep.subr.bf16.mxu0 %v6151_v0 }
 0x3d9   :  { %v5779_v57 = vpop.f32.mrf.mxu0  ;;  %v5784_v48 = vpop.f32.mrf.mxu1 }
 0x3da   :  { %5806 = vmatprep.mubr.msk.bf16.mxu1 %vm1071_vm2, %v2175_v37 }
 0x3db   :  { %v1981_v3 = vpop.f32.mrf.mxu1  ;;  %5829 = vmatpush3.bf16.msra.mxu0 %v6151_v0 }
 0x3dc   :  { %v2176_v13 = vpack.c.bf16 %v1981_v3, %v1978_v50  ;;  %5842 = vmatprep.subr.bf16.mxu0 %v6153_v2  ;;  %v5231_v50 = vld [vmem:[%s6951_s25] ss:$0 sm:$0xff] }
 0x3dd   :  { %v5785_v63 = vpop.f32.mrf.mxu1 }
 0x3de   :  { %5807 = vmatmul.mubr.msk.bf16.vlgmr.msra.gmra.mxu1 %vm1071_vm2, %v2176_v13  ;;  %5831 = vmatmul.mubr.msk.bf16.vlgmr.msra.gmra.mxu0 %vm175_vm0, %v6433_v19 }
 0x3df   :  { %5819 = vmatpush3.bf16.msra.mxu1 %v6148_v1  ;;  %5822 = vmatprep.mubr.msk.bf16.mxu1 %vm175_vm0, %v6421_v12 }
 0x3e0   :  { %5820 = vmatprep.subr.bf16.mxu1 %v6150_v18  ;;  %5843 = vmatpush3.bf16.msra.mxu0 %v6153_v2  ;;  %v5256_v2 = vld [vmem:[%s6951_s25 + $0x1] ss:$0 sm:$0xff] }
 0x3e1   :  { %5846 = vmatprep.mubr.msk.bf16.mxu0 %vm175_vm0, %v6421_v12  ;;  %5844 = vmatprep.subr.bf16.mxu0 %v6155_v32 }
 0x3e3   :  { %5821 = vmatpush3.bf16.msra.mxu1 %v6150_v18 }
 0x3e4   :  { %5834 = vmatprep.subr.bf16.mxu1 %v6152_v34  ;;  %5845 = vmatpush3.bf16.msra.mxu0 %v6155_v32 }
 0x3e5   :  { %5858 = vmatprep.subr.bf16.mxu0 %v6157_v33 }
 0x3e6   :  { %5823 = vmatmul.mubr.msk.bf16.vlgmr.msra.gmra.mxu1 %vm175_vm0, %v6433_v19 }
 0x3e7   :  { %5835 = vmatpush3.bf16.msra.mxu1 %v6152_v34  ;;  %5838 = vmatprep.mubr.msk.bf16.mxu1 %vm175_vm0, %v6421_v12 }
 0x3e8   :  { %5836 = vmatprep.subr.bf16.mxu1 %v6154_v38  ;;  %5847 = vmatmul.mubr.msk.bf16.vlgmr.msra.gmra.mxu0 %vm175_vm0, %v6433_v19 }
 0x3e9   :  { %5859 = vmatpush3.bf16.msra.mxu0 %v6157_v33  ;;  %5862 = vmatprep.mubr.msk.bf16.mxu0 %vm175_vm0, %v6421_v12 }
 0x3ea   :  { %5860 = vmatprep.subr.bf16.mxu0 %v6159_v62 }
 0x3eb   :  { %5837 = vmatpush3.bf16.msra.mxu1 %v6154_v38 }
 0x3ec   :  { %5850 = vmatprep.subr.bf16.mxu1 %v6156_v5 }
 0x3ed   :  { %5861 = vmatpush3.bf16.msra.mxu0 %v6159_v62 }
 0x3ee   :  { %5839 = vmatmul.mubr.msk.bf16.vlgmr.msra.gmra.mxu1 %vm175_vm0, %v6433_v19  ;;  %5874 = vmatprep.subr.bf16.mxu0 %v6161_v52 }
 0x3ef   :  { %5851 = vmatpush3.bf16.msra.mxu1 %v6156_v5  ;;  %5854 = vmatprep.mubr.msk.bf16.mxu1 %vm175_vm0, %v6421_v12 }
 0x3f0   :  { %5852 = vmatprep.subr.bf16.mxu1 %v6158_v44  ;;  %5863 = vmatmul.mubr.msk.bf16.vlgmr.msra.gmra.mxu0 %vm175_vm0, %v6433_v19 }
 0x3f1   :  { %5875 = vmatpush3.bf16.msra.mxu0 %v6161_v52  ;;  %5878 = vmatprep.mubr.msk.bf16.mxu0 %vm175_vm0, %v6421_v12  ;;  %v5226_v52 = vld [vmem:[%s6968_s29] ss:$0 sm:$0xff] }
 0x3f2   :  { %5876 = vmatprep.subr.bf16.mxu0 %v6163_v10 }
 0x3f3   :  { %5853 = vmatpush3.bf16.msra.mxu1 %v6158_v44 }
 0x3f4   :  { %5866 = vmatprep.subr.bf16.mxu1 %v6160_v16 }
 0x3f5   :  { %5877 = vmatpush3.bf16.msra.mxu0 %v6163_v10 }
 0x3f6   :  { %5855 = vmatmul.mubr.msk.bf16.vlgmr.msra.gmra.mxu1 %vm175_vm0, %v6433_v19  ;;  %5890 = vmatprep.subr.bf16.mxu0 %v6164_v20 }
 0x3f7   :  { %5867 = vmatpush3.bf16.msra.mxu1 %v6160_v16  ;;  %5870 = vmatprep.mubr.msk.bf16.mxu1 %vm175_vm0, %v6421_v12 }
 0x3f8   :  { %5868 = vmatprep.subr.bf16.mxu1 %v6162_v23  ;;  %5879 = vmatmul.mubr.msk.bf16.vlgmr.msra.gmra.mxu0 %vm175_vm0, %v6433_v19 }
 0x3f9   :  { %5891 = vmatpush3.bf16.msra.mxu0 %v6164_v20  ;;  %5894 = vmatprep.mubr.msk.bf16.mxu0 %vm175_vm0, %v6421_v12 }
 0x3fa   :  { %5892 = vmatprep.subr.bf16.mxu0 %v6165_v40 }
 0x3fb   :  { %5869 = vmatpush3.bf16.msra.mxu1 %v6162_v23 }
 0x3fc   :  { %5882 = vmatprep.subr.bf16.mxu1 %v6166_v8 }
 0x3fd   :  { %5893 = vmatpush3.bf16.msra.mxu0 %v6165_v40 }
 0x3fe   :  { %5871 = vmatmul.mubr.msk.bf16.vlgmr.msra.gmra.mxu1 %vm175_vm0, %v6433_v19  ;;  %5906 = vmatprep.subr.bf16.mxu0 %v6342_v36 }
 0x3ff   :  { %5883 = vmatpush3.bf16.msra.mxu1 %v6166_v8  ;;  %5886 = vmatprep.mubr.msk.bf16.mxu1 %vm175_vm0, %v6421_v12 }
 0x400   :  { %5895 = vmatmul.mubr.msk.bf16.vlgmr.msra.gmra.mxu0 %vm175_vm0, %v6433_v19  ;;  %5884 = vmatprep.subr.bf16.mxu1 %v6167_v41 }
 0x401   :  { %5908 = vmatprep.mubr.msk.bf16.mxu0 %vm6343_vm1, %v6342_v36 }
 0x403   :  { %5885 = vmatpush3.bf16.msra.mxu1 %v6167_v41 }
 0x404   :  { %5898 = vmatprep.subr.bf16.mxu1 %v6168_v47 }
 0x406   :  { %5887 = vmatmul.mubr.msk.bf16.vlgmr.msra.gmra.mxu1 %vm175_vm0, %v6433_v19 }
 0x407   :  { %5902 = vmatprep.mubr.msk.bf16.mxu1 %vm175_vm0, %v6421_v12  ;;  %5899 = vmatpush3.bf16.msra.mxu1 %v6168_v47 }
 0x408   :  { %5900 = vmatprep.subr.bf16.mxu1 %v6169_v45 }
 0x40b   :  { %5901 = vmatpush3.bf16.msra.mxu1 %v6169_v45 }
 0x40c   :  { %5912 = vmatprep.subr.bf16.mxu1 %v6342_v36 }
 0x40e   :  { %5903 = vmatmul.mubr.msk.bf16.vlgmr.msra.gmra.mxu1 %vm175_vm0, %v6433_v19 }
 0x40f   :  { %5914 = vmatprep.mubr.msk.bf16.mxu1 %vm6343_vm1, %v6342_v36 }
 0x475   :  { %v5796_v54 = vpop.f32.mrf.mxu1 }
 0x477   :  { %v2094_v46 = vpop.f32.mrf.mxu1 }
 0x479   :  { %v5797_v61 = vpop.f32.mrf.mxu1 }
 0x47b   :  { %v2097_v39 = vpop.f32.mrf.mxu1 }
 0x486   :  { %v5790_v55 = vpop.f32.mrf.mxu0 }
 0x487   :  { %v2103_v17 = vadd.f32 %v5796_v54, %v5790_v55 }
 0x488   :  { %v2036_v12 = vpop.f32.mrf.mxu0 }
 0x489   :  { %v2095_v1 = vadd.f32 %v2094_v46, %v2036_v12 }
 0x48a   :  { %v5791_v11 = vpop.f32.mrf.mxu0 }
 0x48b   :  { %v2106_v35 = vadd.f32 %v5797_v61, %v5791_v11 }
 0x48c   :  { %v2039_v42 = vpop.f32.mrf.mxu0 }
 0x48d   :  { %v2098_v56 = vadd.f32 %v2097_v39, %v2039_v42 }
 0x48e   :  { %v5802_v24 = vpop.f32.mrf.mxu0 }
 0x48f   :  { %v2173_v43 = vadd.f32 %v5802_v24, %v2103_v17 }
 0x490   :  { %v2156_v4 = vpop.f32.mrf.mxu0 }
 0x491   :  { %v2171_v9 = vadd.f32 %v2156_v4, %v2095_v1  ;;  %v5246_v4 = vld [vmem:[%s6968_s29 + $0x1] ss:$0 sm:$0xff] }
 0x492   :  { %v5803_v19 = vpop.f32.mrf.mxu0 }
 0x493   :  { %v2174_v14 = vadd.f32 %v5803_v19, %v2106_v35 }
 0x494   :  { %v2159_v51 = vpop.f32.mrf.mxu0 }
 0x495   :  { %v2172_v7 = vadd.f32 %v2159_v51, %v2098_v56 }
 0x496   :  { %v5816_v15 = vpop.f32.mrf.mxu0 }
 0x497   :  { %v2397_v47 = vadd.f32 %v5816_v15, %v5226_v52  ;;  %v5296_v15 = vld [vmem:[%s6983_s3 + $0x2] ss:$0 sm:$0xff] }
 0x498   :  { %v2388_v49 = vpop.f32.mrf.mxu0 }
 0x499   :  { %v2389_v61 = vadd.f32 %v5226_v52, %v2388_v49 }
 0x49a   :  { %v5817_v21 = vpop.f32.mrf.mxu0 }
 0x49b   :  { %v2400_v45 = vadd.f32 %v5817_v21, %v5226_v52 }
 0x49c   :  { %v2391_v25 = vpop.f32.mrf.mxu0 }
 0x49d   :  { %v2392_v12 = vadd.f32 %v5226_v52, %v2391_v25  ;;  %v3214_v39 = vpack.c.bf16 %v2400_v45, %v2397_v47 }
 0x49e   :  { %v5808_v22 = vpop.f32.mrf.mxu1  ;;  %v6953_v58 = vpop.f32.mrf.mxu0 }
 0x49f   :  { %v6946_v6 = vadd.f32 %v5808_v22, %v2173_v43  ;;  %v3213_v43 = vpack.c.bf16 %v2392_v12, %v2389_v61 }
 0x4a0   :  { %v2222_v26 = vpop.f32.mrf.mxu1  ;;  %v6957_v30 = vpop.f32.mrf.mxu0 }
 0x4a1   :  { %v6955_v60 = vadd.f32 %v2222_v26, %v2171_v9 }
 0x4a2   :  { %v5809_v28 = vpop.f32.mrf.mxu1  ;;  %v6961_v27 = vpop.f32.mrf.mxu0 }
 0x4a3   :  { %v6959_v31 = vadd.f32 %v5809_v28, %v2174_v14  ;;  %v5266_v14 = vld [vmem:[%s6983_s3 + $0x1] ss:$0 sm:$0xff] }
 0x4a4   :  { %v2225_v53 = vpop.f32.mrf.mxu1  ;;  %v6970_v59 = vpop.f32.mrf.mxu0 }
 0x4a5   :  { %v6963_v29 = vadd.f32 %v2225_v53, %v2172_v7 }
 0x4a6   :  { %v5824_v0 = vpop.f32.mrf.mxu1 }
 0x4a7   :  { %v2469_v13 = vadd.f32 %v5824_v0, %v5231_v50 }
 0x4a8   :  { %v2460_v37 = vpop.f32.mrf.mxu1  ;;  %v5848_v57 = vpop.f32.mrf.mxu0 }
 0x4a9   :  { %v2461_v63 = vadd.f32 %v5231_v50, %v2460_v37  ;;  %v2689_v62 = vadd.f32 %v5848_v57, %v5256_v2 }
 0x4aa   :  { %v5825_v48 = vpop.f32.mrf.mxu1  ;;  %v2680_v3 = vpop.f32.mrf.mxu0 }
 0x4ab   :  { %v2472_v18 = vadd.f32 %v5825_v48, %v5231_v50  ;;  %v2681_v20 = vadd.f32 %v5256_v2, %v2680_v3 }
 0x4ac   :  { %v2463_v32 = vpop.f32.mrf.mxu1  ;;  %v5849_v34 = vpop.f32.mrf.mxu0 }
 0x4ad   :  { %v3222_v33 = vpack.c.bf16 %v2472_v18, %v2469_v13  ;;  %v2464_v38 = vadd.f32 %v5231_v50, %v2463_v32  ;;  %v2692_v5 = vadd.f32 %v5849_v34, %v5256_v2 }
 0x4ae   :  { %v5840_v44 = vpop.f32.mrf.mxu1  ;;  %v2683_v10 = vpop.f32.mrf.mxu0 }
 0x4af   :  { %v3221_v16 = vpack.c.bf16 %v2464_v38, %v2461_v63  ;;  %v3288_v23 = vsel %vm1071_vm2, %v3222_v33, 0  ;;  %v2684_v8 = vadd.f32 %v5256_v2, %v2683_v10  ;;  %v3224_v54 = vpack.c.bf16 %v2692_v5, %v2689_v62  ;;  %v5286_v5 = vld [vmem:[%s6951_s25 + $0x2] ss:$0 sm:$0xff] }
 0x4b0   :  { %v2606_v40 = vpop.f32.mrf.mxu1  ;;  %5913 = vmatpush3.bf16.xpose.msra.mxu1 %v3288_v23  ;;  %v6976_v41 = vpop.f32.mrf.mxu0  ;;  %v2615_v49 = vadd.f32 %v5840_v44, %v5246_v4 }
 0x4b1   :  { %v3241_v46 = vsel %vm1071_vm2, %v3221_v16, 0  ;;  %5924 = vmatprep.subr.bf16.mxu1 %v6342_v36  ;;  %v3223_v1 = vpack.c.bf16 %v2684_v8, %v2681_v20  ;;  %v3382_v42 = vsel %vm1071_vm2, %v3224_v54, 0  ;;  %v2607_v0 = vadd.f32 %v5246_v4, %v2606_v40  ;;  %v5316_v20 = vld [vmem:[%s6951_s25 + $0x3] ss:$0 sm:$0xff]  ;;  %s6359_s25 = smov 22  }
 0x4b2   :  { %v5841_v55 = vpop.f32.mrf.mxu1  ;;  %5907 = vmatpush3.bf16.xpose.msra.mxu0 %v3241_v46  ;;  %v6985_v17 = vpop.f32.mrf.mxu0  ;;  %s5079_s28 = sld [smem:[%s7467_s0 + %s6359_s25]]  }
 0x4b3   :  { %5918 = vmatprep.subr.bf16.mxu0 %v6342_v36  ;;  %v3335_v9 = vsel %vm1071_vm2, %v3223_v1, 0  ;;  %v2618_v19 = vadd.f32 %v5841_v55, %v5246_v4  ;;  %v5276_v1 = vld [vmem:[%s6968_s29 + $0x2] ss:$0 sm:$0xff] }
 0x4b4   :  { %v2609_v11 = vpop.f32.mrf.mxu1  ;;  %v6988_v35 = vpop.f32.mrf.mxu0 }
 0x4b5   :  { %v2610_v22 = vadd.f32 %v5246_v4, %v2609_v11  ;;  %v3216_v50 = vpack.c.bf16 %v2618_v19, %v2615_v49  ;;  %v2837_v19 = vadd.f32 %v6976_v41, %v5276_v1  ;;  %v2829_v49 = vadd.f32 %v5276_v1, %v6985_v17 }
 0x4b6   :  { %v5856_v56 = vpop.f32.mrf.mxu1  ;;  %v6991_v24 = vpop.f32.mrf.mxu0 }
 0x4b7   :  { %5915 = vmatmul.mubr.msk.bf16.vlgmr.msra.gmra.mxu1 %vm1071_vm2, %v3214_v39  ;;  %v7004_v26 = vadd.f32 %v5856_v56, %v5266_v14  ;;  %v3215_v34 = vpack.c.bf16 %v2610_v22, %v2607_v0  ;;  %v5306_v22 = vld [vmem:[%s6968_s29 + $0x3] ss:$0 sm:$0xff]  ;;  %s6360_s29 = smov 23  }
 0x4b8   :  { %v2754_v51 = vpop.f32.mrf.mxu1  ;;  %5925 = vmatpush3.bf16.xpose.msra.mxu1 %v3382_v42  ;;  %v5880_v7 = vpop.f32.mrf.mxu0  ;;  %5926 = vmatprep.mubr.msk.bf16.mxu1 %vm6343_vm1, %v6342_v36  ;;  %s5080_s2 = sld [smem:[%s7467_s0 + %s6360_s29]]  }
 0x4b9   :  { %5909 = vmatmul.mubr.msk.bf16.vlgmr.msra.gmra.mxu0 %vm1071_vm2, %v3213_v43  ;;  %5936 = vmatprep.subr.bf16.mxu1 %v6342_v36  ;;  %v7008_v53 = vadd.f32 %v5880_v7, %v5296_v15  ;;  %v7011_v37 = vadd.f32 %v5266_v14, %v2754_v51 }
 0x4ba   :  { %v5857_v21 = vpop.f32.mrf.mxu1  ;;  %5919 = vmatpush3.bf16.xpose.msra.mxu0 %v3335_v9  ;;  %v2976_v25 = vpop.f32.mrf.mxu0  ;;  %5920 = vmatprep.mubr.msk.bf16.mxu0 %vm6343_vm1, %v6342_v36 }
 0x4bb   :  { %v7006_v28 = vadd.f32 %v5857_v21, %v5266_v14  ;;  %5930 = vmatprep.subr.bf16.mxu0 %v6342_v36  ;;  %v7017_v13 = vadd.f32 %v5296_v15, %v2976_v25  ;;  %v2832_v21 = vadd.f32 %v5276_v1, %v6991_v24 }
 0x4bc   :  { %v2757_v57 = vpop.f32.mrf.mxu1  ;;  %v5881_v48 = vpop.f32.mrf.mxu0 }
 0x4bd   :  { %v3232_v2 = vpack.c.bf16 %v7006_v28, %v7004_v26  ;;  %v7015_v3 = vadd.f32 %v5266_v14, %v2757_v57  ;;  %v7019_v18 = vadd.f32 %v5881_v48, %v5296_v15  ;;  %v2840_v14 = vadd.f32 %v6988_v35, %v5276_v1  ;;  %v5236_v35 = vld [vmem:[%s6983_s3] ss:$0 sm:$0xff] }
 0x4be   :  { %v5872_v63 = vpop.f32.mrf.mxu1  ;;  %v2979_v32 = vpop.f32.mrf.mxu0  ;;  %v3217_v57 = vpack.c.bf16 %v2832_v21, %v2829_v49 }
 0x4bf   :  { %v3231_v33 = vpack.c.bf16 %v7015_v3, %v7011_v37  ;;  %5927 = vmatmul.mubr.msk.bf16.vlgmr.msra.gmra.mxu1 %vm1071_vm2, %v3216_v50  ;;  %v3234_v38 = vpack.c.bf16 %v7019_v18, %v7008_v53  ;;  %v7026_v62 = vadd.f32 %v5296_v15, %v2979_v32  ;;  %v2911_v40 = vadd.f32 %v5872_v63, %v5286_v5 }
 0x4c0   :  { %v2902_v52 = vpop.f32.mrf.mxu1  ;;  %v5896_v44 = vpop.f32.mrf.mxu0  ;;  %5938 = vmatprep.mubr.msk.bf16.mxu1 %vm6343_vm1, %v6342_v36  ;;  %v3218_v0 = vpack.c.bf16 %v2840_v14, %v2837_v19 }
 0x4c1   :  { %5921 = vmatmul.mubr.msk.bf16.vlgmr.msra.gmra.mxu0 %vm1071_vm2, %v3215_v34  ;;  %v3233_v10 = vpack.c.bf16 %v7026_v62, %v7017_v13  ;;  %v2903_v47 = vadd.f32 %v5286_v5, %v2902_v52  ;;  %v3133_v61 = vadd.f32 %v5896_v44, %v5316_v20  ;;  %v2541_v34 = vadd.f32 %v6953_v58, %v5236_v35 }
 0x4c2   :  { %v5873_v16 = vpop.f32.mrf.mxu1  ;;  %v3124_v23 = vpop.f32.mrf.mxu0  ;;  %5932 = vmatprep.mubr.msk.bf16.mxu0 %vm6343_vm1, %v6342_v36  ;;  %v2533_v44 = vadd.f32 %v5236_v35, %v6957_v30  ;;  %v7071_v30 = vld [vmem:[%s6983_s3 + $0x3] ss:$0 sm:$0xff]  ;;  %s6361_s3 = smov 17  }
 0x4c3   :  { %v2914_v8 = vadd.f32 %v5873_v16, %v5286_v5  ;;  %v3125_v56 = vadd.f32 %v5316_v20, %v3124_v23  ;;  %v2536_v16 = vadd.f32 %v5236_v35, %v6970_v59  ;;  %s5074_s6 = sld [smem:[%s7467_s0 + %s6361_s3]]  }
 0x4c4   :  { %v2905_v45 = vpop.f32.mrf.mxu1  ;;  %v5897_v54 = vpop.f32.mrf.mxu0 }
 0x4c5   :  { %v3226_v46 = vpack.c.bf16 %v2914_v8, %v2911_v40  ;;  %v2906_v55 = vadd.f32 %v5286_v5, %v2905_v45  ;;  %v3136_v12 = vadd.f32 %v5897_v54, %v5316_v20  ;;  %v2544_v5 = vadd.f32 %v6961_v27, %v5236_v35 }
 0x4c6   :  { %v3127_v11 = vpop.f32.mrf.mxu0  ;;  %v5888_v39 = vpop.f32.mrf.mxu1  ;;  %v3229_v40 = vpack.c.bf16 %v2536_v16, %v2533_v44 }
 0x4c7   :  { %v3225_v42 = vpack.c.bf16 %v2906_v55, %v2903_v47  ;;  %v3476_v43 = vsel %vm1071_vm2, %v3226_v46, 0  ;;  %v3128_v4 = vadd.f32 %v5316_v20, %v3127_v11  ;;  %v3228_v51 = vpack.c.bf16 %v3136_v12, %v3133_v61 }
 0x4c8   :  { %5937 = vmatpush3.bf16.xpose.msra.mxu1 %v3476_v43  ;;  %v3050_v9 = vpop.f32.mrf.mxu1  ;;  %v3059_v48 = vadd.f32 %v5888_v39, %v5306_v22  ;;  %v3230_v23 = vpack.c.bf16 %v2544_v5, %v2541_v34 }
 0x4c9   :  { %v3429_v7 = vsel %vm1071_vm2, %v3225_v42, 0  ;;  %5948 = vmatprep.subr.bf16.mxu1 %v6342_v36  ;;  %v3227_v25 = vpack.c.bf16 %v3128_v4, %v3125_v56  ;;  %v3570_v41 = vsel %vm1071_vm2, %v3228_v51, 0  ;;  %v3051_v17 = vadd.f32 %v5306_v22, %v3050_v9 }
 0x4ca   :  { %5931 = vmatpush3.bf16.xpose.msra.mxu0 %v3429_v7  ;;  %v5889_v15 = vpop.f32.mrf.mxu1 }
 0x4cb   :  { %5942 = vmatprep.subr.bf16.mxu0 %v6342_v36  ;;  %v3523_v63 = vsel %vm1071_vm2, %v3227_v25, 0  ;;  %v3062_v32 = vadd.f32 %v5889_v15, %v5306_v22 }
 0x4cc   :  { %v3053_v50 = vpop.f32.mrf.mxu1 }
 0x4cd   :  { %v3054_v24 = vadd.f32 %v5306_v22, %v3053_v50  ;;  %v3220_v52 = vpack.c.bf16 %v3062_v32, %v3059_v48 }
 0x4ce   :  { %v5904_v58 = vpop.f32.mrf.mxu1 }
 0x4cf   :  { %5939 = vmatmul.mubr.msk.bf16.vlgmr.msra.gmra.mxu1 %vm1071_vm2, %v3218_v0  ;;  %v3219_v20 = vpack.c.bf16 %v3054_v24, %v3051_v17  ;;  %v7076_v59 = vadd.f32 %v5904_v58, %v7071_v30 }
 0x4d0   :  { %5949 = vmatpush3.bf16.xpose.msra.mxu1 %v3570_v41  ;;  %5950 = vmatprep.mubr.msk.bf16.mxu1 %vm6343_vm1, %v6342_v36  ;;  %v7073_v27 = vpop.f32.mrf.mxu1 }
 0x4d1   :  { %5933 = vmatmul.mubr.msk.bf16.vlgmr.msra.gmra.mxu0 %vm1071_vm2, %v3217_v57  ;;  %5960 = vmatprep.subr.bf16.mxu1 %v6342_v36  ;;  %v3199_v53 = vadd.f32 %v7071_v30, %v7073_v27 }
 0x4d2   :  { %5943 = vmatpush3.bf16.xpose.msra.mxu0 %v3523_v63  ;;  %5944 = vmatprep.mubr.msk.bf16.mxu0 %vm6343_vm1, %v6342_v36  ;;  %v5905_v8 = vpop.f32.mrf.mxu1 }
 0x4d3   :  { %5954 = vmatprep.subr.bf16.mxu0 %v6342_v36  ;;  %v7079_v47 = vadd.f32 %v5905_v8, %v7071_v30 }
 0x4d4   :  { %v7083_v54 = vpop.f32.mrf.mxu1 }
 0x4d5   :  { %v3236_v45 = vpack.c.bf16 %v7079_v47, %v7076_v59  ;;  %v3202_v18 = vadd.f32 %v7071_v30, %v7083_v54 }
 0x4d7   :  { %5951 = vmatmul.mubr.msk.bf16.vlgmr.msra.gmra.mxu1 %vm1071_vm2, %v3220_v52 }
 0x4d8   :  { %5961 = vmatpush3.bf16.msra.mxu1 %v3230_v23  ;;  %5962 = vmatprep.mubr.msk.bf16.mxu1 %vm6343_vm1, %v6342_v36 }
 0x4d9   :  { %5945 = vmatmul.mubr.msk.bf16.vlgmr.msra.gmra.mxu0 %vm1071_vm2, %v3219_v20  ;;  %5972 = vmatprep.subr.bf16.mxu1 %v6342_v36 }
 0x4da   :  { %5955 = vmatpush3.bf16.msra.mxu0 %v3229_v40  ;;  %5956 = vmatprep.mubr.msk.bf16.mxu0 %vm6343_vm1, %v6342_v36 }
 0x4db   :  { %5966 = vmatprep.subr.bf16.mxu0 %v6342_v36 }
 0x577   :  { %v7085_v46 = vpop.f32.mrf.mxu1 }
 0x578   :  { %v3619_v56 = vsel %vm1448_vm3, %v7085_v46, -inf }
 0x579   :  { %v3277_v55 = vpop.f32.mrf.mxu0  ;;  %v5916_v61 = vpop.f32.mrf.mxu1 }
 0x57a   :  { %v3613_v12 = vsel %vm1448_vm3, %v3277_v55, -inf }
 0x57b   :  { %v7088_v1 = vpop.f32.mrf.mxu1  ;;  %3614 = vmax.xlane.f32.xlu0 %v3613_v12  ;;  %v5910_v11 = vpop.f32.mrf.mxu0 }
 0x57c   :  { %v3622_v51 = vsel %vm1448_vm3, %v7088_v1, -inf }
 0x57d   :  { %v3280_v39 = vpop.f32.mrf.mxu0  ;;  %v5917_v42 = vpop.f32.mrf.mxu1 }
 0x57e   :  { %v3616_v43 = vsel %vm1448_vm3, %v3280_v39, -inf }
 0x57f   :  { %v7093_v4 = vpop.f32.mrf.mxu1  ;;  %3620 = vmax.xlane.f32.xlu0 %v3619_v56  ;;  %3617 = vmax.xlane.f32.xlu1 %v3616_v43  ;;  %v5911_v9 = vpop.f32.mrf.mxu0 }
 0x580   :  { %v3631_v22 = vsel %vm1448_vm3, %v7093_v4, -inf }
 0x581   :  { %v3371_v19 = vpop.f32.mrf.mxu0  ;;  %v5928_v14 = vpop.f32.mrf.mxu1 }
 0x582   :  { %v3625_v7 = vsel %vm1448_vm3, %v3371_v19, -inf }
 0x583   :  { %v7098_v15 = vpop.f32.mrf.mxu1  ;;  %3623 = vmax.xlane.f32.xlu1 %v3622_v51  ;;  %3626 = vmax.xlane.f32.xlu0 %v3625_v7  ;;  %v5922_v49 = vpop.f32.mrf.mxu0 }
 0x584   :  { %v3634_v50 = vsel %vm1448_vm3, %v7098_v15, -inf }
 0x585   :  { %v3374_v21 = vpop.f32.mrf.mxu0  ;;  %v5929_v25 = vpop.f32.mrf.mxu1 }
 0x586   :  { %v3628_v0 = vsel %vm1448_vm3, %v3374_v21, -inf }
 0x587   :  { %3632 = vmax.xlane.f32.xlu0 %v3631_v22  ;;  %3629 = vmax.xlane.f32.xlu1 %v3628_v0  ;;  %v5923_v41 = vpop.f32.mrf.mxu0 }
 0x58b   :  { %3635 = vmax.xlane.f32.xlu1 %v3634_v50 }
 0x58f   :  { %v7105_v35 = vpop.f32.mrf.mxu1 }
 0x590   :  { %v3643_v5 = vsel %vm1448_vm3, %v7105_v35, -inf }
 0x591   :  { %v7107_v57 = vpop.f32.mrf.mxu0  ;;  %v5940_v48 = vpop.f32.mrf.mxu1 }
 0x592   :  { %v3637_v63 = vsel %vm1448_vm3, %v7107_v57, -inf }
 0x593   :  { %v7111_v32 = vpop.f32.mrf.mxu1  ;;  %3638 = vmax.xlane.f32.xlu0 %v3637_v63  ;;  %v5934_v17 = vpop.f32.mrf.mxu0 }
 0x594   :  { %v3646_v16 = vsel %vm1448_vm3, %v7111_v32, -inf }
 0x595   :  { %v7113_v24 = vpop.f32.mrf.mxu0  ;;  %v5941_v34 = vpop.f32.mrf.mxu1 }
 0x596   :  { %v3640_v52 = vsel %vm1448_vm3, %v7113_v24, -inf }
 0x597   :  { %3644 = vmax.xlane.f32.xlu0 %v3643_v5  ;;  %3641 = vmax.xlane.f32.xlu1 %v3640_v52  ;;  %v5935_v44 = vpop.f32.mrf.mxu0  ;;  %v7121_v20 = vpop.f32.mrf.mxu1 }
 0x599   :  { %v5952_v23 = vpop.f32.mrf.mxu1  ;;  %v7123_v40 = vpop.f32.mrf.mxu0 }
 0x59b   :  { %3647 = vmax.xlane.f32.xlu1 %v3646_v16  ;;  %v7125_v58 = vpop.f32.mrf.mxu1  ;;  %v5946_v8 = vpop.f32.mrf.mxu0 }
 0x59d   :  { %v5953_v61 = vpop.f32.mrf.mxu1  ;;  %v7127_v12 = vpop.f32.mrf.mxu0 }
 0x59f   :  { %v5947_v11 = vpop.f32.mrf.mxu0 }
 0x604   :  { %v3615_v42 = vpop.xlane.xlu0 %3614 }
 0x605   :  { %v3661_v56 = vsub.f32 %v3277_v55, %v3615_v42 }
 0x607   :  { %v3677_v43 = vmul.f32 1.442695, %v3661_v56 }
 0x608   :  { %v3621_v9 = vpop.xlane.xlu0 %3620  ;;  %v3618_v14 = vpop.xlane.xlu1 %3617 }
 0x609   :  { %6242 = vpow2.f32 %v3677_v43  ;;  %v3663_v51 = vsub.f32 %v7085_v46, %v3621_v9  ;;  %v3662_v7 = vsub.f32 %v3280_v39, %v3618_v14 }
 0x60b   :  { %v3681_v49 = vmul.f32 1.442695, %v3663_v51  ;;  %v3679_v25 = vmul.f32 1.442695, %v3662_v7 }
 0x60c   :  { %v3624_v22 = vpop.xlane.xlu1 %3623  ;;  %v3627_v0 = vpop.xlane.xlu0 %3626 }
 0x60d   :  { %6244 = vpow2.f32 %v3681_v49  ;;  %v3664_v41 = vsub.f32 %v7088_v1, %v3624_v22  ;;  %v3665_v50 = vsub.f32 %v3371_v19, %v3627_v0 }
 0x60e   :  { %6246 = vpow2.f32 %v3679_v25 }
 0x60f   :  { %v3683_v48 = vmul.f32 1.442695, %v3664_v41  ;;  %v3685_v63 = vmul.f32 1.442695, %v3665_v50 }
 0x610   :  { %v3633_v17 = vpop.xlane.xlu0 %3632  ;;  %v3630_v55 = vpop.xlane.xlu1 %3629 }
 0x611   :  { %6248 = vpow2.f32 %v3683_v48  ;;  %v3667_v34 = vsub.f32 %v7093_v4, %v3633_v17  ;;  %v3666_v5 = vsub.f32 %v3374_v21, %v3630_v55 }
 0x612   :  { %6250 = vpow2.f32 %v3685_v63 }
 0x613   :  { %v3689_v46 = vmul.f32 1.442695, %v3667_v34  ;;  %v3687_v39 = vmul.f32 1.442695, %v3666_v5 }
 0x614   :  { %v3636_v52 = vpop.xlane.xlu1 %3635 }
 0x615   :  { %6252 = vpow2.f32 %v3689_v46  ;;  %v3668_v44 = vsub.f32 %v7098_v15, %v3636_v52  ;;  %v3649_v52 = vsel %vm1448_vm3, %v7123_v40, -inf }
 0x616   :  { %v7133_v16 = vpop.eup %6242  ;;  %6254 = vpow2.f32 %v3687_v39 }
 0x617   :  { %v3691_v1 = vmul.f32 1.442695, %v3668_v44  ;;  %v3709_v19 = vsel %vm1448_vm3, %v7133_v16, 0.0 }
 0x618   :  { %3710 = vadd.xlane.f32.xlu0 %v3709_v19 }
 0x619   :  { %6256 = vpow2.f32 %v3691_v1  ;;  %v5223_v1 = vld [vmem:[%s5066_s7] ss:$0 sm:$0xff]  ;;  %s6362_s7 = smov 26  }
 0x61a   :  { %v7137_v23 = vpop.eup %6244  ;;  %v2251_v19 = vadd.f32 %v5223_v1, %v6959_v31  ;;  %v2250_v31 = vadd.f32 %v5223_v1, %v6946_v6  ;;  %s7381_s10 = sld [smem:[%s7467_s0 + %s6362_s7]]  }
 0x61b   :  { %v7139_v4 = vpop.eup %6246  ;;  %v3715_v21 = vsel %vm1448_vm3, %v7137_v23, 0.0 }
 0x61c   :  { %3716 = vadd.xlane.f32.xlu0 %v3715_v21  ;;  %v3639_v8 = vpop.xlane.xlu0 %3638  ;;  %v3712_v15 = vsel %vm1448_vm3, %v7139_v4, 0.0 }
 0x61d   :  { %v3669_v61 = vsub.f32 %v7107_v57, %v3639_v8  ;;  %3713 = vadd.xlane.f32.xlu1 %v3712_v15  ;;  %v3655_v8 = vsel %vm1448_vm3, %v7121_v20, -inf  ;;  %v3652_v15 = vsel %vm1448_vm3, %v7127_v12, -inf }
 0x61e   :  { %v7146_v11 = vpop.eup %6248 }
 0x61f   :  { %v7148_v42 = vpop.eup %6250  ;;  %v3693_v56 = vmul.f32 1.442695, %v3669_v61  ;;  %v3718_v43 = vsel %vm1448_vm3, %v7146_v11, 0.0  ;;  %v2249_v61 = vadd.f32 %v5223_v1, %v6963_v29  ;;  %v3658_v29 = vsel %vm1448_vm3, %v7125_v58, -inf }
 0x620   :  { %v3721_v9 = vsel %vm1448_vm3, %v7148_v42, 0.0  ;;  %v3645_v14 = vpop.xlane.xlu0 %3644  ;;  %v3642_v51 = vpop.xlane.xlu1 %3641 }
 0x621   :  { %6258 = vpow2.f32 %v3693_v56  ;;  %3722 = vadd.xlane.f32.xlu0 %v3721_v9  ;;  %v3671_v7 = vsub.f32 %v7105_v35, %v3645_v14  ;;  %3719 = vadd.xlane.f32.xlu1 %v3718_v43  ;;  %v3670_v57 = vsub.f32 %v7113_v24, %v3642_v51  ;;  %v6330_v56 = vld [vmem:[%s6386_s9 + $0x18] sm:$0xff]  ;;  %v6331_v14 = vld [vmem:[%s6386_s9 + $0x8] sm:$0xff] }
 0x622   :  { %v7156_v49 = vpop.eup %6252  ;;  %v7197_v43 = vadd.f32 %v6330_v56, %v2251_v19  ;;  %v7203_v51 = vadd.f32 %v6331_v14, %v2249_v61 }
 0x623   :  { %v7158_v25 = vpop.eup %6254  ;;  %v3697_v22 = vmul.f32 1.442695, %v3671_v7  ;;  %v3695_v0 = vmul.f32 1.442695, %v3670_v57  ;;  %v3727_v41 = vsel %vm1448_vm3, %v7156_v49, 0.0  ;;  %v2248_v7 = vadd.f32 %v5223_v1, %v6955_v60  ;;  %v6332_v57 = vld [vmem:[%s6386_s9 + $0x10] sm:$0xff] }
 0x624   :  { %v3724_v50 = vsel %vm1448_vm3, %v7158_v25, 0.0  ;;  %v3648_v48 = vpop.xlane.xlu1 %3647  ;;  %v2267_v9 = vsel %vm175_vm0, %v7197_v43, 0.0  ;;  %v2261_v6 = vsel %vm175_vm0, %v7203_v51, 0.0 }
 0x625   :  { %6260 = vpow2.f32 %v3697_v22  ;;  %3728 = vadd.xlane.f32.xlu0 %v3727_v41  ;;  %3725 = vadd.xlane.f32.xlu1 %v3724_v50  ;;  %v3672_v35 = vsub.f32 %v7111_v32, %v3648_v48  ;;  %v7209_v22 = vadd.f32 %v6332_v57, %v2250_v31  ;;  %v6333_v41 = vld [vmem:[%s6386_s9] sm:$0xff]  ;;  %s6355_s9 = smov 13  }
 0x626   :  { %v7165_v63 = vpop.eup %6256  ;;  %6262 = vpow2.f32 %v3695_v0  ;;  %v7216_v50 = vadd.f32 %v6333_v41, %v2248_v7  ;;  %s7308_s11 = sld [smem:[%s7467_s0 + %s6355_s9]]  }
 0x627   :  { %v3699_v24 = vmul.f32 1.442695, %v3672_v35  ;;  %v3730_v17 = vsel %vm1448_vm3, %v7165_v63, 0.0  ;;  %v2264_v0 = vsel %vm175_vm0, %v7209_v22, 0.0  ;;  %s5087_s9 = sld [smem:[%s7467_s0 + %s6369_s5]]  }
 0x628   :  { %v2258_v60 = vsel %vm175_vm0, %v7216_v50, 0.0 }
 0x629   :  { %6264 = vpow2.f32 %v3699_v24  ;;  %3731 = vadd.xlane.f32.xlu1 %v3730_v17 }
 0x62e   :  { %v7169_v55 = vpop.eup %6258 }
 0x62f   :  { %v3733_v34 = vsel %vm1448_vm3, %v7169_v55, 0.0 }
 0x630   :  { %3734 = vadd.xlane.f32.xlu0 %v3733_v34 }
 0x632   :  { %v7176_v32 = vpop.eup %6260 }
 0x633   :  { %v7178_v5 = vpop.eup %6262  ;;  %v3739_v46 = vsel %vm1448_vm3, %v7176_v32, 0.0 }
 0x634   :  { %3740 = vadd.xlane.f32.xlu0 %v3739_v46  ;;  %v3736_v39 = vsel %vm1448_vm3, %v7178_v5, 0.0 }
 0x635   :  { %3737 = vadd.xlane.f32.xlu1 %v3736_v39 }
 0x636   :  { %v7186_v44 = vpop.eup %6264 }
 0x637   :  { %v3742_v21 = vsel %vm1448_vm3, %v7186_v44, 0.0 }
 0x638   :  { %3650 = vmax.xlane.f32.xlu0 %v3649_v52 }
 0x639   :  { %3743 = vadd.xlane.f32.xlu1 %v3742_v21 }
 0x63c   :  { %3656 = vmax.xlane.f32.xlu0 %v3655_v8 }
 0x63d   :  { %3653 = vmax.xlane.f32.xlu1 %v3652_v15 }
 0x640   :  { %2268 = vadd.xlane.f32.xlu0 %v2267_v9 }
 0x641   :  { %3659 = vmax.xlane.f32.xlu1 %v3658_v29 }
 0x644   :  { %2262 = vadd.xlane.f32.xlu0 %v2261_v6 }
 0x645   :  { %2265 = vadd.xlane.f32.xlu1 %v2264_v0 }
 0x649   :  { %2259 = vadd.xlane.f32.xlu1 %v2258_v60 }
 0x6a1   :  { %v3711_v48 = vpop.xlane.xlu0 %3710 }
 0x6a2   :  { %6266 = vrcp.f32 %v3711_v48 }
 0x6a5   :  { %v3717_v35 = vpop.xlane.xlu0 %3716 }
 0x6a6   :  { %v3714_v24 = vpop.xlane.xlu1 %3713 }
 0x6a7   :  { %6268 = vrcp.f32 %v3714_v24 }
 0x6a8   :  { %6270 = vrcp.f32 %v3717_v35 }
 0x6aa   :  { %v3723_v17 = vpop.xlane.xlu0 %3722  ;;  %v3720_v34 = vpop.xlane.xlu1 %3719 }
 0x6ab   :  { %6272 = vrcp.f32 %v3720_v34 }
 0x6ac   :  { %6274 = vrcp.f32 %v3723_v17 }
 0x6ae   :  { %v3729_v46 = vpop.xlane.xlu0 %3728  ;;  %v3726_v39 = vpop.xlane.xlu1 %3725 }
 0x6af   :  { %6276 = vrcp.f32 %v3726_v39  ;;  %v6267_v52 = vpop.eup %6266 }
 0x6b0   :  { %6278 = vrcp.f32 %v3729_v46  ;;  %v3773_v21 = vmul.f32 %v6267_v52, %v7133_v16  ;;  %v3235_v52 = vpack.c.bf16 %v3202_v18, %v3199_v53 }
 0x6b2   :  { %v3732_v1 = vpop.xlane.xlu1 %3731 }
 0x6b3   :  { %6280 = vrcp.f32 %v3732_v1 }
 0x6b4   :  { %v6269_v19 = vpop.eup %6268 }
 0x6b5   :  { %v3774_v8 = vmul.f32 %v6269_v19, %v7139_v4  ;;  %v6271_v15 = vpop.eup %6270 }
 0x6b6   :  { %v3775_v9 = vmul.f32 %v6271_v15, %v7137_v23 }
 0x6b7   :  { %v3789_v61 = vpack.c.bf16 %v3774_v8, %v3773_v21 }
 0x6b8   :  { %v6273_v56 = vpop.eup %6272 }
 0x6b9   :  { %5957 = vmatmul.mubr.msk.bf16.vlgmr.msra.gmra.mxu0 %vm1448_vm3, %v3789_v61  ;;  %v3735_v31 = vpop.xlane.xlu0 %3734  ;;  %v3776_v14 = vmul.f32 %v6273_v56, %v7146_v11  ;;  %v6275_v16 = vpop.eup %6274 }
 0x6ba   :  { %5967 = vmatpush3.bf16.msra.mxu0 %v3231_v33  ;;  %5968 = vmatprep.mubr.msk.bf16.mxu0 %vm6343_vm1, %v6342_v36  ;;  %6282 = vrcp.f32 %v3735_v31  ;;  %v3777_v6 = vmul.f32 %v6275_v16, %v7148_v42 }
 0x6bb   :  { %5978 = vmatprep.subr.bf16.mxu0 %v6342_v36  ;;  %v3790_v4 = vpack.c.bf16 %v3776_v14, %v3775_v9 }
 0x6bc   :  { %v6277_v7 = vpop.eup %6276 }
 0x6bd   :  { %v3741_v29 = vpop.xlane.xlu0 %3740  ;;  %v6279_v57 = vpop.eup %6278  ;;  %v3778_v37 = vmul.f32 %v6277_v7, %v7158_v25  ;;  %5963 = vmatmul.mubr.msk.bf16.vlgmr.msra.gmra.mxu1 %vm1448_vm3, %v3790_v4 }
 0x6be   :  { %v3738_v3 = vpop.xlane.xlu1 %3737  ;;  %5973 = vmatpush3.bf16.msra.mxu1 %v3232_v2  ;;  %5974 = vmatprep.mubr.msk.bf16.mxu1 %vm6343_vm1, %v6342_v36  ;;  %v3779_v42 = vmul.f32 %v6279_v57, %v7156_v49  ;;  %v4151_v57 = vld [vmem:[%s7308_s11] sm:$0xf] }
 0x6bf   :  { %6284 = vrcp.f32 %v3738_v3  ;;  %v3791_v23 = vpack.c.bf16 %v3778_v37, %v3777_v6  ;;  %5984 = vmatprep.subr.bf16.mxu1 %v6342_v36  ;;  %v5347_v6 = vld [vmem:[%s7308_s11 + $0x4] sm:$0xf] }
 0x6c0   :  { %v6281_v33 = vpop.eup %6280  ;;  %6286 = vrcp.f32 %v3741_v29 }
 0x6c1   :  { %v3651_v11 = vpop.xlane.xlu0 %3650  ;;  %v3780_v25 = vmul.f32 %v6281_v33, %v7165_v63  ;;  %5969 = vmatmul.mubr.msk.bf16.vlgmr.msra.gmra.mxu0 %vm1448_vm3, %v3791_v23 }
 0x6c2   :  { %v3744_v0 = vpop.xlane.xlu1 %3743  ;;  %v3673_v26 = vsub.f32 %v7123_v40, %v3651_v11  ;;  %5979 = vmatpush3.bf16.msra.mxu0 %v3233_v10  ;;  %5980 = vmatprep.mubr.msk.bf16.mxu0 %vm6343_vm1, %v6342_v36 }
 0x6c3   :  { %6288 = vrcp.f32 %v3744_v0  ;;  %v3792_v28 = vpack.c.bf16 %v3780_v25, %v3779_v42  ;;  %5990 = vmatprep.subr.bf16.mxu0 %v6342_v36 }
 0x6c4   :  { %v3701_v2 = vmul.f32 1.442695, %v3673_v26 }
 0x6c5   :  { %v3657_v49 = vpop.xlane.xlu0 %3656  ;;  %5975 = vmatmul.mubr.msk.bf16.vlgmr.msra.gmra.mxu1 %vm1448_vm3, %v3792_v28 }
 0x6c6   :  { %6290 = vpow2.f32 %v3701_v2  ;;  %v3675_v63 = vsub.f32 %v7121_v20, %v3657_v49  ;;  %v3654_v41 = vpop.xlane.xlu1 %3653  ;;  %5985 = vmatpush3.bf16.msra.mxu1 %v3234_v38  ;;  %5986 = vmatprep.mubr.msk.bf16.mxu1 %vm6343_vm1, %v6342_v36  ;;  %v4163_v2 = vsel %vm1998_vm4, %v5347_v6, 0 }
 0x6c7   :  { %v3674_v13 = vsub.f32 %v7127_v12, %v3654_v41  ;;  %5996 = vmatprep.subr.bf16.mxu1 %v6342_v36  ;;  %v6283_v60 = vpop.eup %6282 }
 0x6c8   :  { %v3705_v62 = vmul.f32 1.442695, %v3675_v63  ;;  %v3781_v12 = vmul.f32 %v6283_v60, %v7169_v55  ;;  %v5352_v63 = vld [vmem:[%s7308_s11 + $0x8] sm:$0xf] }
 0x6c9   :  { %v3703_v10 = vmul.f32 1.442695, %v3674_v13  ;;  %v2269_v40 = vpop.xlane.xlu0 %2268 }
 0x6ca   :  { %v3660_v48 = vpop.xlane.xlu1 %3659  ;;  %v2274_v38 = vmul.f32 0.03125, %v2269_v40 }
 0x6cb   :  { %6292 = vpow2.f32 %v3703_v10  ;;  %v3676_v20 = vsub.f32 %v7125_v58, %v3660_v48  ;;  %v4221_v48 = vsel %vm1998_vm4, %v4151_v57, 0 }
 0x6cc   :  { %v6285_v35 = vpop.eup %6284  ;;  %6294 = vpow2.f32 %v3705_v62  ;;  %v7267_v58 = vsub.f32 %v7197_v43, %v2274_v38 }
 0x6cd   :  { %v3782_v24 = vmul.f32 %v6285_v35, %v7178_v5  ;;  %v3707_v17 = vmul.f32 1.442695, %v3676_v20  ;;  %v6287_v34 = vpop.eup %6286  ;;  %v2263_v27 = vpop.xlane.xlu0 %2262 }
 0x6ce   :  { %v2266_v1 = vpop.xlane.xlu1 %2265  ;;  %v3783_v30 = vmul.f32 %v6287_v34, %v7176_v32  ;;  %v2272_v19 = vmul.f32 0.03125, %v2263_v27  ;;  %v2282_v43 = vmul.f32 %v7267_v58, %v7267_v58 }
 0x6cf   :  { %v3793_v46 = vpack.c.bf16 %v3782_v24, %v3781_v12  ;;  %6296 = vpow2.f32 %v3707_v17  ;;  %v2273_v8 = vmul.f32 0.03125, %v2266_v1 }
 0x6d0   :  { %v6289_v39 = vpop.eup %6288  ;;  %v2292_v61 = vsel %vm175_vm0, %v2282_v43, 0.0 }
 0x6d1   :  { %5981 = vmatmul.mubr.msk.bf16.vlgmr.msra.gmra.mxu0 %vm1448_vm3, %v3793_v46  ;;  %v3784_v54 = vmul.f32 %v6289_v39, %v7186_v44  ;;  %v7284_v44 = vsub.f32 %v7203_v51, %v2272_v19  ;;  %v7288_v56 = vsub.f32 %v7209_v22, %v2273_v8 }
 0x6d2   :  { %5991 = vmatpush3.bf16.msra.mxu0 %v3235_v52  ;;  %5992 = vmatprep.mubr.msk.bf16.mxu0 %vm6343_vm1, %v6342_v36  ;;  %v2260_v15 = vpop.xlane.xlu1 %2259 }
 0x6d3   :  { %v6291_v55 = vpop.eup %6290  ;;  %v3794_v5 = vpack.c.bf16 %v3784_v54, %v3783_v30  ;;  %v2271_v31 = vmul.f32 0.03125, %v2260_v15  ;;  %v2280_v47 = vmul.f32 %v7284_v44, %v7284_v44  ;;  %v2281_v22 = vmul.f32 %v7288_v56, %v7288_v56  ;;  %6083 = vmatprep.subr.msk.bf16.mxu0 %vm1998_vm4, %v5347_v6 }
 0x6d4   :  { %v3745_v21 = vsel %vm1448_vm3, %v6291_v55, 0.0 }
 0x6d5   :  { %5987 = vmatmul.mubr.msk.bf16.vlgmr.msra.gmra.mxu1 %vm1448_vm3, %v3794_v5  ;;  %3746 = vadd.xlane.f32.xlu0 %v3745_v21  ;;  %v2289_v4 = vsel %vm175_vm0, %v2281_v22, 0.0  ;;  %v2286_v7 = vsel %vm175_vm0, %v2280_v47, 0.0 }
 0x6d6   :  { %5997 = vmatpush3.bf16.msra.mxu1 %v3236_v45  ;;  %5998 = vmatprep.mubr.msk.bf16.mxu1 %vm6343_vm1, %v6342_v36  ;;  %v7294_v45 = vsub.f32 %v7216_v50, %v2271_v31 }
 0x6d7   :  { %6084 = vmatprep.subr.msk.bf16.mxu1 %vm1998_vm4, %v4151_v57 }
 0x6d8   :  { %v6293_v32 = vpop.eup %6292  ;;  %v2279_v29 = vmul.f32 %v7294_v45, %v7294_v45 }
 0x6d9   :  { %v3748_v9 = vsel %vm1448_vm3, %v6293_v32, 0.0  ;;  %2293 = vadd.xlane.f32.xlu0 %v2292_v61  ;;  %v6295_v14 = vpop.eup %6294 }
 0x6da   :  { %3749 = vadd.xlane.f32.xlu1 %v3748_v9  ;;  %v3751_v51 = vsel %vm1448_vm3, %v6295_v14, 0.0  ;;  %v2283_v50 = vsel %vm175_vm0, %v2279_v29, 0.0 }
 0x6dc   :  { %v6297_v59 = vpop.eup %6296 }
 0x6dd   :  { %v3754_v16 = vsel %vm1448_vm3, %v6297_v59, 0.0 }
 0x6de   :  { %3752 = vadd.xlane.f32.xlu1 %v3751_v51  ;;  %3755 = vadd.xlane.f32.xlu0 %v3754_v16 }
 0x6e2   :  { %2290 = vadd.xlane.f32.xlu1 %v2289_v4  ;;  %2287 = vadd.xlane.f32.xlu0 %v2286_v7 }
 0x6e6   :  { %2284 = vadd.xlane.f32.xlu1 %v2283_v50  ;;  %v5224_v50 = vld [vmem:[%s5075_s15] ss:$0 sm:$0xff]  ;;  %s5089_s15 = sld [smem:[%s7467_s0 + %s6371_s12]]  }
 0x75e   :  { %v3747_v37 = vpop.xlane.xlu0 %3746 }
 0x75f   :  { %6298 = vrcp.f32 %v3747_v37 }
 0x762   :  { %v2294_v3 = vpop.xlane.xlu0 %2293 }
 0x763   :  { %v3750_v33 = vpop.xlane.xlu1 %3749  ;;  %v2298_v20 = vmul.f32 0.03125, %v2294_v3 }
 0x764   :  { %6300 = vrcp.f32 %v3750_v33 }
 0x765   :  { %v2302_v34 = vadd.f32 1e-05, %v2298_v20 }
 0x767   :  { %v3753_v23 = vpop.xlane.xlu1 %3752  ;;  %v3756_v11 = vpop.xlane.xlu0 %3755 }
 0x768   :  { %6302 = vrcp.f32 %v3753_v23 }
 0x769   :  { %6304 = vrcp.f32 %v3756_v11 }
 0x76a   :  { %6306 = vrsqrt.f32 %v2302_v34 }
 0x76b   :  { %v2291_v10 = vpop.xlane.xlu1 %2290  ;;  %v2288_v53 = vpop.xlane.xlu0 %2287 }
 0x76c   :  { %v6299_v42 = vpop.eup %6298  ;;  %v2297_v18 = vmul.f32 0.03125, %v2291_v10  ;;  %v2296_v46 = vmul.f32 0.03125, %v2288_v53  ;;  %v5355_v10 = vld [vmem:[%s7308_s11 + $0xc] sm:$0xf]  ;;  %s5088_s11 = sld [smem:[%s7467_s0 + %s6370_s8]]  }
 0x76d   :  { %v3785_v0 = vmul.f32 %v6299_v42, %v6291_v55 }
 0x76e   :  { %v2301_v1 = vadd.f32 1e-05, %v2297_v18  ;;  %v2300_v55 = vadd.f32 1e-05, %v2296_v46  ;;  %v6171_v46 = vld [vmem:[%s5079_s28] sm:$0xff]  }
 0x76f   :  { %v2285_v12 = vpop.xlane.xlu1 %2284 }
 0x770   :  { %v2295_v27 = vmul.f32 0.03125, %v2285_v12  ;;  %6308 = vrsqrt.f32 %v2301_v1 }
 0x771   :  { %v6301_v25 = vpop.eup %6300  ;;  %6310 = vrsqrt.f32 %v2300_v55 }
 0x772   :  { %v3786_v26 = vmul.f32 %v6301_v25, %v6293_v32  ;;  %v2299_v43 = vadd.f32 1e-05, %v2295_v27 }
 0x774   :  { %v3795_v28 = vpack.c.bf16 %v3786_v26, %v3785_v0  ;;  %6312 = vrsqrt.f32 %v2299_v43  ;;  %v5225_v0 = vld [vmem:[%s5076_s20] ss:$0 sm:$0xff]  ;;  %s5090_s20 = sld [smem:[%s7467_s0 + %s6372_s16]]  }
 0x775   :  { %v6303_v49 = vpop.eup %6302 }
 0x776   :  { %v6305_v41 = vpop.eup %6304  ;;  %v3787_v13 = vmul.f32 %v6303_v49, %v6295_v14  ;;  %5993 = vmatmul.mubr.msk.bf16.vlgmr.msra.gmra.mxu0 %vm1448_vm3, %v3795_v28 }
 0x777   :  { %v3788_v62 = vmul.f32 %v6305_v41, %v6297_v59  ;;  %6003 = vmatpush3.bf16.msra.mxu0 %v4163_v2  ;;  %v4283_v59 = vsel %vm1998_vm4, %v5352_v63, 0  ;;  %v6307_v51 = vpop.eup %6306 }
 0x778   :  { %6085 = vmatprep.subr.msk.bf16.mxu0 %vm1998_vm4, %v5352_v63  ;;  %v2310_v7 = vmul.f32 %v6307_v51, %v7267_v58 }
 0x779   :  { %v3796_v40 = vpack.c.bf16 %v3788_v62, %v3787_v13  ;;  %v3834_v60 = vpop.f32.mrf.mxu0  ;;  %v4493_v62 = vld [vmem:[%s5082_s24] sm:$0x3] }
 0x77a   :  { %v2320_v42 = vmul.f32 %v5224_v50, %v2310_v7 }
 0x77b   :  { %5999 = vmatmul.mubr.msk.bf16.vlgmr.msra.gmra.mxu1 %vm1448_vm3, %v3796_v40  ;;  %v5958_v35 = vpop.f32.mrf.mxu0  ;;  %v4349_v40 = vsel %vm1998_vm4, %v5355_v10, 0 }
 0x77c   :  { %6009 = vmatpush3.bf16.msra.mxu1 %v4221_v48  ;;  %v2330_v49 = vadd.f32 %v5225_v0, %v2320_v42 }
 0x77d   :  { %v3837_v38 = vpop.f32.mrf.mxu0  ;;  %v3878_v17 = vpop.f32.mrf.mxu1  ;;  %6086 = vmatprep.subr.msk.bf16.mxu1 %vm1998_vm4, %v5355_v10 }
 0x77e   :  { %v4149_v24 = vpack.c.bf16 %v3837_v38, %v3834_v60  ;;  %v6309_v22 = vpop.eup %6308 }
 0x77f   :  { %v5959_v39 = vpop.f32.mrf.mxu0  ;;  %v5964_v52 = vpop.f32.mrf.mxu1  ;;  %v2309_v37 = vmul.f32 %v6309_v22, %v7288_v56  ;;  %v4629_v22 = vld [vmem:[%s5080_s2] sm:$0x3] }
 0x780   :  { %6010 = vmatprep.mubr.msk.bf16.mxu1 %vm1071_vm2, %v4149_v24  ;;  %v6311_v29 = vpop.eup %6310  ;;  %v6170_v24 = vld [vmem:[%s5079_s28 + $0x8] sm:$0xff]  }
 0x781   :  { %v3881_v30 = vpop.f32.mrf.mxu1  ;;  %v3922_v54 = vpop.f32.mrf.mxu0  ;;  %v2308_v25 = vmul.f32 %v6311_v29, %v7284_v44  ;;  %v2319_v28 = vmul.f32 %v5224_v50, %v2309_v37 }
 0x782   :  { %v4150_v5 = vpack.c.bf16 %v3881_v30, %v3878_v17  ;;  %v6313_v3 = vpop.eup %6312 }
 0x783   :  { %v5965_v19 = vpop.f32.mrf.mxu1  ;;  %v5970_v21 = vpop.f32.mrf.mxu0  ;;  %v2307_v58 = vmul.f32 %v6313_v3, %v7294_v45  ;;  %v2318_v63 = vmul.f32 %v5224_v50, %v2308_v25  ;;  %v2329_v44 = vadd.f32 %v5225_v0, %v2319_v28  ;;  %v6334_v25 = vld [vmem:[%s6396_s17] sm:$0xff] }
 0x784   :  { %6011 = vmatmul.mubr.msk.bf16.vlgmr.msra.gmra.mxu1 %vm1071_vm2, %v4150_v5 }
 0x785   :  { %v3925_v8 = vpop.f32.mrf.mxu0  ;;  %v3966_v15 = vpop.f32.mrf.mxu1  ;;  %v2317_v41 = vmul.f32 %v5224_v50, %v2307_v58  ;;  %v2328_v45 = vadd.f32 %v5225_v0, %v2318_v63  ;;  %6021 = vmatpush3.bf16.msra.mxu1 %v4349_v40  ;;  %v5358_v50 = vld [vmem:[%s5074_s6] ss:$0 sm:$0xff] }
 0x786   :  { %v4152_v32 = vpack.c.bf16 %v3925_v8, %v3922_v54  ;;  %6037 = vmatprep.subr.bf16.mxu1 %v6342_v36 }
 0x787   :  { %v5971_v61 = vpop.f32.mrf.mxu0  ;;  %v5976_v31 = vpop.f32.mrf.mxu1  ;;  %v2327_v13 = vadd.f32 %v5225_v0, %v2317_v41 }
 0x788   :  { %6004 = vmatprep.mubr.msk.bf16.mxu0 %vm1071_vm2, %v4152_v32 }
 0x789   :  { %v3969_v9 = vpop.f32.mrf.mxu1 }
 0x78a   :  { %v4153_v14 = vpack.c.bf16 %v3969_v9, %v3966_v15 }
 0x78b   :  { %v5977_v47 = vpop.f32.mrf.mxu1 }
 0x78c   :  { %6005 = vmatmul.mubr.msk.bf16.vlgmr.msra.gmra.mxu0 %vm1071_vm2, %v4153_v14 }
 0x78d   :  { %6015 = vmatpush3.bf16.msra.mxu0 %v4283_v59 }
 0x78e   :  { %6026 = vmatprep.subr.mxu0 %v6342_v36 }
 0x791   :  { %v4010_v16 = vpop.f32.mrf.mxu0 }
 0x793   :  { %v5982_v4 = vpop.f32.mrf.mxu0 }
 0x794   :  { %v4636_v4 = vsel %vm4634_vm5, %v4629_v22, 0  ;;  %v6172_v22 = vld [vmem:[%s5084_s18 + $0x8] sm:$0xff]  }
 0x795   :  { %v4013_v57 = vpop.f32.mrf.mxu0  ;;  %v4054_v6 = vpop.f32.mrf.mxu1 }
 0x796   :  { %v4272_v33 = vpack.c.bf16 %v4013_v57, %v4010_v16 }
 0x797   :  { %v5983_v23 = vpop.f32.mrf.mxu0  ;;  %v5988_v11 = vpop.f32.mrf.mxu1 }
 0x798   :  { %6016 = vmatprep.mubr.msk.bf16.mxu0 %vm1071_vm2, %v4272_v33 }
 0x799   :  { %v4057_v26 = vpop.f32.mrf.mxu1 }
 0x79a   :  { %v4273_v56 = vpack.c.bf16 %v4057_v26, %v4054_v6 }
 0x79b   :  { %v5989_v2 = vpop.f32.mrf.mxu1 }
 0x79c   :  { %6017 = vmatmul.mubr.msk.bf16.vlgmr.msra.gmra.mxu0 %vm1071_vm2, %v4273_v56  ;;  %v6335_v56 = vld [vmem:[%s6396_s17 + $0x10] sm:$0xff] }
 0x79d   :  { %6027 = vmatpush3.msra.mxu0 %v2330_v49  ;;  %6034 = vmatprep.mubr.msk.f32.mxu0 %vm6343_vm1, %v6342_v36  ;;  %v6336_v49 = vld [vmem:[%s6396_s17 + $0x8] sm:$0xff] }
 0x79e   :  { %6028 = vmatprep.subr.mxu0 %v6342_v36 }
 0x79f   :  { %6029 = vmatpush3.msra.mxu0 %v2329_v44 }
 0x7a0   :  { %6030 = vmatprep.subr.mxu0 %v6342_v36 }
 0x7a1   :  { %6031 = vmatpush3.msra.mxu0 %v2328_v45  ;;  %v6337_v45 = vld [vmem:[%s6396_s17 + $0x18] sm:$0xff]  ;;  %s6363_s17 = smov 24  }
 0x7a2   :  { %6032 = vmatprep.subr.mxu0 %v6342_v36  ;;  %s5081_s13 = sld [smem:[%s7467_s0 + %s6363_s17]]  }
 0x7a3   :  { %6033 = vmatpush3.msra.mxu0 %v2327_v13 }
 0x7a4   :  { %6035 = vmatmul.mubr.msk.f32.vlgmr.msra.gmra.mxu0 %vm175_vm0, %v4493_v62  ;;  %6045 = vmatprep.subr.bf16.mxu0 %v6342_v36 }
 0x7a5   :  { %6047 = vmatprep.mubr.msk.bf16.mxu0 %vm6343_vm1, %v6342_v36  ;;  %6046 = vmatpush3.bf16.msra.mxu0 %v4636_v4  ;;  %v6173_v4 = vld [vmem:[%s5084_s18] sm:$0xff]  }
 0x7a6   :  { %6059 = vmatprep.subr.bf16.mxu0 %v6172_v22 }
 0x836   :  { %v4098_v60 = vpop.f32.mrf.mxu0 }
 0x838   :  { %v5994_v48 = vpop.f32.mrf.mxu0 }
 0x83a   :  { %v4101_v20 = vpop.f32.mrf.mxu0 }
 0x83b   :  { %v4338_v35 = vpack.c.bf16 %v4101_v20, %v4098_v60  ;;  %v4142_v53 = vpop.f32.mrf.mxu1 }
 0x83c   :  { %v5995_v18 = vpop.f32.mrf.mxu0 }
 0x83d   :  { %v6000_v38 = vpop.f32.mrf.mxu1  ;;  %6022 = vmatprep.mubr.msk.bf16.mxu1 %vm1071_vm2, %v4338_v35 }
 0x83f   :  { %v4145_v12 = vpop.f32.mrf.mxu1 }
 0x840   :  { %v4339_v17 = vpack.c.bf16 %v4145_v12, %v4142_v53  ;;  %v4682_v53 = vld [vmem:[%s7381_s10] sm:$0xff] }
 0x841   :  { %v6001_v34 = vpop.f32.mrf.mxu1 }
 0x842   :  { %6023 = vmatmul.mubr.msk.bf16.vlgmr.msra.gmra.mxu1 %vm1071_vm2, %v4339_v17 }
 0x843   :  { %6038 = vmatpush3.bf16.msra.mxu1 %v6170_v24  ;;  %6041 = vmatprep.mubr.msk.bf16.mxu1 %vm6343_vm1, %v6342_v36 }
 0x844   :  { %6039 = vmatprep.subr.bf16.mxu1 %v6342_v36  ;;  %v6012_v1 = vpop.f32.mrf.mxu1 }
 0x846   :  { %v4257_v30 = vpop.f32.mrf.mxu1 }
 0x847   :  { %6040 = vmatpush3.bf16.msra.mxu1 %v6171_v46 }
 0x848   :  { %v6013_v5 = vpop.f32.mrf.mxu1 }
 0x84a   :  { %v4260_v61 = vpop.f32.mrf.mxu1 }
 0x84c   :  { %v6006_v39 = vpop.f32.mrf.mxu0 }
 0x84d   :  { %v4266_v55 = vadd.f32 %v6012_v1, %v6006_v39 }
 0x84e   :  { %v4199_v52 = vpop.f32.mrf.mxu0 }
 0x84f   :  { %v4258_v21 = vadd.f32 %v4257_v30, %v4199_v52 }
 0x850   :  { %v6007_v27 = vpop.f32.mrf.mxu0 }
 0x851   :  { %v4269_v15 = vadd.f32 %v6013_v5, %v6007_v27 }
 0x852   :  { %v4202_v54 = vpop.f32.mrf.mxu0 }
 0x853   :  { %v4261_v9 = vadd.f32 %v4260_v61, %v4202_v54 }
 0x85c   :  { %v6018_v19 = vpop.f32.mrf.mxu0 }
 0x85d   :  { %v4336_v43 = vadd.f32 %v6018_v19, %v4266_v55 }
 0x85e   :  { %v4319_v8 = vpop.f32.mrf.mxu0 }
 0x85f   :  { %v4334_v32 = vadd.f32 %v4319_v8, %v4258_v21 }
 0x860   :  { %v6019_v31 = vpop.f32.mrf.mxu0 }
 0x861   :  { %v4337_v14 = vadd.f32 %v6019_v31, %v4269_v15 }
 0x862   :  { %v4322_v36 = vpop.f32.mrf.mxu0 }
 0x863   :  { %v4335_v59 = vadd.f32 %v4322_v36, %v4261_v9 }
 0x864   :  { %v4563_v47 = vpop.f32.mrf.mxu0 }
 0x865   :  { %v4567_v51 = vpack.c.bf16 %v4563_v47, %v4563_v47  ;;  %v4684_v47 = vld [vmem:[%s7381_s10 + $0x10] sm:$0xff] }
 0x866   :  { %v6036_v16 = vpop.f32.mrf.mxu0 }
 0x867   :  { %6042 = vmatmul.mubr.msk.bf16.vlgmr.msra.gmra.mxu1 %vm175_vm0, %v4567_v51  ;;  %v4685_v16 = vld [vmem:[%s7381_s10 + $0x18] sm:$0xff] }
 0x868   :  { %6053 = vmatprep.mubr.msk.f32.mxu1 %vm4686_vm7, %v4682_v53 }
 0x902   :  { %v6024_v7 = vpop.f32.mrf.mxu1 }
 0x903   :  { %v4402_v29 = vadd.f32 %v6024_v7, %v4336_v43  ;;  %v6174_v7 = vld [vmem:[%s7422_s22 + $0x18] sm:$0xff]  }
 0x904   :  { %v4385_v57 = vpop.f32.mrf.mxu1 }
 0x905   :  { %v4400_v6 = vadd.f32 %v4385_v57, %v4334_v32  ;;  %v4413_v3 = vadd.f32 %v5358_v50, %v4402_v29  ;;  %v4679_v32 = vstv %s5081_s13 }
 0x906   :  { %v6025_v37 = vpop.f32.mrf.mxu1 }
 0x907   :  { %v4411_v33 = vadd.f32 %v5358_v50, %v4400_v6  ;;  %v4403_v23 = vadd.f32 %v6025_v37, %v4337_v14  ;;  %v4417_v2 = vadd.f32 %v6335_v56, %v4413_v3 }
 0x908   :  { %v4388_v11 = vpop.f32.mrf.mxu1 }
 0x909   :  { %v4401_v42 = vadd.f32 %v4388_v11, %v4335_v59  ;;  %v4415_v0 = vadd.f32 %v6334_v25, %v4411_v33  ;;  %v4414_v26 = vadd.f32 %v5358_v50, %v4403_v23  ;;  %v4427_v41 = vsel %vm175_vm0, %v4417_v2, 0.0  ;;  %v4683_v59 = vld [vmem:[%s7381_s10 + $0x8] sm:$0xff] }
 0x90b   :  { %v4412_v28 = vadd.f32 %v5358_v50, %v4401_v42  ;;  %v4421_v58 = vsel %vm175_vm0, %v4415_v0, 0.0  ;;  %v4418_v13 = vadd.f32 %v6337_v45, %v4414_v26 }
 0x90c   :  { %4422 = vadd.xlane.f32.xlu0 %v4421_v58 }
 0x90d   :  { %v4416_v63 = vadd.f32 %v6336_v49, %v4412_v28  ;;  %v4430_v62 = vsel %vm175_vm0, %v4418_v13, 0.0 }
 0x90f   :  { %v4424_v44 = vsel %vm175_vm0, %v4416_v63, 0.0 }
 0x910   :  { %4425 = vadd.xlane.f32.xlu1 %v4424_v44  ;;  %4428 = vadd.xlane.f32.xlu0 %v4427_v41 }
 0x914   :  { %4431 = vadd.xlane.f32.xlu1 %v4430_v62  ;;  %v5360_v62 = vld [vmem:[%s5078_s30] ss:$0 sm:$0xff] }
 0x927   :  { %v4621_v10 = vpop.f32.mrf.mxu1 }
 0x928   :  { %v4627_v40 = vmax.f32 %v4621_v10, 0.0 }
 0x929   :  { %v6043_v60 = vpop.f32.mrf.mxu1 }
 0x92a   :  { %v4628_v48 = vpack.c.bf16 %v4627_v40, %v4627_v40 }
 0x92b   :  { %v4624_v20 = vpop.f32.mrf.mxu1 }
 0x92c   :  { %6048 = vmatmul.mubr.msk.bf16.vlgmr.msra.gmra.mxu0 %vm4630_vm6, %v4628_v48 }
 0x92d   :  { %v6044_v35 = vpop.f32.mrf.mxu1  ;;  %6060 = vmatpush3.bf16.msra.mxu0 %v6172_v22 }
 0x92e   :  { %6061 = vmatprep.subr.bf16.mxu0 %v6173_v4 }
 0x931   :  { %6062 = vmatpush3.bf16.msra.mxu0 %v6173_v4 }
 0x995   :  { %v4423_v18 = vpop.xlane.xlu0 %4422 }
 0x996   :  { %v4433_v38 = vmul.f32 0.03125, %v4423_v18 }
 0x998   :  { %v7385_v12 = vsub.f32 %v4415_v0, %v4433_v38 }
 0x999   :  { %v4426_v24 = vpop.xlane.xlu1 %4425  ;;  %v4429_v17 = vpop.xlane.xlu0 %4428 }
 0x99a   :  { %v4434_v34 = vmul.f32 0.03125, %v4426_v24  ;;  %v4435_v46 = vmul.f32 0.03125, %v4429_v17  ;;  %v4441_v39 = vmul.f32 %v7385_v12, %v7385_v12 }
 0x99c   :  { %v7389_v52 = vsub.f32 %v4416_v63, %v4434_v34  ;;  %v7391_v1 = vsub.f32 %v4417_v2, %v4435_v46  ;;  %v4445_v27 = vsel %vm175_vm0, %v4441_v39, 0.0  ;;  %v5359_v63 = vld [vmem:[%s5077_s26] ss:$0 sm:$0xff] }
 0x99d   :  { %v4432_v30 = vpop.xlane.xlu1 %4431  ;;  %4446 = vadd.xlane.f32.xlu0 %v4445_v27  ;;  %v6176_v27 = vld [vmem:[%s7422_s22 + $0x8] sm:$0xff]  }
 0x99e   :  { %v4436_v54 = vmul.f32 0.03125, %v4432_v30  ;;  %v4442_v55 = vmul.f32 %v7389_v52, %v7389_v52  ;;  %v4443_v5 = vmul.f32 %v7391_v1, %v7391_v1  ;;  %v6177_v30 = vld [vmem:[%s7422_s22] sm:$0xff]  }
 0x9a0   :  { %v7398_v19 = vsub.f32 %v4418_v13, %v4436_v54  ;;  %v4448_v21 = vsel %vm175_vm0, %v4442_v55, 0.0  ;;  %v4451_v43 = vsel %vm175_vm0, %v4443_v5, 0.0  ;;  %v5371_v5 = vld [vmem:[%s5085_s4] ss:$0 sm:$0xff] }
 0x9a1   :  { %4449 = vadd.xlane.f32.xlu1 %v4448_v21  ;;  %4452 = vadd.xlane.f32.xlu0 %v4451_v43 }
 0x9a2   :  { %v4444_v8 = vmul.f32 %v7398_v19, %v7398_v19 }
 0x9a4   :  { %v4454_v15 = vsel %vm175_vm0, %v4444_v8, 0.0 }
 0x9a5   :  { %4455 = vadd.xlane.f32.xlu1 %v4454_v15 }
 0x9ec   :  { %v4672_v61 = vpop.f32.mrf.mxu0 }
 0x9ed   :  { %v4680_v31 = vmul.f32 %v4679_v32, %v4672_v61 }
 0x9ee   :  { %v6049_v9 = vpop.f32.mrf.mxu0 }
 0x9ef   :  { %v4681_v14 = vadd.f32 1.0, %v4680_v31 }
 0x9f0   :  { %v4675_v36 = vpop.f32.mrf.mxu0 }
 0x9f1   :  { %6051 = vmatprep.subr.msk.mxu1 %vm4634_vm5, %v4681_v14 }
 0x9f2   :  { %v6050_v51 = vpop.f32.mrf.mxu0  ;;  %6052 = vmatpush3.msk.msra.mxu1 %vm4634_vm5, %v4681_v14 }
 0x9f3   :  { %6054 = vmatmul.mubr.msk.f32.vlgmr.msra.gmra.mxu1 %vm4686_vm7, %v4683_v59  ;;  %6067 = vmatprep.subr.bf16.mxu1 %v6174_v7  ;;  %v5376_v51 = vld [vmem:[%s5087_s9] ss:$0 sm:$0xff] }
 0x9f4   :  { %6056 = vmatprep.mubr.msk.f32.mxu1 %vm4686_vm7, %v4684_v47  ;;  %6068 = vmatpush3.bf16.msra.mxu1 %v6174_v7 }
 0x9f7   :  { %6057 = vmatmul.mubr.msk.f32.gmra.mxu1 %vm4686_vm7, %v4685_v16 }
 0xa26   :  { %v4447_v29 = vpop.xlane.xlu0 %4446 }
 0xa27   :  { %v4457_v57 = vmul.f32 0.03125, %v4447_v29 }
 0xa29   :  { %v4461_v33 = vadd.f32 1e-05, %v4457_v57 }
 0xa2a   :  { %v4450_v50 = vpop.xlane.xlu1 %4449  ;;  %v4453_v37 = vpop.xlane.xlu0 %4452 }
 0xa2b   :  { %v4458_v6 = vmul.f32 0.03125, %v4450_v50  ;;  %v4459_v23 = vmul.f32 0.03125, %v4453_v37  ;;  %6314 = vrsqrt.f32 %v4461_v33 }
 0xa2d   :  { %v4462_v11 = vadd.f32 1e-05, %v4458_v6  ;;  %v4463_v25 = vadd.f32 1e-05, %v4459_v23 }
 0xa2e   :  { %v4456_v3 = vpop.xlane.xlu1 %4455 }
 0xa2f   :  { %v4460_v42 = vmul.f32 0.03125, %v4456_v3  ;;  %6316 = vrsqrt.f32 %v4462_v11 }
 0xa30   :  { %6318 = vrsqrt.f32 %v4463_v25 }
 0xa31   :  { %v4464_v0 = vadd.f32 1e-05, %v4460_v42 }
 0xa33   :  { %6320 = vrsqrt.f32 %v4464_v0 }
 0xa38   :  { %v6315_v26 = vpop.eup %6314 }
 0xa39   :  { %v4469_v2 = vmul.f32 %v6315_v26, %v7385_v12 }
 0xa3b   :  { %v4479_v41 = vmul.f32 %v5359_v63, %v4469_v2 }
 0xa3c   :  { %v6317_v28 = vpop.eup %6316 }
 0xa3d   :  { %v6319_v58 = vpop.eup %6318  ;;  %v4470_v56 = vmul.f32 %v6317_v28, %v7389_v52  ;;  %v4489_v60 = vadd.f32 %v5360_v62, %v4479_v41 }
 0xa3e   :  { %v4471_v13 = vmul.f32 %v6319_v58, %v7391_v1  ;;  %v6175_v1 = vld [vmem:[%s7422_s22 + $0x10] sm:$0xff]  }
 0xa3f   :  { %v4480_v44 = vmul.f32 %v5359_v63, %v4470_v56  ;;  %6069 = vmatprep.subr.bf16.mxu1 %v6175_v1 }
 0xa40   :  { %v6321_v49 = vpop.eup %6320  ;;  %v4481_v20 = vmul.f32 %v5359_v63, %v4471_v13  ;;  %6070 = vmatpush3.bf16.msra.mxu1 %v6175_v1 }
 0xa41   :  { %v4472_v45 = vmul.f32 %v6321_v49, %v7398_v19  ;;  %v4490_v40 = vadd.f32 %v5360_v62, %v4480_v44  ;;  %6071 = vmatprep.subr.bf16.mxu1 %v6176_v27 }
 0xa42   :  { %v4491_v17 = vadd.f32 %v5360_v62, %v4481_v20 }
 0xa43   :  { %v4482_v48 = vmul.f32 %v5359_v63, %v4472_v45 }
 0xa44   :  { %6072 = vmatpush3.bf16.msra.mxu1 %v6176_v27 }
 0xa45   :  { %v4492_v24 = vadd.f32 %v5360_v62, %v4482_v48  ;;  %6073 = vmatprep.subr.bf16.mxu1 %v6177_v30 }
 0xa48   :  { %6074 = vmatpush3.bf16.msra.mxu1 %v6177_v30 }
 0xab3   :  { %v6055_v10 = vpop.f32.mrf.mxu1 }
 0xab4   :  { %v4788_v53 = vmul.f32 %v6055_v10, %v4490_v40 }
 0xab5   :  { %v4768_v35 = vpop.f32.mrf.mxu1 }
 0xab6   :  { %v4787_v18 = vmul.f32 %v4768_v35, %v4489_v60 }
 0xab7   :  { %v6058_v38 = vpop.f32.mrf.mxu1 }
 0xab8   :  { %v4791_v12 = vpack.c.bf16 %v4788_v53, %v4787_v18  ;;  %v4790_v46 = vmul.f32 %v6058_v38, %v4492_v24 }
 0xab9   :  { %v4778_v34 = vpop.f32.mrf.mxu1 }
 0xaba   :  { %v4789_v39 = vmul.f32 %v4778_v34, %v4491_v17  ;;  %6063 = vmatprep.mubr.msk.bf16.mxu0 %vm175_vm0, %v4791_v12 }
 0xabc   :  { %v4792_v52 = vpack.c.bf16 %v4790_v46, %v4789_v39 }
 0xabe   :  { %6064 = vmatmul.mubr.msk.bf16.vlgmr.msra.gmra.mxu0 %vm175_vm0, %v4792_v52 }
 0xb7e   :  { %v6065_v54 = vpop.f32.mrf.mxu0 }
 0xb7f   :  { %v4865_v8 = vadd.f32 %v6065_v54, %v5371_v5 }
 0xb80   :  { %v4856_v55 = vpop.f32.mrf.mxu0 }
 0xb81   :  { %v4857_v21 = vadd.f32 %v5371_v5, %v4856_v55  ;;  %v4873_v14 = vmax.f32 %v4865_v8, 0.0  ;;  %v5383_v55 = vld [vmem:[%s5088_s11] ss:$0 sm:$0xff] }
 0xb82   :  { %v6066_v19 = vpop.f32.mrf.mxu0 }
 0xb83   :  { %v4868_v43 = vadd.f32 %v6066_v19, %v5371_v5  ;;  %v4871_v31 = vmax.f32 %v4857_v21, 0.0  ;;  %v5384_v19 = vld [vmem:[%s5089_s15] ss:$0 sm:$0xff] }
 0xb84   :  { %v4859_v15 = vpop.f32.mrf.mxu0 }
 0xb85   :  { %v4860_v32 = vadd.f32 %v5371_v5, %v4859_v15  ;;  %v4874_v61 = vmax.f32 %v4868_v43, 0.0 }
 0xb87   :  { %v4872_v9 = vmax.f32 %v4860_v32, 0.0  ;;  %v4876_v59 = vpack.c.bf16 %v4874_v61, %v4873_v14 }
 0xb89   :  { %v4875_v36 = vpack.c.bf16 %v4872_v9, %v4871_v31 }
 0xb8b   :  { %6075 = vmatprep.mubr.msk.bf16.mxu1 %vm4916_vm8, %v4875_v36 }
 0xb8c   :  { %6076 = vmatmul.mubr.msk.bf16.vlgmr.msra.gmra.mxu1 %vm4916_vm8, %v4876_v59 }
 0xc4c   :  { %v6077_v47 = vpop.f32.mrf.mxu1 }
 0xc4d   :  { %v4966_v22 = vadd.f32 %v6077_v47, %v5376_v51 }
 0xc4e   :  { %v4957_v16 = vpop.f32.mrf.mxu1 }
 0xc4f   :  { %v4958_v4 = vadd.f32 %v5376_v51, %v4957_v16  ;;  %v4974_v3 = vadd.f32 %v4966_v22, %v4789_v39 }
 0xc50   :  { %v6078_v7 = vpop.f32.mrf.mxu1 }
 0xc51   :  { %v4972_v29 = vadd.f32 %v4958_v4, %v4787_v18  ;;  %v4969_v57 = vadd.f32 %v6078_v7, %v5376_v51  ;;  %v4984_v11 = vsel %vm175_vm0, %v4974_v3, 0.0 }
 0xc52   :  { %v4960_v50 = vpop.f32.mrf.mxu1 }
 0xc53   :  { %v4961_v6 = vadd.f32 %v5376_v51, %v4960_v50  ;;  %v4978_v37 = vsel %vm175_vm0, %v4972_v29, 0.0  ;;  %v4975_v42 = vadd.f32 %v4969_v57, %v4790_v46 }
 0xc54   :  { %4979 = vadd.xlane.f32.xlu0 %v4978_v37 }
 0xc55   :  { %v4973_v33 = vadd.f32 %v4961_v6, %v4788_v53  ;;  %v4987_v25 = vsel %vm175_vm0, %v4975_v42, 0.0 }
 0xc57   :  { %v4981_v23 = vsel %vm175_vm0, %v4973_v33, 0.0 }
 0xc58   :  { %4982 = vadd.xlane.f32.xlu1 %v4981_v23  ;;  %4985 = vadd.xlane.f32.xlu0 %v4984_v11 }
 0xc5c   :  { %4988 = vadd.xlane.f32.xlu1 %v4987_v25 }
 0xcdd   :  { %v4980_v0 = vpop.xlane.xlu0 %4979 }
 0xcde   :  { %v4990_v26 = vmul.f32 0.03125, %v4980_v0 }
 0xce0   :  { %v4994_v28 = vsub.f32 %v4972_v29, %v4990_v26 }
 0xce1   :  { %v4983_v58 = vpop.xlane.xlu1 %4982  ;;  %v4986_v56 = vpop.xlane.xlu0 %4985 }
 0xce2   :  { %v4991_v2 = vmul.f32 0.03125, %v4983_v58  ;;  %v4992_v49 = vmul.f32 0.03125, %v4986_v56  ;;  %v4998_v63 = vmul.f32 %v4994_v28, %v4994_v28 }
 0xce4   :  { %v4995_v44 = vsub.f32 %v4973_v33, %v4991_v2  ;;  %v4996_v41 = vsub.f32 %v4974_v3, %v4992_v49  ;;  %v5002_v45 = vsel %vm175_vm0, %v4998_v63, 0.0 }
 0xce5   :  { %v4989_v13 = vpop.xlane.xlu1 %4988  ;;  %5003 = vadd.xlane.f32.xlu0 %v5002_v45 }
 0xce6   :  { %v4993_v62 = vmul.f32 0.03125, %v4989_v13  ;;  %v4999_v10 = vmul.f32 %v4995_v44, %v4995_v44  ;;  %v5000_v40 = vmul.f32 %v4996_v41, %v4996_v41 }
 0xce8   :  { %v4997_v60 = vsub.f32 %v4975_v42, %v4993_v62  ;;  %v5005_v48 = vsel %vm175_vm0, %v4999_v10, 0.0  ;;  %v5008_v20 = vsel %vm175_vm0, %v5000_v40, 0.0 }
 0xce9   :  { %5006 = vadd.xlane.f32.xlu1 %v5005_v48  ;;  %5009 = vadd.xlane.f32.xlu0 %v5008_v20 }
 0xcea   :  { %v5001_v35 = vmul.f32 %v4997_v60, %v4997_v60 }
 0xcec   :  { %v5011_v53 = vsel %vm175_vm0, %v5001_v35, 0.0 }
 0xced   :  { %5012 = vadd.xlane.f32.xlu1 %v5011_v53 }
 0xd6e   :  { %v5004_v18 = vpop.xlane.xlu0 %5003 }
 0xd6f   :  { %v5014_v38 = vmul.f32 0.03125, %v5004_v18 }
 0xd71   :  { %v5018_v12 = vadd.f32 1e-05, %v5014_v38 }
 0xd72   :  { %v5007_v24 = vpop.xlane.xlu1 %5006  ;;  %v5010_v17 = vpop.xlane.xlu0 %5009 }
 0xd73   :  { %6322 = vrsqrt.f32 %v5018_v12  ;;  %v5015_v34 = vmul.f32 0.03125, %v5007_v24  ;;  %v5016_v46 = vmul.f32 0.03125, %v5010_v17 }
 0xd75   :  { %v5019_v39 = vadd.f32 1e-05, %v5015_v34  ;;  %v5020_v52 = vadd.f32 1e-05, %v5016_v46 }
 0xd76   :  { %v5013_v1 = vpop.xlane.xlu1 %5012 }
 0xd77   :  { %6324 = vrsqrt.f32 %v5019_v39  ;;  %v5017_v27 = vmul.f32 0.03125, %v5013_v1 }
 0xd78   :  { %6326 = vrsqrt.f32 %v5020_v52 }
 0xd79   :  { %v5021_v30 = vadd.f32 1e-05, %v5017_v27 }
 0xd7b   :  { %6328 = vrsqrt.f32 %v5021_v30 }
 0xd80   :  { %v6323_v54 = vpop.eup %6322 }
 0xd81   :  { %v5026_v5 = vmul.f32 %v6323_v54, %v4994_v28 }
 0xd83   :  { %v5036_v21 = vmul.f32 %v5383_v55, %v5026_v5 }
 0xd84   :  { %v6325_v43 = vpop.eup %6324 }
 0xd85   :  { %v6327_v8 = vpop.eup %6326  ;;  %v5046_v15 = vadd.f32 %v5384_v19, %v5036_v21  ;;  %v5027_v32 = vmul.f32 %v6325_v43, %v4995_v44 }
 0xd86   :  { %v5028_v61 = vmul.f32 %v6327_v8, %v4996_v41 }
 0xd87   :  { %5050 = vst.msk [vmem:[%s5090_s20] sm:$0xff] %vm175_vm0, %v5046_v15  ;;  %v5037_v31 = vmul.f32 %v5383_v55, %v5027_v32 }
 0xd88   :  { %v6329_v9 = vpop.eup %6328  ;;  %v5038_v14 = vmul.f32 %v5383_v55, %v5028_v61 }
 0xd89   :  { %v5047_v36 = vadd.f32 %v5384_v19, %v5037_v31  ;;  %v5029_v59 = vmul.f32 %v6329_v9, %v4997_v60 }
 0xd8a   :  { %v5048_v47 = vadd.f32 %v5384_v19, %v5038_v14 }
 0xd8b   :  { %5051 = vst.msk [vmem:[%s5090_s20 + $0x8] sm:$0xff] %vm175_vm0, %v5047_v36  ;;  %v5039_v51 = vmul.f32 %v5383_v55, %v5029_v59 }
 0xd8c   :  { %5052 = vst.msk [vmem:[%s5090_s20 + $0x10] sm:$0xff] %vm175_vm0, %v5048_v47 }
 0xd8d   :  { %v5049_v16 = vadd.f32 %v5384_v19, %v5039_v51 }
 0xd8f   :  { %5053 = vst.msk [vmem:[%s5090_s20 + $0x18] sm:$0xff] %vm175_vm0, %v5049_v16 }

</bundles_post_ra>
